<compile_context>
chip_gen: v7x
topology: tpu7x:2x2x1
jax: 0.10.0
libtpu: 0.0.40
codegen_flags: <defaults>
</compile_context>

<pallas_src>
import functools

import jax
import jax.numpy as jnp
from jax.experimental import pallas as pl
from jax.experimental.pallas import tpu as pltpu

STAGE_KEYS = ("g1", "beta1", "w1", "b1", "w2", "b2", "g2", "beta2")
_LANE = 128
_DEF_F_CHUNK = 1024
_SQRT_HALF = 0.7071067811865476


# ----------------------------------------------------------------------------
# small utilities
# ----------------------------------------------------------------------------
def _round_up(x, m):
    return ((x + m - 1) // m) * m


def _padded_dims(E, heads, F):
    dh = E // heads
    return _round_up(E, _LANE), _round_up(dh, _LANE), _round_up(F, _LANE)


def _vmem_budget_bytes():
    cap = 128 * 1024 * 1024
    try:
        info = pltpu.get_tpu_info()
        c = int(getattr(info, "vmem_capacity_bytes", 0))
        if c > 0:
            cap = c
    except Exception:
        pass
    # ~75% of per-core VMEM, capped below the physical maximum.
    return min(int(cap * 0.75), 100 * 1024 * 1024)


def _full_spec(shape):
    nd = len(shape)
    return pl.BlockSpec(shape, lambda i, j, _nd=nd: (0,) * _nd)


def _pick_batch_tile(b, rows_per_elem, other_extent, Ep, dhp, fc, weight_bytes,
                     budget):
    """Largest divisor of b whose per-step VMEM estimate fits the budget."""
    def est(tb):
        rows = tb * rows_per_elem
        e = 4 * rows * Ep * 4                              # in/out blocks, 2-buffered
        e += 4 * rows * Ep * 4                             # resident activations
        e += 2 * rows * fc * 4                             # MLP hidden chunk
        e += 3 * rows * dhp * 4                            # per-head q/k/v
        e += 2 * tb * rows_per_elem * rows_per_elem * 4    # scores / probs
        e += 2 * weight_bytes                              # weights (conservative)
        return e

    divisors = [t for t in range(1, b + 1) if b % t == 0]
    tb = 1
    for t in divisors:
        if est(t) <= budget:
            tb = t
    # keep >=2 grid steps so v7x megacore has work for both TensorCores
    while tb > 1 and (b // tb) * other_extent < 2:
        tb = max(t for t in divisors if t < tb)
    return tb


# ----------------------------------------------------------------------------
# in-kernel building blocks
# ----------------------------------------------------------------------------
def _erf_approx(x):
    # Abramowitz & Stegun 7.1.26 (max abs error ~1.5e-7): exact-GELU semantics
    # without relying on a native erf lowering.
    a1, a2, a3, a4, a5 = (0.254829592, -0.284496736, 1.421413741,
                          -1.453152027, 1.061405429)
    p = 0.3275911
    ax = jnp.abs(x)
    t = 1.0 / (1.0 + p * ax)
    poly = ((((a5 * t + a4) * t + a3) * t + a2) * t + a1) * t
    y = 1.0 - poly * jnp.exp(-ax * ax)
    return jnp.where(x >= 0, y, -y)


def _gelu(x):
    return 0.5 * x * (1.0 + _erf_approx(x * _SQRT_HALF))


def _attn_heads(kv3, p_refs, heads, dh, q3=None, q_heads=None):
    """Multi-head attention on VMEM-resident tiles with per-head-split weights.

    kv3: (Bt, S, Ep).  q3: (Bt, L, Ep), or q_heads = [per-head (Bt, L, dhp)]
    (already-projected queries, e.g. the broadcast router).
    p_refs: wq/wk/wv (H, Ep, dhp), bq/bk/bv (H, 1, dhp), wo (H, dhp, Ep),
    bo (1, Ep).  Returns (Bt*L, Ep).
    """
    wq, bq, wk, bk, wv, bv, wo, bo = p_refs
    Bt, S, Ep = kv3.shape
    if q_heads is not None:
        L = q_heads[0].shape[1]
        qf = None
    else:
        L = q3.shape[1]
        qf = q3.reshape(Bt * L, Ep)
    kf = kv3.reshape(Bt * S, Ep)
    scale = dh ** -0.5

    acc = None
    for h in range(heads):                       # static unroll over real heads
        if q_heads is not None:
            qh = q_heads[h]
        else:
            qh = (jnp.dot(qf, wq[h], preferred_element_type=jnp.float32)
                  + bq[h]).reshape(Bt, L, -1)
        kh = (jnp.dot(kf, wk[h], preferred_element_type=jnp.float32)
              + bk[h]).reshape(Bt, S, -1)
        vh = (jnp.dot(kf, wv[h], preferred_element_type=jnp.float32)
              + bv[h]).reshape(Bt, S, -1)
        s = jnp.einsum('bld,bsd->bls', qh, kh,
                       preferred_element_type=jnp.float32) * scale
        s = s - jnp.max(s, axis=-1, keepdims=True)
        p = jnp.exp(s)
        p = p * pl.reciprocal(jnp.sum(p, axis=-1, keepdims=True), approx=True)
        o = jnp.einsum('bls,bsd->bld', p, vh, preferred_element_type=jnp.float32)
        c = jnp.dot(o.reshape(Bt * L, -1), wo[h],
                    preferred_element_type=jnp.float32)
        acc = c if acc is None else acc + c      # per-head out-proj accumulation
    return acc + bo[...]


def _addnorm_mlp(x2, r2, s_refs, e_real, f_chunk, eps=1e-5):
    """y = LN2(t + MLP(t)), t = LN1(x + r); masked LN over the real E lanes."""
    g1, be1, w1, b1, w2, b2, g2, be2 = s_refs
    _, ep = x2.shape
    inv_e = 1.0 / float(e_real)
    if ep != e_real:
        lane = jax.lax.broadcasted_iota(jnp.int32, (1, ep), 1)
        mask = (lane < e_real).astype(jnp.float32)
    else:
        mask = None

    def _ln(y, g_ref, b_ref):
        mu = jnp.sum(y, axis=-1, keepdims=True) * inv_e
        c = y - mu
        if mask is not None:
            c = c * mask
        var = jnp.sum(c * c, axis=-1, keepdims=True) * inv_e
        return (y - mu) * jax.lax.rsqrt(var + eps) * g_ref[...] + b_ref[...]

    t = _ln(x2 + r2, g1, be1)

    fp = w1.shape[-1]
    fc = min(f_chunk, fp)
    m = None
    for f0 in range(0, fp, fc):                  # F-chunked hidden (v7x VMEM)
        h = jnp.dot(t, w1[:, f0:f0 + fc],
                    preferred_element_type=jnp.float32) + b1[:, f0:f0 + fc]
        h = _gelu(h)
        part = jnp.dot(h, w2[f0:f0 + fc, :], preferred_element_type=jnp.float32)
        m = part if m is None else m + part
    m = m + b2[...]
    return _ln(t + m, g2, be2)


# ----------------------------------------------------------------------------
# fused Pallas kernels
# ----------------------------------------------------------------------------
def _stage1_kernel(x_ref,
                   wq, bq, wk, bk, wv, bv, wo, bo,
                   g1, be1, w1, b1, w2, b2, g2, be2,
                   o_ref, *, heads, dh, e_real, f_chunk):
    """Time self-attention + add&norm + MLP + add&norm; writes (b,S,D,1,E) layout."""
    blk = x_ref[...]                                   # (TB, 1, S, Ep)
    TB, _, S, Ep = blk.shape
    x3 = blk.reshape(TB, S, Ep)
    attn = _attn_heads(x3, (wq, bq, wk, bk, wv, bv, wo, bo), heads, dh, q3=x3)
    out = _addnorm_mlp(x3.reshape(TB * S, Ep), attn,
                       (g1, be1, w1, b1, w2, b2, g2, be2), e_real, f_chunk)
    o_ref[...] = out.reshape(TB, S, 1, 1, Ep)


def _stage2_kernel(ds_ref, r_ref,
                   swq, sbq, swk, sbk, swv, sbv, swo, sbo,
                   rwq, rbq, rwk, rbk, rwv, rbv, rwo, rbo,
                   g1, be1, w1, b1, w2, b2, g2, be2,
                   o_ref, *, heads, dh, e_real, f_chunk):
    """Router sender+receiver attention + add&norm + MLP; writes (b,D,S,1,E)."""
    blk = ds_ref[...]                                  # (TB, 1, D, 1, Ep)
    TB, _, D, _, Ep = blk.shape
    ds3 = blk.reshape(TB, D, Ep)
    r2 = r_ref[...].reshape(-1, Ep)                    # (factor, Ep)
    factor = r2.shape[0]

    # sender: Q = router (projected ONCE per segment block, broadcast over TB)
    q_heads = []
    for h in range(heads):
        qr = jnp.dot(r2, swq[h], preferred_element_type=jnp.float32) + sbq[h]
        q_heads.append(jnp.broadcast_to(qr[None, :, :],
                                        (TB, factor, qr.shape[-1])))
    buf = _attn_heads(ds3, (swq, sbq, swk, sbk, swv, sbv, swo, sbo),
                      heads, dh, q_heads=q_heads)      # (TB*factor, Ep)
    buf3 = buf.reshape(TB, factor, Ep)                 # dim_buffer stays in VMEM

    # receiver: Q = dim_send, K = V = dim_buffer
    rec = _attn_heads(buf3, (rwq, rbq, rwk, rbk, rwv, rbv, rwo, rbo),
                      heads, dh, q3=ds3)               # (TB*D, Ep)
    out = _addnorm_mlp(ds3.reshape(TB * D, Ep), rec,
                       (g1, be1, w1, b1, w2, b2, g2, be2), e_real, f_chunk)
    o_ref[...] = out.reshape(TB, D, 1, 1, Ep)


# ----------------------------------------------------------------------------
# pallas_call wrappers
# ----------------------------------------------------------------------------
def _stage1_call(x_pad, attn_w, stage_w, heads, dh, e_real, f_chunk, budget):
    b, D, S, Ep = x_pad.shape
    dhp = attn_w[0].shape[-1]
    weights = list(attn_w) + list(stage_w)
    wbytes = sum(int(w.size) for w in weights) * 4
    fc = min(f_chunk, stage_w[2].shape[-1])
    tb = _pick_batch_tile(b, S, D, Ep, dhp, fc, wbytes, budget)
    grid = (b // tb, D)
    kernel = functools.partial(_stage1_kernel, heads=heads, dh=dh,
                               e_real=e_real, f_chunk=f_chunk)
    return pl.pallas_call(
        kernel,
        out_shape=jax.ShapeDtypeStruct((b, S, D, 1, Ep), jnp.float32),
        grid=grid,
        in_specs=[pl.BlockSpec((tb, 1, S, Ep), lambda i, j: (i, j, 0, 0))]
                 + [_full_spec(w.shape) for w in weights],
        out_specs=pl.BlockSpec((tb, S, 1, 1, Ep), lambda i, j: (i, 0, j, 0, 0)),
        compiler_params=pltpu.CompilerParams(
            dimension_semantics=("parallel", "parallel"),
            vmem_limit_bytes=budget),
    )(x_pad, *weights)


def _stage2_call(mid, router_pad, send_w, recv_w, stage_w, heads, dh, e_real,
                 f_chunk, budget):
    b, S, D, _, Ep = mid.shape
    factor = router_pad.shape[1]
    dhp = send_w[0].shape[-1]
    weights = list(send_w) + list(recv_w) + list(stage_w)
    wbytes = sum(int(w.size) for w in weights) * 4
    fc = min(f_chunk, stage_w[2].shape[-1])
    tb = _pick_batch_tile(b, D, S, Ep, dhp, fc, wbytes, budget)
    grid = (b // tb, S)
    kernel = functools.partial(_stage2_kernel, heads=heads, dh=dh,
                               e_real=e_real, f_chunk=f_chunk)
    return pl.pallas_call(
        kernel,
        out_shape=jax.ShapeDtypeStruct((b, D, S, 1, Ep), jnp.float32),
        grid=grid,
        in_specs=[pl.BlockSpec((tb, 1, D, 1, Ep), lambda i, j: (i, j, 0, 0, 0)),
                  pl.BlockSpec((1, factor, Ep), lambda i, j: (j, 0, 0))]
                 + [_full_spec(w.shape) for w in weights],
        out_specs=pl.BlockSpec((tb, D, 1, 1, Ep), lambda i, j: (i, 0, j, 0, 0)),
        compiler_params=pltpu.CompilerParams(
            dimension_semantics=("parallel", "parallel"),
            vmem_limit_bytes=budget),
    )(mid, router_pad, *weights)


# ----------------------------------------------------------------------------
# parameter preparation (lane padding + per-head weight splitting)
# ----------------------------------------------------------------------------
def _prep_attn(p, E, heads, dh, Ep, dhp):
    wq, bq, wk, bk, wv, bv, wo, bo = p

    def split_in(w, bvec):
        w_h = jnp.zeros((heads, Ep, dhp), jnp.float32)
        w_h = w_h.at[:, :E, :dh].set(w.reshape(E, heads, dh).transpose(1, 0, 2))
        b_h = jnp.zeros((heads, 1, dhp), jnp.float32)
        b_h = b_h.at[:, :, :dh].set(bvec.reshape(heads, dh)[:, None, :])
        return w_h, b_h

    wq_h, bq_h = split_in(wq, bq)
    wk_h, bk_h = split_in(wk, bk)
    wv_h, bv_h = split_in(wv, bv)
    wo_h = jnp.zeros((heads, dhp, Ep), jnp.float32)
    wo_h = wo_h.at[:, :dh, :E].set(wo.reshape(heads, dh, E))
    bo_p = jnp.zeros((1, Ep), jnp.float32).at[:, :E].set(bo)
    return [wq_h, bq_h, wk_h, bk_h, wv_h, bv_h, wo_h, bo_p]


def _prep_stage(sp, Ep, Fp):
    def pad2(a, r, c):
        return jnp.pad(a, ((0, r - a.shape[0]), (0, c - a.shape[1])))

    return [pad2(sp["g1"], 1, Ep), pad2(sp["beta1"], 1, Ep),
            pad2(sp["w1"], Ep, Fp), pad2(sp["b1"], 1, Fp),
            pad2(sp["w2"], Fp, Ep), pad2(sp["b2"], 1, Ep),
            pad2(sp["g2"], 1, Ep), pad2(sp["beta2"], 1, Ep)]


# ----------------------------------------------------------------------------
# full TwoStageAttentionLayer forward
# ----------------------------------------------------------------------------
def two_stage_attention_forward(x, params):
    b, D, S, E = x.shape
    heads = params["heads"]
    assert E % heads == 0
    dh = E // heads
    F = params["stage1"]["w1"].shape[1]
    Ep, dhp, Fp = _padded_dims(E, heads, F)
    budget = _vmem_budget_bytes()
    f_chunk = min(Fp, _DEF_F_CHUNK)

    time_w = _prep_attn(params["time_attn"], E, heads, dh, Ep, dhp)
    send_w = _prep_attn(params["dim_sender"], E, heads, dh, Ep, dhp)
    recv_w = _prep_attn(params["dim_receiver"], E, heads, dh, Ep, dhp)
    st1_w = _prep_stage(params["stage1"], Ep, Fp)
    st2_w = _prep_stage(params["stage2"], Ep, Fp)
    router_pad = jnp.pad(params["router"], ((0, 0), (0, 0), (0, Ep - E)))
    x_pad = jnp.pad(x, ((0, 0), (0, 0), (0, 0), (0, Ep - E)))

    # stage 1: (b, D, S, Ep) -> (b, S, D, 1, Ep)  (layout swap folded into specs)
    mid = _stage1_call(x_pad, time_w, st1_w, heads, dh, E, f_chunk, budget)
    # stage 2: (b, S, D, 1, Ep) -> (b, D, S, 1, Ep)
    out5 = _stage2_call(mid, router_pad, send_w, recv_w, st2_w, heads, dh, E,
                        f_chunk, budget)
    return out5.reshape(b, D, S, Ep)[..., :E]


# ----------------------------------------------------------------------------
# deterministic parameter init (synthetic, Linear-style uniform)
# ----------------------------------------------------------------------------
def _init_attn_params(key, E):
    ks = jax.random.split(key, 8)
    s = 1.0 / (E ** 0.5)
    u = lambda k, shape: jax.random.uniform(k, shape, jnp.float32, -s, s)
    return (u(ks[0], (E, E)), u(ks[1], (1, E)),
            u(ks[2], (E, E)), u(ks[3], (1, E)),
            u(ks[4], (E, E)), u(ks[5], (1, E)),
            u(ks[6], (E, E)), u(ks[7], (1, E)))


def _init_stage_params(key, E, F):
    ks = jax.random.split(key, 4)
    s1, s2 = 1.0 / (E ** 0.5), 1.0 / (F ** 0.5)
    return {
        "g1": jnp.ones((1, E), jnp.float32), "beta1": jnp.zeros((1, E), jnp.float32),
        "w1": jax.random.uniform(ks[0], (E, F), jnp.float32, -s1, s1),
        "b1": jax.random.uniform(ks[1], (1, F), jnp.float32, -s1, s1),
        "w2": jax.random.uniform(ks[2], (F, E), jnp.float32, -s2, s2),
        "b2": jax.random.uniform(ks[3], (1, E), jnp.float32, -s2, s2),
        "g2": jnp.ones((1, E), jnp.float32), "beta2": jnp.zeros((1, E), jnp.float32),
    }


def init_params(key, seg_num, factor, model_dim, heads, feedforward_dim=None):
    F = feedforward_dim or 4 * model_dim
    k = jax.random.split(key, 6)
    return {
        "heads": heads,
        "time_attn": _init_attn_params(k[0], model_dim),
        "dim_sender": _init_attn_params(k[1], model_dim),
        "dim_receiver": _init_attn_params(k[2], model_dim),
        "router": jax.random.normal(k[3], (seg_num, factor, model_dim), jnp.float32),
        "stage1": _init_stage_params(k[4], model_dim, F),
        "stage2": _init_stage_params(k[5], model_dim, F),
    }


# ----------------------------------------------------------------------------
# plain-JAX reference (for correctness check; highest-precision matmuls)
# ----------------------------------------------------------------------------
_HI = jax.lax.Precision.HIGHEST


def _ref_attention_layer(q, k, v, p, heads):
    B, L, E = q.shape
    S = k.shape[1]
    dh = E // heads
    qp = (jnp.dot(q, p[0], precision=_HI) + p[1]).reshape(B, L, heads, dh)
    kp = (jnp.dot(k, p[2], precision=_HI) + p[3]).reshape(B, S, heads, dh)
    vp = (jnp.dot(v, p[4], precision=_HI) + p[5]).reshape(B, S, heads, dh)
    scores = jnp.einsum('blhe,bshe->bhls', qp, kp, precision=_HI) * (dh ** -0.5)
    attn = jax.nn.softmax(scores, axis=-1)
    out = jnp.einsum('bhls,bshd->blhd', attn, vp, precision=_HI).reshape(B, L, E)
    return jnp.dot(out, p[6], precision=_HI) + p[7]


def _ref_addnorm_mlp(a, b, p, eps=1e-5):
    x = a + b
    mu = jnp.mean(x, -1, keepdims=True)
    var = jnp.mean((x - mu) ** 2, -1, keepdims=True)
    t = (x - mu) * jax.lax.rsqrt(var + eps) * p["g1"] + p["beta1"]
    h = jnp.dot(t, p["w1"], precision=_HI) + p["b1"]
    h = 0.5 * h * (1.0 + jax.lax.erf(h * _SQRT_HALF))
    y = t + (jnp.dot(h, p["w2"], precision=_HI) + p["b2"])
    mu2 = jnp.mean(y, -1, keepdims=True)
    var2 = jnp.mean((y - mu2) ** 2, -1, keepdims=True)
    return (y - mu2) * jax.lax.rsqrt(var2 + eps) * p["g2"] + p["beta2"]


def reference_forward(x, params):
    b, data_dim, seg_num, E = x.shape
    heads = params["heads"]
    time_in = x.reshape(b * data_dim, seg_num, E)
    time_enc = _ref_attention_layer(time_in, time_in, time_in,
                                    params["time_attn"], heads)
    dim_in = _ref_addnorm_mlp(time_in, time_enc, params["stage1"])
    dim_send = (dim_in.reshape(b, data_dim, seg_num, E)
                      .transpose(0, 2, 1, 3).reshape(b * seg_num, data_dim, E))
    batch_router = jnp.tile(params["router"], (b, 1, 1))
    dim_buffer = _ref_attention_layer(batch_router, dim_send, dim_send,
                                      params["dim_sender"], heads)
    dim_receive = _ref_attention_layer(dim_send, dim_buffer, dim_buffer,
                                       params["dim_receiver"], heads)
    dim_enc = _ref_addnorm_mlp(dim_send, dim_receive, params["stage2"])
    return dim_enc.reshape(b, seg_num, data_dim, E).transpose(0, 2, 1, 3)


# ----------------------------------------------------------------------------
if __name__ == "__main__":
    batch, data_dim, seg_num, model_dim = 2, 4, 8, 32
    heads, factor = 4, 2

    key = jax.random.PRNGKey(0)
    params = init_params(key, seg_num, factor, model_dim, heads)
    x = jax.random.normal(jax.random.fold_in(key, 123),
                          (batch, data_dim, seg_num, model_dim), jnp.float32)

    out = jax.block_until_ready(two_stage_attention_forward(x, params))
    assert out.shape == (batch, data_dim, seg_num, model_dim)
    assert bool(jnp.isfinite(out).all()), "non-finite values in kernel output"

    ref = jax.block_until_ready(reference_forward(x, params))
    # Tolerance covers the difference between Mosaic's default fp32 MXU
    # emulation and the HIGHEST-precision XLA reference; structural bugs
    # produce O(0.1-1) errors on these LayerNorm-scaled outputs.
    max_err = float(jnp.max(jnp.abs(out - ref)))
    assert max_err < 5e-2, f"mismatch vs reference, max abs err {max_err}"

    print("KERNEL_OK")
</pallas_src>

<mosaic_0001>
module attributes {stable_mosaic.version = 11 : i64} {
  func.func @_stage1_kernel(%arg0: i32, %arg1: i32, %arg2: memref<2x1x8x128xf32, #tpu.memory_space<vmem>>, %arg3: memref<4x128x128xf32, #tpu.memory_space<vmem>>, %arg4: memref<4x1x128xf32, #tpu.memory_space<vmem>>, %arg5: memref<4x128x128xf32, #tpu.memory_space<vmem>>, %arg6: memref<4x1x128xf32, #tpu.memory_space<vmem>>, %arg7: memref<4x128x128xf32, #tpu.memory_space<vmem>>, %arg8: memref<4x1x128xf32, #tpu.memory_space<vmem>>, %arg9: memref<4x128x128xf32, #tpu.memory_space<vmem>>, %arg10: memref<1x128xf32, #tpu.memory_space<vmem>>, %arg11: memref<1x128xf32, #tpu.memory_space<vmem>>, %arg12: memref<1x128xf32, #tpu.memory_space<vmem>>, %arg13: memref<128x128xf32, #tpu.memory_space<vmem>>, %arg14: memref<1x128xf32, #tpu.memory_space<vmem>>, %arg15: memref<128x128xf32, #tpu.memory_space<vmem>>, %arg16: memref<1x128xf32, #tpu.memory_space<vmem>>, %arg17: memref<1x128xf32, #tpu.memory_space<vmem>>, %arg18: memref<1x128xf32, #tpu.memory_space<vmem>>, %arg19: memref<2x8x1x1x128xf32, #tpu.memory_space<vmem>>) attributes {dimension_semantics = [#tpu.dimension_semantics<parallel>, #tpu.dimension_semantics<parallel>], iteration_bounds = array<i64: 1, 4>, scalar_prefetch = 0 : i64, scratch_operands = 0 : i64, tpu.core_type = #tpu.core_type<tc>, window_params = [{transform_indices = @transform_0, window_bounds = array<i64: 2, 1, 8, 128>}, {pipeline_mode = #tpu.pipeline_mode<synchronous>, transform_indices = @transform_1, window_bounds = array<i64: 4, 128, 128>}, {pipeline_mode = #tpu.pipeline_mode<synchronous>, transform_indices = @transform_2, window_bounds = array<i64: 4, 1, 128>}, {pipeline_mode = #tpu.pipeline_mode<synchronous>, transform_indices = @transform_3, window_bounds = array<i64: 4, 128, 128>}, {pipeline_mode = #tpu.pipeline_mode<synchronous>, transform_indices = @transform_4, window_bounds = array<i64: 4, 1, 128>}, {pipeline_mode = #tpu.pipeline_mode<synchronous>, transform_indices = @transform_5, window_bounds = array<i64: 4, 128, 128>}, {pipeline_mode = #tpu.pipeline_mode<synchronous>, transform_indices = @transform_6, window_bounds = array<i64: 4, 1, 128>}, {pipeline_mode = #tpu.pipeline_mode<synchronous>, transform_indices = @transform_7, window_bounds = array<i64: 4, 128, 128>}, {pipeline_mode = #tpu.pipeline_mode<synchronous>, transform_indices = @transform_8, window_bounds = array<i64: 1, 128>}, {pipeline_mode = #tpu.pipeline_mode<synchronous>, transform_indices = @transform_9, window_bounds = array<i64: 1, 128>}, {pipeline_mode = #tpu.pipeline_mode<synchronous>, transform_indices = @transform_10, window_bounds = array<i64: 1, 128>}, {pipeline_mode = #tpu.pipeline_mode<synchronous>, transform_indices = @transform_11, window_bounds = array<i64: 128, 128>}, {pipeline_mode = #tpu.pipeline_mode<synchronous>, transform_indices = @transform_12, window_bounds = array<i64: 1, 128>}, {pipeline_mode = #tpu.pipeline_mode<synchronous>, transform_indices = @transform_13, window_bounds = array<i64: 128, 128>}, {pipeline_mode = #tpu.pipeline_mode<synchronous>, transform_indices = @transform_14, window_bounds = array<i64: 1, 128>}, {pipeline_mode = #tpu.pipeline_mode<synchronous>, transform_indices = @transform_15, window_bounds = array<i64: 1, 128>}, {pipeline_mode = #tpu.pipeline_mode<synchronous>, transform_indices = @transform_16, window_bounds = array<i64: 1, 128>}, {transform_indices = @transform_17, window_bounds = array<i64: 2, 8, 1, 1, 128>}]} {
    %c0 = arith.constant 0 : index
    %c0_0 = arith.constant 0 : index
    %c0_1 = arith.constant 0 : index
    %c0_2 = arith.constant 0 : index
    %0 = vector.load %arg2[%c0, %c0_0, %c0_1, %c0_2] : memref<2x1x8x128xf32, #tpu.memory_space<vmem>>, vector<2x1x8x128xf32>
    %1 = vector.shape_cast %0 : vector<2x1x8x128xf32> to vector<2x8x128xf32>
    %2 = vector.shape_cast %1 : vector<2x8x128xf32> to vector<16x128xf32>
    %3 = vector.shape_cast %1 : vector<2x8x128xf32> to vector<16x128xf32>
    %c0_3 = arith.constant 0 : index
    %c0_4 = arith.constant 0 : index
    %c0_5 = arith.constant 0 : index
    %4 = vector.load %arg3[%c0_3, %c0_4, %c0_5] : memref<4x128x128xf32, #tpu.memory_space<vmem>>, vector<1x128x128xf32>
    %5 = vector.shape_cast %4 : vector<1x128x128xf32> to vector<128x128xf32>
    %cst = arith.constant dense<0.000000e+00> : vector<16x128xf32>
    %6 = tpu.matmul %2, %5, %cst {dimension_numbers = #tpu.dot_dimension_numbers<[1], [0], [0], [1], [0, 0, 1, 1], [], []>} : vector<16x128xf32>, vector<128x128xf32>, vector<16x128xf32> -> vector<16x128xf32>
    %c0_6 = arith.constant 0 : index
    %c0_7 = arith.constant 0 : index
    %c0_8 = arith.constant 0 : index
    %7 = vector.load %arg4[%c0_6, %c0_7, %c0_8] : memref<4x1x128xf32, #tpu.memory_space<vmem>>, vector<1x1x128xf32>
    %8 = vector.shape_cast %7 : vector<1x1x128xf32> to vector<1x128xf32>
    %9 = vector.broadcast %8 : vector<1x128xf32> to vector<16x128xf32>
    %10 = arith.addf %6, %9 : vector<16x128xf32>
    %11 = vector.shape_cast %10 : vector<16x128xf32> to vector<2x8x128xf32>
    %c0_9 = arith.constant 0 : index
    %c0_10 = arith.constant 0 : index
    %c0_11 = arith.constant 0 : index
    %12 = vector.load %arg5[%c0_9, %c0_10, %c0_11] : memref<4x128x128xf32, #tpu.memory_space<vmem>>, vector<1x128x128xf32>
    %13 = vector.shape_cast %12 : vector<1x128x128xf32> to vector<128x128xf32>
    %cst_12 = arith.constant dense<0.000000e+00> : vector<16x128xf32>
    %14 = tpu.matmul %3, %13, %cst_12 {dimension_numbers = #tpu.dot_dimension_numbers<[1], [0], [0], [1], [0, 0, 1, 1], [], []>} : vector<16x128xf32>, vector<128x128xf32>, vector<16x128xf32> -> vector<16x128xf32>
    %c0_13 = arith.constant 0 : index
    %c0_14 = arith.constant 0 : index
    %c0_15 = arith.constant 0 : index
    %15 = vector.load %arg6[%c0_13, %c0_14, %c0_15] : memref<4x1x128xf32, #tpu.memory_space<vmem>>, vector<1x1x128xf32>
    %16 = vector.shape_cast %15 : vector<1x1x128xf32> to vector<1x128xf32>
    %17 = vector.broadcast %16 : vector<1x128xf32> to vector<16x128xf32>
    %18 = arith.addf %14, %17 : vector<16x128xf32>
    %19 = vector.shape_cast %18 : vector<16x128xf32> to vector<2x8x128xf32>
    %c0_16 = arith.constant 0 : index
    %c0_17 = arith.constant 0 : index
    %c0_18 = arith.constant 0 : index
    %20 = vector.load %arg7[%c0_16, %c0_17, %c0_18] : memref<4x128x128xf32, #tpu.memory_space<vmem>>, vector<1x128x128xf32>
    %21 = vector.shape_cast %20 : vector<1x128x128xf32> to vector<128x128xf32>
    %cst_19 = arith.constant dense<0.000000e+00> : vector<16x128xf32>
    %22 = tpu.matmul %3, %21, %cst_19 {dimension_numbers = #tpu.dot_dimension_numbers<[1], [0], [0], [1], [0, 0, 1, 1], [], []>} : vector<16x128xf32>, vector<128x128xf32>, vector<16x128xf32> -> vector<16x128xf32>
    %c0_20 = arith.constant 0 : index
    %c0_21 = arith.constant 0 : index
    %c0_22 = arith.constant 0 : index
    %23 = vector.load %arg8[%c0_20, %c0_21, %c0_22] : memref<4x1x128xf32, #tpu.memory_space<vmem>>, vector<1x1x128xf32>
    %24 = vector.shape_cast %23 : vector<1x1x128xf32> to vector<1x128xf32>
    %25 = vector.broadcast %24 : vector<1x128xf32> to vector<16x128xf32>
    %26 = arith.addf %22, %25 : vector<16x128xf32>
    %27 = vector.shape_cast %26 : vector<16x128xf32> to vector<2x8x128xf32>
    "tpu.trace_start"() <{level = 10 : i32, message = "bld,bsd->bls"}> : () -> ()
    %cst_23 = arith.constant dense<0.000000e+00> : vector<2x8x8xf32>
    %28 = tpu.matmul %11, %19, %cst_23 {dimension_numbers = #tpu.dot_dimension_numbers<[2], [2], [1], [1], [0, 0, 0, 1, 1, 1], [0], [0]>} : vector<2x8x128xf32>, vector<2x8x128xf32>, vector<2x8x8xf32> -> vector<2x8x8xf32>
    "tpu.trace_stop"() : () -> ()
    %cst_24 = arith.constant 0.353553385 : f32
    %29 = vector.broadcast %cst_24 : f32 to vector<2x8x8xf32>
    %30 = arith.mulf %28, %29 : vector<2x8x8xf32>
    %cst_25 = arith.constant dense<0xFF800000> : vector<2x8xf32>
    %31 = vector.multi_reduction <maximumf>, %30, %cst_25 [2] : vector<2x8x8xf32> to vector<2x8xf32>
    %32 = vector.shape_cast %31 : vector<2x8xf32> to vector<2x8x1xf32>
    %33 = vector.broadcast %32 : vector<2x8x1xf32> to vector<2x8x8xf32>
    %34 = arith.subf %30, %33 : vector<2x8x8xf32>
    %35 = math.exp %34 : vector<2x8x8xf32>
    %cst_26 = arith.constant dense<0.000000e+00> : vector<2x8xf32>
    %36 = vector.multi_reduction <add>, %35, %cst_26 [2] : vector<2x8x8xf32> to vector<2x8xf32>
    %37 = vector.shape_cast %36 : vector<2x8xf32> to vector<2x8x1xf32>
    %38 = tpu.reciprocal %37 {approx = true} : vector<2x8x1xf32> -> vector<2x8x1xf32>
    %39 = vector.broadcast %38 : vector<2x8x1xf32> to vector<2x8x8xf32>
    %40 = arith.mulf %35, %39 : vector<2x8x8xf32>
    "tpu.trace_start"() <{level = 10 : i32, message = "bls,bsd->bld"}> : () -> ()
    %cst_27 = arith.constant dense<0.000000e+00> : vector<2x8x128xf32>
    %41 = tpu.matmul %40, %27, %cst_27 {dimension_numbers = #tpu.dot_dimension_numbers<[2], [1], [1], [2], [0, 0, 0, 1, 1, 2], [0], [0]>} : vector<2x8x8xf32>, vector<2x8x128xf32>, vector<2x8x128xf32> -> vector<2x8x128xf32>
    "tpu.trace_stop"() : () -> ()
    %42 = vector.shape_cast %41 : vector<2x8x128xf32> to vector<16x128xf32>
    %c0_28 = arith.constant 0 : index
    %c0_29 = arith.constant 0 : index
    %c0_30 = arith.constant 0 : index
    %43 = vector.load %arg9[%c0_28, %c0_29, %c0_30] : memref<4x128x128xf32, #tpu.memory_space<vmem>>, vector<1x128x128xf32>
    %44 = vector.shape_cast %43 : vector<1x128x128xf32> to vector<128x128xf32>
    %cst_31 = arith.constant dense<0.000000e+00> : vector<16x128xf32>
    %45 = tpu.matmul %42, %44, %cst_31 {dimension_numbers = #tpu.dot_dimension_numbers<[1], [0], [0], [1], [0, 0, 1, 1], [], []>} : vector<16x128xf32>, vector<128x128xf32>, vector<16x128xf32> -> vector<16x128xf32>
    %c1 = arith.constant 1 : index
    %c0_32 = arith.constant 0 : index
    %c0_33 = arith.constant 0 : index
    %46 = vector.load %arg3[%c1, %c0_32, %c0_33] : memref<4x128x128xf32, #tpu.memory_space<vmem>>, vector<1x128x128xf32>
    %47 = vector.shape_cast %46 : vector<1x128x128xf32> to vector<128x128xf32>
    %cst_34 = arith.constant dense<0.000000e+00> : vector<16x128xf32>
    %48 = tpu.matmul %2, %47, %cst_34 {dimension_numbers = #tpu.dot_dimension_numbers<[1], [0], [0], [1], [0, 0, 1, 1], [], []>} : vector<16x128xf32>, vector<128x128xf32>, vector<16x128xf32> -> vector<16x128xf32>
    %c1_35 = arith.constant 1 : index
    %c0_36 = arith.constant 0 : index
    %c0_37 = arith.constant 0 : index
    %49 = vector.load %arg4[%c1_35, %c0_36, %c0_37] : memref<4x1x128xf32, #tpu.memory_space<vmem>>, vector<1x1x128xf32>
    %50 = vector.shape_cast %49 : vector<1x1x128xf32> to vector<1x128xf32>
    %51 = vector.broadcast %50 : vector<1x128xf32> to vector<16x128xf32>
    %52 = arith.addf %48, %51 : vector<16x128xf32>
    %53 = vector.shape_cast %52 : vector<16x128xf32> to vector<2x8x128xf32>
    %c1_38 = arith.constant 1 : index
    %c0_39 = arith.constant 0 : index
    %c0_40 = arith.constant 0 : index
    %54 = vector.load %arg5[%c1_38, %c0_39, %c0_40] : memref<4x128x128xf32, #tpu.memory_space<vmem>>, vector<1x128x128xf32>
    %55 = vector.shape_cast %54 : vector<1x128x128xf32> to vector<128x128xf32>
    %cst_41 = arith.constant dense<0.000000e+00> : vector<16x128xf32>
    %56 = tpu.matmul %3, %55, %cst_41 {dimension_numbers = #tpu.dot_dimension_numbers<[1], [0], [0], [1], [0, 0, 1, 1], [], []>} : vector<16x128xf32>, vector<128x128xf32>, vector<16x128xf32> -> vector<16x128xf32>
    %c1_42 = arith.constant 1 : index
    %c0_43 = arith.constant 0 : index
    %c0_44 = arith.constant 0 : index
    %57 = vector.load %arg6[%c1_42, %c0_43, %c0_44] : memref<4x1x128xf32, #tpu.memory_space<vmem>>, vector<1x1x128xf32>
    %58 = vector.shape_cast %57 : vector<1x1x128xf32> to vector<1x128xf32>
    %59 = vector.broadcast %58 : vector<1x128xf32> to vector<16x128xf32>
    %60 = arith.addf %56, %59 : vector<16x128xf32>
    %61 = vector.shape_cast %60 : vector<16x128xf32> to vector<2x8x128xf32>
    %c1_45 = arith.constant 1 : index
    %c0_46 = arith.constant 0 : index
    %c0_47 = arith.constant 0 : index
    %62 = vector.load %arg7[%c1_45, %c0_46, %c0_47] : memref<4x128x128xf32, #tpu.memory_space<vmem>>, vector<1x128x128xf32>
    %63 = vector.shape_cast %62 : vector<1x128x128xf32> to vector<128x128xf32>
    %cst_48 = arith.constant dense<0.000000e+00> : vector<16x128xf32>
    %64 = tpu.matmul %3, %63, %cst_48 {dimension_numbers = #tpu.dot_dimension_numbers<[1], [0], [0], [1], [0, 0, 1, 1], [], []>} : vector<16x128xf32>, vector<128x128xf32>, vector<16x128xf32> -> vector<16x128xf32>
    %c1_49 = arith.constant 1 : index
    %c0_50 = arith.constant 0 : index
    %c0_51 = arith.constant 0 : index
    %65 = vector.load %arg8[%c1_49, %c0_50, %c0_51] : memref<4x1x128xf32, #tpu.memory_space<vmem>>, vector<1x1x128xf32>
    %66 = vector.shape_cast %65 : vector<1x1x128xf32> to vector<1x128xf32>
    %67 = vector.broadcast %66 : vector<1x128xf32> to vector<16x128xf32>
    %68 = arith.addf %64, %67 : vector<16x128xf32>
    %69 = vector.shape_cast %68 : vector<16x128xf32> to vector<2x8x128xf32>
    "tpu.trace_start"() <{level = 10 : i32, message = "bld,bsd->bls"}> : () -> ()
    %cst_52 = arith.constant dense<0.000000e+00> : vector<2x8x8xf32>
    %70 = tpu.matmul %53, %61, %cst_52 {dimension_numbers = #tpu.dot_dimension_numbers<[2], [2], [1], [1], [0, 0, 0, 1, 1, 1], [0], [0]>} : vector<2x8x128xf32>, vector<2x8x128xf32>, vector<2x8x8xf32> -> vector<2x8x8xf32>
    "tpu.trace_stop"() : () -> ()
    %cst_53 = arith.constant 0.353553385 : f32
    %71 = vector.broadcast %cst_53 : f32 to vector<2x8x8xf32>
    %72 = arith.mulf %70, %71 : vector<2x8x8xf32>
    %cst_54 = arith.constant dense<0xFF800000> : vector<2x8xf32>
    %73 = vector.multi_reduction <maximumf>, %72, %cst_54 [2] : vector<2x8x8xf32> to vector<2x8xf32>
    %74 = vector.shape_cast %73 : vector<2x8xf32> to vector<2x8x1xf32>
    %75 = vector.broadcast %74 : vector<2x8x1xf32> to vector<2x8x8xf32>
    %76 = arith.subf %72, %75 : vector<2x8x8xf32>
    %77 = math.exp %76 : vector<2x8x8xf32>
    %cst_55 = arith.constant dense<0.000000e+00> : vector<2x8xf32>
    %78 = vector.multi_reduction <add>, %77, %cst_55 [2] : vector<2x8x8xf32> to vector<2x8xf32>
    %79 = vector.shape_cast %78 : vector<2x8xf32> to vector<2x8x1xf32>
    %80 = tpu.reciprocal %79 {approx = true} : vector<2x8x1xf32> -> vector<2x8x1xf32>
    %81 = vector.broadcast %80 : vector<2x8x1xf32> to vector<2x8x8xf32>
    %82 = arith.mulf %77, %81 : vector<2x8x8xf32>
    "tpu.trace_start"() <{level = 10 : i32, message = "bls,bsd->bld"}> : () -> ()
    %cst_56 = arith.constant dense<0.000000e+00> : vector<2x8x128xf32>
    %83 = tpu.matmul %82, %69, %cst_56 {dimension_numbers = #tpu.dot_dimension_numbers<[2], [1], [1], [2], [0, 0, 0, 1, 1, 2], [0], [0]>} : vector<2x8x8xf32>, vector<2x8x128xf32>, vector<2x8x128xf32> -> vector<2x8x128xf32>
    "tpu.trace_stop"() : () -> ()
    %84 = vector.shape_cast %83 : vector<2x8x128xf32> to vector<16x128xf32>
    %c1_57 = arith.constant 1 : index
    %c0_58 = arith.constant 0 : index
    %c0_59 = arith.constant 0 : index
    %85 = vector.load %arg9[%c1_57, %c0_58, %c0_59] : memref<4x128x128xf32, #tpu.memory_space<vmem>>, vector<1x128x128xf32>
    %86 = vector.shape_cast %85 : vector<1x128x128xf32> to vector<128x128xf32>
    %cst_60 = arith.constant dense<0.000000e+00> : vector<16x128xf32>
    %87 = tpu.matmul %84, %86, %cst_60 {dimension_numbers = #tpu.dot_dimension_numbers<[1], [0], [0], [1], [0, 0, 1, 1], [], []>} : vector<16x128xf32>, vector<128x128xf32>, vector<16x128xf32> -> vector<16x128xf32>
    %88 = arith.addf %45, %87 : vector<16x128xf32>
    %c2 = arith.constant 2 : index
    %c0_61 = arith.constant 0 : index
    %c0_62 = arith.constant 0 : index
    %89 = vector.load %arg3[%c2, %c0_61, %c0_62] : memref<4x128x128xf32, #tpu.memory_space<vmem>>, vector<1x128x128xf32>
    %90 = vector.shape_cast %89 : vector<1x128x128xf32> to vector<128x128xf32>
    %cst_63 = arith.constant dense<0.000000e+00> : vector<16x128xf32>
    %91 = tpu.matmul %2, %90, %cst_63 {dimension_numbers = #tpu.dot_dimension_numbers<[1], [0], [0], [1], [0, 0, 1, 1], [], []>} : vector<16x128xf32>, vector<128x128xf32>, vector<16x128xf32> -> vector<16x128xf32>
    %c2_64 = arith.constant 2 : index
    %c0_65 = arith.constant 0 : index
    %c0_66 = arith.constant 0 : index
    %92 = vector.load %arg4[%c2_64, %c0_65, %c0_66] : memref<4x1x128xf32, #tpu.memory_space<vmem>>, vector<1x1x128xf32>
    %93 = vector.shape_cast %92 : vector<1x1x128xf32> to vector<1x128xf32>
    %94 = vector.broadcast %93 : vector<1x128xf32> to vector<16x128xf32>
    %95 = arith.addf %91, %94 : vector<16x128xf32>
    %96 = vector.shape_cast %95 : vector<16x128xf32> to vector<2x8x128xf32>
    %c2_67 = arith.constant 2 : index
    %c0_68 = arith.constant 0 : index
    %c0_69 = arith.constant 0 : index
    %97 = vector.load %arg5[%c2_67, %c0_68, %c0_69] : memref<4x128x128xf32, #tpu.memory_space<vmem>>, vector<1x128x128xf32>
    %98 = vector.shape_cast %97 : vector<1x128x128xf32> to vector<128x128xf32>
    %cst_70 = arith.constant dense<0.000000e+00> : vector<16x128xf32>
    %99 = tpu.matmul %3, %98, %cst_70 {dimension_numbers = #tpu.dot_dimension_numbers<[1], [0], [0], [1], [0, 0, 1, 1], [], []>} : vector<16x128xf32>, vector<128x128xf32>, vector<16x128xf32> -> vector<16x128xf32>
    %c2_71 = arith.constant 2 : index
    %c0_72 = arith.constant 0 : index
    %c0_73 = arith.constant 0 : index
    %100 = vector.load %arg6[%c2_71, %c0_72, %c0_73] : memref<4x1x128xf32, #tpu.memory_space<vmem>>, vector<1x1x128xf32>
    %101 = vector.shape_cast %100 : vector<1x1x128xf32> to vector<1x128xf32>
    %102 = vector.broadcast %101 : vector<1x128xf32> to vector<16x128xf32>
    %103 = arith.addf %99, %102 : vector<16x128xf32>
    %104 = vector.shape_cast %103 : vector<16x128xf32> to vector<2x8x128xf32>
    %c2_74 = arith.constant 2 : index
    %c0_75 = arith.constant 0 : index
    %c0_76 = arith.constant 0 : index
    %105 = vector.load %arg7[%c2_74, %c0_75, %c0_76] : memref<4x128x128xf32, #tpu.memory_space<vmem>>, vector<1x128x128xf32>
    %106 = vector.shape_cast %105 : vector<1x128x128xf32> to vector<128x128xf32>
    %cst_77 = arith.constant dense<0.000000e+00> : vector<16x128xf32>
    %107 = tpu.matmul %3, %106, %cst_77 {dimension_numbers = #tpu.dot_dimension_numbers<[1], [0], [0], [1], [0, 0, 1, 1], [], []>} : vector<16x128xf32>, vector<128x128xf32>, vector<16x128xf32> -> vector<16x128xf32>
    %c2_78 = arith.constant 2 : index
    %c0_79 = arith.constant 0 : index
    %c0_80 = arith.constant 0 : index
    %108 = vector.load %arg8[%c2_78, %c0_79, %c0_80] : memref<4x1x128xf32, #tpu.memory_space<vmem>>, vector<1x1x128xf32>
    %109 = vector.shape_cast %108 : vector<1x1x128xf32> to vector<1x128xf32>
    %110 = vector.broadcast %109 : vector<1x128xf32> to vector<16x128xf32>
    %111 = arith.addf %107, %110 : vector<16x128xf32>
    %112 = vector.shape_cast %111 : vector<16x128xf32> to vector<2x8x128xf32>
    "tpu.trace_start"() <{level = 10 : i32, message = "bld,bsd->bls"}> : () -> ()
    %cst_81 = arith.constant dense<0.000000e+00> : vector<2x8x8xf32>
    %113 = tpu.matmul %96, %104, %cst_81 {dimension_numbers = #tpu.dot_dimension_numbers<[2], [2], [1], [1], [0, 0, 0, 1, 1, 1], [0], [0]>} : vector<2x8x128xf32>, vector<2x8x128xf32>, vector<2x8x8xf32> -> vector<2x8x8xf32>
    "tpu.trace_stop"() : () -> ()
    %cst_82 = arith.constant 0.353553385 : f32
    %114 = vector.broadcast %cst_82 : f32 to vector<2x8x8xf32>
    %115 = arith.mulf %113, %114 : vector<2x8x8xf32>
    %cst_83 = arith.constant dense<0xFF800000> : vector<2x8xf32>
    %116 = vector.multi_reduction <maximumf>, %115, %cst_83 [2] : vector<2x8x8xf32> to vector<2x8xf32>
    %117 = vector.shape_cast %116 : vector<2x8xf32> to vector<2x8x1xf32>
    %118 = vector.broadcast %117 : vector<2x8x1xf32> to vector<2x8x8xf32>
    %119 = arith.subf %115, %118 : vector<2x8x8xf32>
    %120 = math.exp %119 : vector<2x8x8xf32>
    %cst_84 = arith.constant dense<0.000000e+00> : vector<2x8xf32>
    %121 = vector.multi_reduction <add>, %120, %cst_84 [2] : vector<2x8x8xf32> to vector<2x8xf32>
    %122 = vector.shape_cast %121 : vector<2x8xf32> to vector<2x8x1xf32>
    %123 = tpu.reciprocal %122 {approx = true} : vector<2x8x1xf32> -> vector<2x8x1xf32>
    %124 = vector.broadcast %123 : vector<2x8x1xf32> to vector<2x8x8xf32>
    %125 = arith.mulf %120, %124 : vector<2x8x8xf32>
    "tpu.trace_start"() <{level = 10 : i32, message = "bls,bsd->bld"}> : () -> ()
    %cst_85 = arith.constant dense<0.000000e+00> : vector<2x8x128xf32>
    %126 = tpu.matmul %125, %112, %cst_85 {dimension_numbers = #tpu.dot_dimension_numbers<[2], [1], [1], [2], [0, 0, 0, 1, 1, 2], [0], [0]>} : vector<2x8x8xf32>, vector<2x8x128xf32>, vector<2x8x128xf32> -> vector<2x8x128xf32>
    "tpu.trace_stop"() : () -> ()
    %127 = vector.shape_cast %126 : vector<2x8x128xf32> to vector<16x128xf32>
    %c2_86 = arith.constant 2 : index
    %c0_87 = arith.constant 0 : index
    %c0_88 = arith.constant 0 : index
    %128 = vector.load %arg9[%c2_86, %c0_87, %c0_88] : memref<4x128x128xf32, #tpu.memory_space<vmem>>, vector<1x128x128xf32>
    %129 = vector.shape_cast %128 : vector<1x128x128xf32> to vector<128x128xf32>
    %cst_89 = arith.constant dense<0.000000e+00> : vector<16x128xf32>
    %130 = tpu.matmul %127, %129, %cst_89 {dimension_numbers = #tpu.dot_dimension_numbers<[1], [0], [0], [1], [0, 0, 1, 1], [], []>} : vector<16x128xf32>, vector<128x128xf32>, vector<16x128xf32> -> vector<16x128xf32>
    %131 = arith.addf %88, %130 : vector<16x128xf32>
    %c3 = arith.constant 3 : index
    %c0_90 = arith.constant 0 : index
    %c0_91 = arith.constant 0 : index
    %132 = vector.load %arg3[%c3, %c0_90, %c0_91] : memref<4x128x128xf32, #tpu.memory_space<vmem>>, vector<1x128x128xf32>
    %133 = vector.shape_cast %132 : vector<1x128x128xf32> to vector<128x128xf32>
    %cst_92 = arith.constant dense<0.000000e+00> : vector<16x128xf32>
    %134 = tpu.matmul %2, %133, %cst_92 {dimension_numbers = #tpu.dot_dimension_numbers<[1], [0], [0], [1], [0, 0, 1, 1], [], []>} : vector<16x128xf32>, vector<128x128xf32>, vector<16x128xf32> -> vector<16x128xf32>
    %c3_93 = arith.constant 3 : index
    %c0_94 = arith.constant 0 : index
    %c0_95 = arith.constant 0 : index
    %135 = vector.load %arg4[%c3_93, %c0_94, %c0_95] : memref<4x1x128xf32, #tpu.memory_space<vmem>>, vector<1x1x128xf32>
    %136 = vector.shape_cast %135 : vector<1x1x128xf32> to vector<1x128xf32>
    %137 = vector.broadcast %136 : vector<1x128xf32> to vector<16x128xf32>
    %138 = arith.addf %134, %137 : vector<16x128xf32>
    %139 = vector.shape_cast %138 : vector<16x128xf32> to vector<2x8x128xf32>
    %c3_96 = arith.constant 3 : index
    %c0_97 = arith.constant 0 : index
    %c0_98 = arith.constant 0 : index
    %140 = vector.load %arg5[%c3_96, %c0_97, %c0_98] : memref<4x128x128xf32, #tpu.memory_space<vmem>>, vector<1x128x128xf32>
    %141 = vector.shape_cast %140 : vector<1x128x128xf32> to vector<128x128xf32>
    %cst_99 = arith.constant dense<0.000000e+00> : vector<16x128xf32>
    %142 = tpu.matmul %3, %141, %cst_99 {dimension_numbers = #tpu.dot_dimension_numbers<[1], [0], [0], [1], [0, 0, 1, 1], [], []>} : vector<16x128xf32>, vector<128x128xf32>, vector<16x128xf32> -> vector<16x128xf32>
    %c3_100 = arith.constant 3 : index
    %c0_101 = arith.constant 0 : index
    %c0_102 = arith.constant 0 : index
    %143 = vector.load %arg6[%c3_100, %c0_101, %c0_102] : memref<4x1x128xf32, #tpu.memory_space<vmem>>, vector<1x1x128xf32>
    %144 = vector.shape_cast %143 : vector<1x1x128xf32> to vector<1x128xf32>
    %145 = vector.broadcast %144 : vector<1x128xf32> to vector<16x128xf32>
    %146 = arith.addf %142, %145 : vector<16x128xf32>
    %147 = vector.shape_cast %146 : vector<16x128xf32> to vector<2x8x128xf32>
    %c3_103 = arith.constant 3 : index
    %c0_104 = arith.constant 0 : index
    %c0_105 = arith.constant 0 : index
    %148 = vector.load %arg7[%c3_103, %c0_104, %c0_105] : memref<4x128x128xf32, #tpu.memory_space<vmem>>, vector<1x128x128xf32>
    %149 = vector.shape_cast %148 : vector<1x128x128xf32> to vector<128x128xf32>
    %cst_106 = arith.constant dense<0.000000e+00> : vector<16x128xf32>
    %150 = tpu.matmul %3, %149, %cst_106 {dimension_numbers = #tpu.dot_dimension_numbers<[1], [0], [0], [1], [0, 0, 1, 1], [], []>} : vector<16x128xf32>, vector<128x128xf32>, vector<16x128xf32> -> vector<16x128xf32>
    %c3_107 = arith.constant 3 : index
    %c0_108 = arith.constant 0 : index
    %c0_109 = arith.constant 0 : index
    %151 = vector.load %arg8[%c3_107, %c0_108, %c0_109] : memref<4x1x128xf32, #tpu.memory_space<vmem>>, vector<1x1x128xf32>
    %152 = vector.shape_cast %151 : vector<1x1x128xf32> to vector<1x128xf32>
    %153 = vector.broadcast %152 : vector<1x128xf32> to vector<16x128xf32>
    %154 = arith.addf %150, %153 : vector<16x128xf32>
    %155 = vector.shape_cast %154 : vector<16x128xf32> to vector<2x8x128xf32>
    "tpu.trace_start"() <{level = 10 : i32, message = "bld,bsd->bls"}> : () -> ()
    %cst_110 = arith.constant dense<0.000000e+00> : vector<2x8x8xf32>
    %156 = tpu.matmul %139, %147, %cst_110 {dimension_numbers = #tpu.dot_dimension_numbers<[2], [2], [1], [1], [0, 0, 0, 1, 1, 1], [0], [0]>} : vector<2x8x128xf32>, vector<2x8x128xf32>, vector<2x8x8xf32> -> vector<2x8x8xf32>
    "tpu.trace_stop"() : () -> ()
    %cst_111 = arith.constant 0.353553385 : f32
    %157 = vector.broadcast %cst_111 : f32 to vector<2x8x8xf32>
    %158 = arith.mulf %156, %157 : vector<2x8x8xf32>
    %cst_112 = arith.constant dense<0xFF800000> : vector<2x8xf32>
    %159 = vector.multi_reduction <maximumf>, %158, %cst_112 [2] : vector<2x8x8xf32> to vector<2x8xf32>
    %160 = vector.shape_cast %159 : vector<2x8xf32> to vector<2x8x1xf32>
    %161 = vector.broadcast %160 : vector<2x8x1xf32> to vector<2x8x8xf32>
    %162 = arith.subf %158, %161 : vector<2x8x8xf32>
    %163 = math.exp %162 : vector<2x8x8xf32>
    %cst_113 = arith.constant dense<0.000000e+00> : vector<2x8xf32>
    %164 = vector.multi_reduction <add>, %163, %cst_113 [2] : vector<2x8x8xf32> to vector<2x8xf32>
    %165 = vector.shape_cast %164 : vector<2x8xf32> to vector<2x8x1xf32>
    %166 = tpu.reciprocal %165 {approx = true} : vector<2x8x1xf32> -> vector<2x8x1xf32>
    %167 = vector.broadcast %166 : vector<2x8x1xf32> to vector<2x8x8xf32>
    %168 = arith.mulf %163, %167 : vector<2x8x8xf32>
    "tpu.trace_start"() <{level = 10 : i32, message = "bls,bsd->bld"}> : () -> ()
    %cst_114 = arith.constant dense<0.000000e+00> : vector<2x8x128xf32>
    %169 = tpu.matmul %168, %155, %cst_114 {dimension_numbers = #tpu.dot_dimension_numbers<[2], [1], [1], [2], [0, 0, 0, 1, 1, 2], [0], [0]>} : vector<2x8x8xf32>, vector<2x8x128xf32>, vector<2x8x128xf32> -> vector<2x8x128xf32>
    "tpu.trace_stop"() : () -> ()
    %170 = vector.shape_cast %169 : vector<2x8x128xf32> to vector<16x128xf32>
    %c3_115 = arith.constant 3 : index
    %c0_116 = arith.constant 0 : index
    %c0_117 = arith.constant 0 : index
    %171 = vector.load %arg9[%c3_115, %c0_116, %c0_117] : memref<4x128x128xf32, #tpu.memory_space<vmem>>, vector<1x128x128xf32>
    %172 = vector.shape_cast %171 : vector<1x128x128xf32> to vector<128x128xf32>
    %cst_118 = arith.constant dense<0.000000e+00> : vector<16x128xf32>
    %173 = tpu.matmul %170, %172, %cst_118 {dimension_numbers = #tpu.dot_dimension_numbers<[1], [0], [0], [1], [0, 0, 1, 1], [], []>} : vector<16x128xf32>, vector<128x128xf32>, vector<16x128xf32> -> vector<16x128xf32>
    %174 = arith.addf %131, %173 : vector<16x128xf32>
    %c0_119 = arith.constant 0 : index
    %c0_120 = arith.constant 0 : index
    %175 = vector.load %arg10[%c0_119, %c0_120] : memref<1x128xf32, #tpu.memory_space<vmem>>, vector<1x128xf32>
    %176 = vector.broadcast %175 : vector<1x128xf32> to vector<16x128xf32>
    %177 = arith.addf %174, %176 : vector<16x128xf32>
    %178 = vector.shape_cast %1 : vector<2x8x128xf32> to vector<16x128xf32>
    %179 = tpu.iota {dimensions = array<i32: 1>} : vector<1x128xi32>
    %c32_i32 = arith.constant 32 : i32
    %180 = vector.broadcast %c32_i32 : i32 to vector<1x128xi32>
    %181 = arith.cmpi slt, %179, %180 : vector<1x128xi32>
    %182 = arith.extui %181 : vector<1x128xi1> to vector<1x128xi32>
    %183 = arith.sitofp %182 : vector<1x128xi32> to vector<1x128xf32>
    %184 = arith.addf %178, %177 : vector<16x128xf32>
    %cst_121 = arith.constant dense<0.000000e+00> : vector<16xf32>
    %185 = vector.multi_reduction <add>, %184, %cst_121 [1] : vector<16x128xf32> to vector<16xf32>
    %186 = vector.shape_cast %185 : vector<16xf32> to vector<16x1xf32>
    %cst_122 = arith.constant 3.125000e-02 : f32
    %187 = vector.broadcast %cst_122 : f32 to vector<16x1xf32>
    %188 = arith.mulf %186, %187 : vector<16x1xf32>
    %189 = vector.broadcast %188 : vector<16x1xf32> to vector<16x128xf32>
    %190 = arith.subf %184, %189 : vector<16x128xf32>
    %191 = vector.broadcast %183 : vector<1x128xf32> to vector<16x128xf32>
    %192 = arith.mulf %190, %191 : vector<16x128xf32>
    %193 = arith.mulf %192, %192 : vector<16x128xf32>
    %cst_123 = arith.constant dense<0.000000e+00> : vector<16xf32>
    %194 = vector.multi_reduction <add>, %193, %cst_123 [1] : vector<16x128xf32> to vector<16xf32>
    %195 = vector.shape_cast %194 : vector<16xf32> to vector<16x1xf32>
    %cst_124 = arith.constant 3.125000e-02 : f32
    %196 = vector.broadcast %cst_124 : f32 to vector<16x1xf32>
    %197 = arith.mulf %195, %196 : vector<16x1xf32>
    %198 = vector.broadcast %188 : vector<16x1xf32> to vector<16x128xf32>
    %199 = arith.subf %184, %198 : vector<16x128xf32>
    %cst_125 = arith.constant 9.99999974E-6 : f32
    %200 = vector.broadcast %cst_125 : f32 to vector<16x1xf32>
    %201 = arith.addf %197, %200 : vector<16x1xf32>
    %202 = math.rsqrt %201 : vector<16x1xf32>
    %203 = vector.broadcast %202 : vector<16x1xf32> to vector<16x128xf32>
    %204 = arith.mulf %199, %203 : vector<16x128xf32>
    %c0_126 = arith.constant 0 : index
    %c0_127 = arith.constant 0 : index
    %205 = vector.load %arg11[%c0_126, %c0_127] : memref<1x128xf32, #tpu.memory_space<vmem>>, vector<1x128xf32>
    %206 = vector.broadcast %205 : vector<1x128xf32> to vector<16x128xf32>
    %207 = arith.mulf %204, %206 : vector<16x128xf32>
    %c0_128 = arith.constant 0 : index
    %c0_129 = arith.constant 0 : index
    %208 = vector.load %arg12[%c0_128, %c0_129] : memref<1x128xf32, #tpu.memory_space<vmem>>, vector<1x128xf32>
    %209 = vector.broadcast %208 : vector<1x128xf32> to vector<16x128xf32>
    %210 = arith.addf %207, %209 : vector<16x128xf32>
    %c0_130 = arith.constant 0 : index
    %c0_131 = arith.constant 0 : index
    %211 = vector.load %arg13[%c0_130, %c0_131] : memref<128x128xf32, #tpu.memory_space<vmem>>, vector<128x128xf32>
    %cst_132 = arith.constant dense<0.000000e+00> : vector<16x128xf32>
    %212 = tpu.matmul %210, %211, %cst_132 {dimension_numbers = #tpu.dot_dimension_numbers<[1], [0], [0], [1], [0, 0, 1, 1], [], []>} : vector<16x128xf32>, vector<128x128xf32>, vector<16x128xf32> -> vector<16x128xf32>
    %c0_133 = arith.constant 0 : index
    %c0_134 = arith.constant 0 : index
    %213 = vector.load %arg14[%c0_133, %c0_134] : memref<1x128xf32, #tpu.memory_space<vmem>>, vector<1x128xf32>
    %214 = vector.broadcast %213 : vector<1x128xf32> to vector<16x128xf32>
    %215 = arith.addf %212, %214 : vector<16x128xf32>
    %cst_135 = arith.constant 5.000000e-01 : f32
    %216 = vector.broadcast %cst_135 : f32 to vector<16x128xf32>
    %217 = arith.mulf %216, %215 : vector<16x128xf32>
    %cst_136 = arith.constant 0.707106769 : f32
    %218 = vector.broadcast %cst_136 : f32 to vector<16x128xf32>
    %219 = arith.mulf %215, %218 : vector<16x128xf32>
    %220 = math.absf %219 : vector<16x128xf32>
    %cst_137 = arith.constant 0.327591091 : f32
    %221 = vector.broadcast %cst_137 : f32 to vector<16x128xf32>
    %222 = arith.mulf %221, %220 : vector<16x128xf32>
    %cst_138 = arith.constant 1.000000e+00 : f32
    %223 = vector.broadcast %cst_138 : f32 to vector<16x128xf32>
    %224 = arith.addf %223, %222 : vector<16x128xf32>
    %cst_139 = arith.constant 1.000000e+00 : f32
    %225 = vector.broadcast %cst_139 : f32 to vector<16x128xf32>
    %226 = arith.divf %225, %224 : vector<16x128xf32>
    %cst_140 = arith.constant 1.06140542 : f32
    %227 = vector.broadcast %cst_140 : f32 to vector<16x128xf32>
    %228 = arith.mulf %227, %226 : vector<16x128xf32>
    %cst_141 = arith.constant -1.45315206 : f32
    %229 = vector.broadcast %cst_141 : f32 to vector<16x128xf32>
    %230 = arith.addf %228, %229 : vector<16x128xf32>
    %231 = arith.mulf %230, %226 : vector<16x128xf32>
    %cst_142 = arith.constant 1.42141378 : f32
    %232 = vector.broadcast %cst_142 : f32 to vector<16x128xf32>
    %233 = arith.addf %231, %232 : vector<16x128xf32>
    %234 = arith.mulf %233, %226 : vector<16x128xf32>
    %cst_143 = arith.constant -0.284496725 : f32
    %235 = vector.broadcast %cst_143 : f32 to vector<16x128xf32>
    %236 = arith.addf %234, %235 : vector<16x128xf32>
    %237 = arith.mulf %236, %226 : vector<16x128xf32>
    %cst_144 = arith.constant 0.254829586 : f32
    %238 = vector.broadcast %cst_144 : f32 to vector<16x128xf32>
    %239 = arith.addf %237, %238 : vector<16x128xf32>
    %240 = arith.mulf %239, %226 : vector<16x128xf32>
    %cst_145 = arith.constant 0.000000e+00 : f32
    %241 = vector.broadcast %cst_145 : f32 to vector<16x128xf32>
    %242 = arith.subf %241, %220 : vector<16x128xf32>
    %243 = arith.mulf %242, %220 : vector<16x128xf32>
    %244 = math.exp %243 : vector<16x128xf32>
    %245 = arith.mulf %240, %244 : vector<16x128xf32>
    %cst_146 = arith.constant 1.000000e+00 : f32
    %246 = vector.broadcast %cst_146 : f32 to vector<16x128xf32>
    %247 = arith.subf %246, %245 : vector<16x128xf32>
    %cst_147 = arith.constant 0.000000e+00 : f32
    %248 = vector.broadcast %cst_147 : f32 to vector<16x128xf32>
    %249 = arith.cmpf oge, %219, %248 : vector<16x128xf32>
    %cst_148 = arith.constant 0.000000e+00 : f32
    %250 = vector.broadcast %cst_148 : f32 to vector<16x128xf32>
    %251 = arith.subf %250, %247 : vector<16x128xf32>
    %252 = arith.select %249, %247, %251 : vector<16x128xi1>, vector<16x128xf32>
    %cst_149 = arith.constant 1.000000e+00 : f32
    %253 = vector.broadcast %cst_149 : f32 to vector<16x128xf32>
    %254 = arith.addf %253, %252 : vector<16x128xf32>
    %255 = arith.mulf %217, %254 : vector<16x128xf32>
    %c0_150 = arith.constant 0 : index
    %c0_151 = arith.constant 0 : index
    %256 = vector.load %arg15[%c0_150, %c0_151] : memref<128x128xf32, #tpu.memory_space<vmem>>, vector<128x128xf32>
    %cst_152 = arith.constant dense<0.000000e+00> : vector<16x128xf32>
    %257 = tpu.matmul %255, %256, %cst_152 {dimension_numbers = #tpu.dot_dimension_numbers<[1], [0], [0], [1], [0, 0, 1, 1], [], []>} : vector<16x128xf32>, vector<128x128xf32>, vector<16x128xf32> -> vector<16x128xf32>
    %c0_153 = arith.constant 0 : index
    %c0_154 = arith.constant 0 : index
    %258 = vector.load %arg16[%c0_153, %c0_154] : memref<1x128xf32, #tpu.memory_space<vmem>>, vector<1x128xf32>
    %259 = vector.broadcast %258 : vector<1x128xf32> to vector<16x128xf32>
    %260 = arith.addf %257, %259 : vector<16x128xf32>
    %261 = arith.addf %210, %260 : vector<16x128xf32>
    %cst_155 = arith.constant dense<0.000000e+00> : vector<16xf32>
    %262 = vector.multi_reduction <add>, %261, %cst_155 [1] : vector<16x128xf32> to vector<16xf32>
    %263 = vector.shape_cast %262 : vector<16xf32> to vector<16x1xf32>
    %cst_156 = arith.constant 3.125000e-02 : f32
    %264 = vector.broadcast %cst_156 : f32 to vector<16x1xf32>
    %265 = arith.mulf %263, %264 : vector<16x1xf32>
    %266 = vector.broadcast %265 : vector<16x1xf32> to vector<16x128xf32>
    %267 = arith.subf %261, %266 : vector<16x128xf32>
    %268 = vector.broadcast %183 : vector<1x128xf32> to vector<16x128xf32>
    %269 = arith.mulf %267, %268 : vector<16x128xf32>
    %270 = arith.mulf %269, %269 : vector<16x128xf32>
    %cst_157 = arith.constant dense<0.000000e+00> : vector<16xf32>
    %271 = vector.multi_reduction <add>, %270, %cst_157 [1] : vector<16x128xf32> to vector<16xf32>
    %272 = vector.shape_cast %271 : vector<16xf32> to vector<16x1xf32>
    %cst_158 = arith.constant 3.125000e-02 : f32
    %273 = vector.broadcast %cst_158 : f32 to vector<16x1xf32>
    %274 = arith.mulf %272, %273 : vector<16x1xf32>
    %275 = vector.broadcast %265 : vector<16x1xf32> to vector<16x128xf32>
    %276 = arith.subf %261, %275 : vector<16x128xf32>
    %cst_159 = arith.constant 9.99999974E-6 : f32
    %277 = vector.broadcast %cst_159 : f32 to vector<16x1xf32>
    %278 = arith.addf %274, %277 : vector<16x1xf32>
    %279 = math.rsqrt %278 : vector<16x1xf32>
    %280 = vector.broadcast %279 : vector<16x1xf32> to vector<16x128xf32>
    %281 = arith.mulf %276, %280 : vector<16x128xf32>
    %c0_160 = arith.constant 0 : index
    %c0_161 = arith.constant 0 : index
    %282 = vector.load %arg17[%c0_160, %c0_161] : memref<1x128xf32, #tpu.memory_space<vmem>>, vector<1x128xf32>
    %283 = vector.broadcast %282 : vector<1x128xf32> to vector<16x128xf32>
    %284 = arith.mulf %281, %283 : vector<16x128xf32>
    %c0_162 = arith.constant 0 : index
    %c0_163 = arith.constant 0 : index
    %285 = vector.load %arg18[%c0_162, %c0_163] : memref<1x128xf32, #tpu.memory_space<vmem>>, vector<1x128xf32>
    %286 = vector.broadcast %285 : vector<1x128xf32> to vector<16x128xf32>
    %287 = arith.addf %284, %286 : vector<16x128xf32>
    %288 = vector.shape_cast %287 : vector<16x128xf32> to vector<2x8x1x1x128xf32>
    %c0_164 = arith.constant 0 : index
    %c0_165 = arith.constant 0 : index
    %c0_166 = arith.constant 0 : index
    %c0_167 = arith.constant 0 : index
    %c0_168 = arith.constant 0 : index
    %289 = vector.load %arg19[%c0_164, %c0_165, %c0_166, %c0_167, %c0_168] : memref<2x8x1x1x128xf32, #tpu.memory_space<vmem>>, vector<2x8x1x1x128xf32>
    tpu.vector_store %arg19[%c0_164, %c0_165, %c0_166, %c0_167, %c0_168], %288 {strides = array<i32>} : memref<2x8x1x1x128xf32, #tpu.memory_space<vmem>>, vector<2x8x1x1x128xf32>,
    return
  }
  func.func @transform_0(%arg0: i32, %arg1: i32) -> (i32, i32, i32, i32) {
    %c0_i32 = arith.constant 0 : i32
    %c0_i32_0 = arith.constant 0 : i32
    %c0_i32_1 = arith.constant 0 : i32
    return %arg0, %arg1, %c0_i32, %c0_i32_0 : i32, i32, i32, i32
  }
  func.func @transform_1(%arg0: i32, %arg1: i32) -> (i32, i32, i32) {
    %c0_i32 = arith.constant 0 : i32
    %c0_i32_0 = arith.constant 0 : i32
    %c0_i32_1 = arith.constant 0 : i32
    %c0_i32_2 = arith.constant 0 : i32
    return %c0_i32, %c0_i32_0, %c0_i32_1 : i32, i32, i32
  }
  func.func @transform_2(%arg0: i32, %arg1: i32) -> (i32, i32, i32) {
    %c0_i32 = arith.constant 0 : i32
    %c0_i32_0 = arith.constant 0 : i32
    %c0_i32_1 = arith.constant 0 : i32
    %c0_i32_2 = arith.constant 0 : i32
    return %c0_i32, %c0_i32_0, %c0_i32_1 : i32, i32, i32
  }
  func.func @transform_3(%arg0: i32, %arg1: i32) -> (i32, i32, i32) {
    %c0_i32 = arith.constant 0 : i32
    %c0_i32_0 = arith.constant 0 : i32
    %c0_i32_1 = arith.constant 0 : i32
    %c0_i32_2 = arith.constant 0 : i32
    return %c0_i32, %c0_i32_0, %c0_i32_1 : i32, i32, i32
  }
  func.func @transform_4(%arg0: i32, %arg1: i32) -> (i32, i32, i32) {
    %c0_i32 = arith.constant 0 : i32
    %c0_i32_0 = arith.constant 0 : i32
    %c0_i32_1 = arith.constant 0 : i32
    %c0_i32_2 = arith.constant 0 : i32
    return %c0_i32, %c0_i32_0, %c0_i32_1 : i32, i32, i32
  }
  func.func @transform_5(%arg0: i32, %arg1: i32) -> (i32, i32, i32) {
    %c0_i32 = arith.constant 0 : i32
    %c0_i32_0 = arith.constant 0 : i32
    %c0_i32_1 = arith.constant 0 : i32
    %c0_i32_2 = arith.constant 0 : i32
    return %c0_i32, %c0_i32_0, %c0_i32_1 : i32, i32, i32
  }
  func.func @transform_6(%arg0: i32, %arg1: i32) -> (i32, i32, i32) {
    %c0_i32 = arith.constant 0 : i32
    %c0_i32_0 = arith.constant 0 : i32
    %c0_i32_1 = arith.constant 0 : i32
    %c0_i32_2 = arith.constant 0 : i32
    return %c0_i32, %c0_i32_0, %c0_i32_1 : i32, i32, i32
  }
  func.func @transform_7(%arg0: i32, %arg1: i32) -> (i32, i32, i32) {
    %c0_i32 = arith.constant 0 : i32
    %c0_i32_0 = arith.constant 0 : i32
    %c0_i32_1 = arith.constant 0 : i32
    %c0_i32_2 = arith.constant 0 : i32
    return %c0_i32, %c0_i32_0, %c0_i32_1 : i32, i32, i32
  }
  func.func @transform_8(%arg0: i32, %arg1: i32) -> (i32, i32) {
    %c0_i32 = arith.constant 0 : i32
    %c0_i32_0 = arith.constant 0 : i32
    %c0_i32_1 = arith.constant 0 : i32
    return %c0_i32, %c0_i32_0 : i32, i32
  }
  func.func @transform_9(%arg0: i32, %arg1: i32) -> (i32, i32) {
    %c0_i32 = arith.constant 0 : i32
    %c0_i32_0 = arith.constant 0 : i32
    %c0_i32_1 = arith.constant 0 : i32
    return %c0_i32, %c0_i32_0 : i32, i32
  }
  func.func @transform_10(%arg0: i32, %arg1: i32) -> (i32, i32) {
    %c0_i32 = arith.constant 0 : i32
    %c0_i32_0 = arith.constant 0 : i32
    %c0_i32_1 = arith.constant 0 : i32
    return %c0_i32, %c0_i32_0 : i32, i32
  }
  func.func @transform_11(%arg0: i32, %arg1: i32) -> (i32, i32) {
    %c0_i32 = arith.constant 0 : i32
    %c0_i32_0 = arith.constant 0 : i32
    %c0_i32_1 = arith.constant 0 : i32
    return %c0_i32, %c0_i32_0 : i32, i32
  }
  func.func @transform_12(%arg0: i32, %arg1: i32) -> (i32, i32) {
    %c0_i32 = arith.constant 0 : i32
    %c0_i32_0 = arith.constant 0 : i32
    %c0_i32_1 = arith.constant 0 : i32
    return %c0_i32, %c0_i32_0 : i32, i32
  }
  func.func @transform_13(%arg0: i32, %arg1: i32) -> (i32, i32) {
    %c0_i32 = arith.constant 0 : i32
    %c0_i32_0 = arith.constant 0 : i32
    %c0_i32_1 = arith.constant 0 : i32
    return %c0_i32, %c0_i32_0 : i32, i32
  }
  func.func @transform_14(%arg0: i32, %arg1: i32) -> (i32, i32) {
    %c0_i32 = arith.constant 0 : i32
    %c0_i32_0 = arith.constant 0 : i32
    %c0_i32_1 = arith.constant 0 : i32
    return %c0_i32, %c0_i32_0 : i32, i32
  }
  func.func @transform_15(%arg0: i32, %arg1: i32) -> (i32, i32) {
    %c0_i32 = arith.constant 0 : i32
    %c0_i32_0 = arith.constant 0 : i32
    %c0_i32_1 = arith.constant 0 : i32
    return %c0_i32, %c0_i32_0 : i32, i32
  }
  func.func @transform_16(%arg0: i32, %arg1: i32) -> (i32, i32) {
    %c0_i32 = arith.constant 0 : i32
    %c0_i32_0 = arith.constant 0 : i32
    %c0_i32_1 = arith.constant 0 : i32
    return %c0_i32, %c0_i32_0 : i32, i32
  }
  func.func @transform_17(%arg0: i32, %arg1: i32) -> (i32, i32, i32, i32, i32) {
    %c0_i32 = arith.constant 0 : i32
    %c0_i32_0 = arith.constant 0 : i32
    %c0_i32_1 = arith.constant 0 : i32
    %c0_i32_2 = arith.constant 0 : i32
    return %arg0, %c0_i32, %arg1, %c0_i32_0, %c0_i32_1 : i32, i32, i32, i32, i32
  }
}

</mosaic_0001>

<bundles_post_ra>
// kernel: tpu_custom_call.1
= control target key start
LH: loop header
LB: loop body
LE: loop exit
PB: predicated region body
PF: predicated region fallthrough
CT: control target
= control target key end

     0   :  { %s7808_s0 = inlined_call_operand.hbm [shape: f32[2,4,8,128], index: 0, kind: input, shape index: {}]   ;;  %s7809_s1 = inlined_call_operand.hbm [shape: f32[4,128,128], index: 1, kind: input, shape index: {}]   ;;  %s7810_s2 = inlined_call_operand.hbm [shape: f32[4,1,128], index: 2, kind: input, shape index: {}]   ;;  %s7811_s3 = inlined_call_operand.hbm [shape: f32[4,128,128], index: 3, kind: input, shape index: {}]   ;;  %s7812_s4 = inlined_call_operand.hbm [shape: f32[4,1,128], index: 4, kind: input, shape index: {}]   ;;  %s7813_s5 = inlined_call_operand.hbm [shape: f32[4,128,128], index: 5, kind: input, shape index: {}]   ;;  %s7814_s6 = inlined_call_operand.hbm [shape: f32[4,1,128], index: 6, kind: input, shape index: {}]   ;;  %s7815_s7 = inlined_call_operand.hbm [shape: f32[4,128,128], index: 7, kind: input, shape index: {}]   ;;  %s7816_s8 = inlined_call_operand.hbm [shape: f32[1,128], index: 8, kind: input, shape index: {}]   ;;  %s7817_s9 = inlined_call_operand.hbm [shape: f32[1,128], index: 9, kind: input, shape index: {}]   ;;  %s7818_s10 = inlined_call_operand.hbm [shape: f32[1,128], index: 10, kind: input, shape index: {}]   ;;  %s7819_s11 = inlined_call_operand.hbm [shape: f32[128,128], index: 11, kind: input, shape index: {}]   ;;  %s7820_s12 = inlined_call_operand.hbm [shape: f32[1,128], index: 12, kind: input, shape index: {}]   ;;  %s7821_s13 = inlined_call_operand.hbm [shape: f32[128,128], index: 13, kind: input, shape index: {}]   ;;  %s7822_s14 = inlined_call_operand.hbm [shape: f32[1,128], index: 14, kind: input, shape index: {}]   ;;  %s7823_s15 = inlined_call_operand.hbm [shape: f32[1,128], index: 15, kind: input, shape index: {}]   ;;  %s7824_s16 = inlined_call_operand.hbm [shape: f32[1,128], index: 16, kind: input, shape index: {}]   ;;  %s7825_s17 = inlined_call_operand.hbm [shape: f32[2,8,4,1,128], index: 17, kind: output, shape index: {}]  }
   0x1   :  { %7846 = sst [smem:[#allocation48_spill]] %s7808_s0 }
   0x2   :  { %7847 = sst [smem:[#allocation49_spill]] %s7809_s1 }
   0x3   :  { %7848 = sst [smem:[#allocation50_spill]] %s7810_s2 }
   0x4   :  { %7849 = sst [smem:[#allocation51_spill]] %s7811_s3 }
   0x5   :  { %7850 = sst [smem:[#allocation52_spill]] %s7812_s4 }
   0x6   :  { %7851 = sst [smem:[#allocation53_spill]] %s7813_s5 }
   0x7   :  { %7852 = sst [smem:[#allocation54_spill]] %s7814_s6 }
   0x8   :  { %7853 = sst [smem:[#allocation55_spill]] %s7824_s16 }
   0x9   :  { %7854 = sst [smem:[#allocation56_spill]] %s7825_s17 }
   0xa   :  { %22 = vsyncpa [#allocation3], 0 }
   0xb   :  { %24 = vsyncpa [#allocation3 + $0x1], 0 }
   0xc   :  { %25 = vsyncpa [#allocation6], 0 }
   0xd   :  { %26 = vsyncpa [#allocation9], 0 }
   0xe   :  { %27 = vsyncpa [#allocation12], 0 }
   0xf   :  { %28 = vsyncpa [#allocation15], 0 }
  0x10   :  { %29 = vsyncpa [#allocation18], 0 }
  0x11   :  { %30 = vsyncpa [#allocation21], 0 }
  0x12   :  { %31 = vsyncpa [#allocation24], 0 }
  0x13   :  { %32 = vsyncpa [#allocation27], 0 }
  0x14   :  { %33 = vsyncpa [#allocation4], 0 }
  0x15   :  { %35 = vsyncpa [#allocation4 + $0x1], 0  ;;  %s7076_s24 = smov 0   ;;  %s7078_s25 = smov 0  }
  0x16   :  { %s7080_s26 = smov 0   ;;  %s7082_s27 = smov 0  }
  0x17   :  { %s7084_s28 = smov 0   ;;  %s7086_s29 = smov 0  }
  0x18 LB: > { %7855 = sst [smem:[#allocation40_spill]] %s6935_s24  ;;  %s7828_s0 = sadd.s32 4294967295, %s6955_s29   ;;  %s6955_s29 = sphi %s7086_s29, %s7908_s29   ;;  %s6951_s28 = sphi %s7084_s28, %s7907_s28   ;;  %s6947_s27 = sphi %s7082_s27, %s7905_s27   ;;  %s6943_s26 = sphi %s7080_s26, %s7906_s26   ;;  %s6939_s25 = sphi %s7078_s25, %s7904_s25   ;;  %s6935_s24 = sphi %s7076_s24, %s7903_s24  }
  0x19   : > { %7856 = sst [smem:[#allocation41_spill]] %s6939_s25  ;;  %p4352_p0 = scmp.ge.s32.totalorder %s6955_s29, 1 }
  0x1a   : > { %7857 = sst [smem:[#allocation42_spill]] %s6943_s26  ;;  %p7110_p1 = scmp.eq.s32.totalorder %s7828_s0, 0 }
  0x1b   : > { %7858 = sst [smem:[#allocation43_spill]] %s6947_s27  ;;  %p450_p2 = scmp.lt.s32.totalorder %s6955_s29, 5 }
  0x1c   : > { %7859 = sst [smem:[#allocation44_spill]] %s6951_s28  ;;  %s6957_s19 = smov [#allocation5]  }
  0x1d   : > { %7860 = sst [smem:[#allocation45_spill]] %s6955_s29  ;;  %p7115_p3 = pnand %p4352_p0, %p450_p2 }
  0x1e   : > { %s7861_s30 = scalar_select %p7110_p1, 1, 0 }
  0x1f   : > { %s7863_s18 = scalar_select %p7115_p3, 1, 0 }
  0x20   : > { %7862 = sst [smem:[#allocation46_spill]] %s7861_s30  ;;  %s462_s1 = sshll.u32 %s6957_s19, 4  ;;  %s7119_s1 = int_to_ptr.vmem [resolvable:$true] %s462_s1 }
  0x21   : > { %7864 = sst [smem:[#allocation47_spill]] %s7863_s18  ;;  %p6147_p4 = pneg %p7115_p3 }
  0x22   : > { %s6958_s21 = smov [#allocation8]   ;;  %s6959_s23 = smov [#allocation11]  }
  0x23   : > { %p7125_p5 = pnand %p6147_p4, %p7110_p1  ;;  %s488_s22 = sshll.u32 %s6958_s21, 4  ;;  %s7129_s22 = int_to_ptr.vmem [resolvable:$true] %s488_s22 }
  0x24   : > { %s7131_s0 = sshll.u32 %s6959_s23, 4  ;;  %s7866_s19 = sld [smem:[#allocation49_spill]]  ;;  %s515_s0 = int_to_ptr.vmem [resolvable:$true] %s7131_s0 }
  0x25   : > { %p7141_p7 = pneg %p7125_p5 }
  0x2a   : > { %s6363_s24 = scalar_lea.hbm %s7866_s19, 8192 }
  0x2b   : > { %p6364_p6 = scmp.ne.s32.totalorder %s7866_s19, %s6363_s24  ;;  %p6370_p10 = scmp.lt.u32.totalorder %s6363_s24, %s7866_s19 }
  0x2d   : > { %p6366_p8 = pnand %p7141_p7, %p6364_p6 }
  0x2f   : > { %p6367_p9 = pneg %p6366_p8 }
  0x31   : > { %p6372_p11 = pnand %p6370_p10, %p6367_p9 }
  0x33   : > { %6375 = shalt.err (!%p6372_p11)
}
  0x34   : > { %s6376_s17 = scalar_lea.vmem %s7119_s1, 8192  ;;  %p6384_p2 = scmp.lt.s32.totalorder %s7119_s1, %s7119_s1 }
  0x35   : > { %p6377_p12 = scmp.ne.s32.totalorder %s7119_s1, %s6376_s17  ;;  %p6385_p4 = scmp.lt.s32.totalorder %s6376_s17, %s6376_s17 }
  0x37   : > { %p6379_p13 = pnand %p6377_p12, %p7141_p7  ;;  %p6386_p6 = por %p6385_p4, %p6384_p2 }
  0x39   : > { %p6380_p0 = pneg %p6379_p13 }
  0x3b   : > { %p6387_p8 = pnand %p6386_p6, %p6380_p0 }
  0x3d   : > { %6390 = shalt.err (!%p6387_p8)
}
  0x3e   : > { %s7843_s25 = smov 128   ;;  %s7844_s24 = smov 8  }
  0x3f   : > { %6150 = dma.hbm_to_vmem [thread:$0]  (!%p7125_p5), %s7866_s19, 8192, %s7119_s1, [#allocation6], %s7843_s25, %s7843_s25, %s7844_s24  }
  0x40   : > { %s7868_s3 = sld [smem:[#allocation51_spill]] }
  0x46   : > { %s6391_s17 = scalar_lea.hbm %s7868_s3, 8192 }
  0x47   : > { %p6392_p9 = scmp.ne.s32.totalorder %s7868_s3, %s6391_s17  ;;  %p6398_p12 = scmp.lt.u32.totalorder %s6391_s17, %s7868_s3 }
  0x49   : > { %p6394_p10 = pnand %p6392_p9, %p7141_p7 }
  0x4b   : > { %p6395_p11 = pneg %p6394_p10 }
  0x4d   : > { %p6400_p13 = pnand %p6398_p12, %p6395_p11 }
  0x4f   : > { %6403 = shalt.err (!%p6400_p13)
}
  0x50   : > { %s6404_s1 = scalar_lea.vmem %s7129_s22, 8192  ;;  %p6412_p6 = scmp.lt.s32.totalorder %s7129_s22, %s7129_s22 }
  0x51   : > { %p6405_p0 = scmp.ne.s32.totalorder %s7129_s22, %s6404_s1  ;;  %p6413_p8 = scmp.lt.s32.totalorder %s6404_s1, %s6404_s1 }
  0x53   : > { %p6407_p2 = pnand %p6405_p0, %p7141_p7  ;;  %p6414_p9 = por %p6413_p8, %p6412_p6 }
  0x55   : > { %p6408_p4 = pneg %p6407_p2 }
  0x57   : > { %p6415_p10 = pnand %p6414_p9, %p6408_p4 }
  0x59   : > { %6418 = shalt.err (!%p6415_p10)
}
  0x5a   : > { %6156 = dma.hbm_to_vmem [thread:$0]  (!%p7125_p5), %s7868_s3, 8192, %s7129_s22, [#allocation9], %s7843_s25, %s7843_s25, %s7844_s24  }
  0x5b   : > { %s7869_s5 = sld [smem:[#allocation53_spill]] }
  0x61   : > { %s6419_s27 = scalar_lea.hbm %s7869_s5, 8192 }
  0x62   : > { %p6420_p11 = scmp.ne.s32.totalorder %s7869_s5, %s6419_s27  ;;  %p6426_p0 = scmp.lt.u32.totalorder %s6419_s27, %s7869_s5 }
  0x64   : > { %p6422_p12 = pnand %p6420_p11, %p7141_p7 }
  0x66   : > { %p6423_p13 = pneg %p6422_p12 }
  0x68   : > { %p6428_p2 = pnand %p6426_p0, %p6423_p13 }
  0x6a   : > { %6431 = shalt.err (!%p6428_p2)
}
  0x6b   : > { %s6432_s1 = scalar_lea.vmem %s515_s0, 8192  ;;  %p6440_p9 = scmp.lt.s32.totalorder %s515_s0, %s515_s0 }
  0x6c   : > { %p6433_p4 = scmp.ne.s32.totalorder %s515_s0, %s6432_s1  ;;  %p6441_p10 = scmp.lt.s32.totalorder %s6432_s1, %s6432_s1 }
  0x6e   : > { %p6435_p6 = pnand %p6433_p4, %p7141_p7  ;;  %p6442_p3 = por %p6441_p10, %p6440_p9 }
  0x70   : > { %p6436_p8 = pneg %p6435_p6 }
  0x72   : > { %p6443_p1 = pnand %p6442_p3, %p6436_p8 }
  0x74   : > { %6446 = shalt.err (!%p6443_p1)
}
  0x75   : > { %6162 = dma.hbm_to_vmem [thread:$0]  (!%p7125_p5), %s7869_s5, 8192, %s515_s0, [#allocation12], %s7843_s25, %s7843_s25, %s7844_s24  }
  0x76   : > { %s6962_s26 = smov [#allocation14]   ;;  %s6963_s29 = smov [#allocation17]  }
  0x77   : > { %s540_s28 = sshll.u32 %s6962_s26, 4  ;;  %s565_s27 = sshll.u32 %s6963_s29, 4  ;;  %s541_s28 = int_to_ptr.vmem [resolvable:$true] %s540_s28  ;;  %s566_s27 = int_to_ptr.vmem [resolvable:$true] %s565_s27 }
  0x78   : > { %s6447_s23 = scalar_lea.hbm %s7815_s7, 8192 }
  0x79   : > { %p6448_p1 = scmp.ne.s32.totalorder %s7815_s7, %s6447_s23  ;;  %p6454_p12 = scmp.lt.u32.totalorder %s6447_s23, %s7815_s7 }
  0x7b   : > { %p6450_p3 = pnand %p6448_p1, %p7141_p7 }
  0x7d   : > { %p6451_p11 = pneg %p6450_p3 }
  0x7f   : > { %p6456_p13 = pnand %p6454_p12, %p6451_p11 }
  0x81   : > { %6459 = shalt.err (!%p6456_p13)
}
  0x82   : > { %s6460_s0 = scalar_lea.vmem %s541_s28, 8192  ;;  %p6468_p6 = scmp.lt.s32.totalorder %s541_s28, %s541_s28 }
  0x83   : > { %p6461_p0 = scmp.ne.s32.totalorder %s541_s28, %s6460_s0  ;;  %p6469_p8 = scmp.lt.s32.totalorder %s6460_s0, %s6460_s0 }
  0x85   : > { %p6463_p2 = pnand %p6461_p0, %p7141_p7  ;;  %p6470_p9 = por %p6469_p8, %p6468_p6 }
  0x87   : > { %p6464_p4 = pneg %p6463_p2 }
  0x89   : > { %p6471_p10 = pnand %p6470_p9, %p6464_p4 }
  0x8b   : > { %6474 = shalt.err (!%p6471_p10)
}
  0x8c   : > { %6168 = dma.hbm_to_vmem [thread:$0]  (!%p7125_p5), %s7815_s7, 8192, %s541_s28, [#allocation15], %s7843_s25, %s7843_s25, %s7844_s24  }
  0x8d   : > { %s6475_s18 = scalar_lea.hbm %s7817_s9, 16 }
  0x8e   : > { %p6476_p1 = scmp.ne.s32.totalorder %s7817_s9, %s6475_s18  ;;  %p6482_p12 = scmp.lt.u32.totalorder %s6475_s18, %s7817_s9 }
  0x90   : > { %p6478_p3 = pnand %p6476_p1, %p7141_p7 }
  0x92   : > { %p6479_p11 = pneg %p6478_p3 }
  0x94   : > { %p6484_p13 = pnand %p6482_p12, %p6479_p11 }
  0x96   : > { %6487 = shalt.err (!%p6484_p13)
}
  0x97   : > { %s6488_s22 = scalar_lea.vmem %s566_s27, 16  ;;  %s6495_s28 = scalar_lea.vmem %s566_s27, 32 }
  0x98   : > { %p6489_p0 = scmp.ne.s32.totalorder %s566_s27, %s6488_s22  ;;  %p6496_p6 = scmp.lt.s32.totalorder %s566_s27, %s566_s27 }
  0x99   : > { %p6497_p8 = scmp.lt.s32.totalorder %s6495_s28, %s6488_s22 }
  0x9a   : > { %p6491_p2 = pnand %p6489_p0, %p7141_p7 }
  0x9b   : > { %p6498_p9 = por %p6497_p8, %p6496_p6 }
  0x9c   : > { %p6492_p4 = pneg %p6491_p2 }
  0x9e   : > { %p6499_p10 = pnand %p6498_p9, %p6492_p4 }
  0xa0   : > { %6502 = shalt.err (!%p6499_p10)
}
  0xa1   : > { %6174 = dma.hbm_to_vmem [thread:$0]  (!%p7125_p5), %s7817_s9, 16, %s566_s27, [#allocation18]  }
  0xa2   : > { %s6964_s16 = smov [#allocation20]   ;;  %s6965_s29 = smov [#allocation23]  }
  0xa3   : > { %s586_s26 = sshll.u32 %s6964_s16, 4  ;;  %s610_s18 = sshll.u32 %s6965_s29, 4  ;;  %s587_s26 = int_to_ptr.vmem [resolvable:$true] %s586_s26  ;;  %s611_s18 = int_to_ptr.vmem [resolvable:$true] %s610_s18 }
  0xa4   : > { %s6503_s17 = scalar_lea.hbm %s7819_s11, 2048 }
  0xa5   : > { %p6504_p1 = scmp.ne.s32.totalorder %s7819_s11, %s6503_s17  ;;  %p6510_p12 = scmp.lt.u32.totalorder %s6503_s17, %s7819_s11 }
  0xa7   : > { %p6506_p3 = pnand %p6504_p1, %p7141_p7 }
  0xa9   : > { %p6507_p11 = pneg %p6506_p3 }
  0xab   : > { %p6512_p13 = pnand %p6510_p12, %p6507_p11 }
  0xad   : > { %6515 = shalt.err (!%p6512_p13)
}
  0xae   : > { %s6516_s27 = scalar_lea.vmem %s587_s26, 2048  ;;  %p6524_p6 = scmp.lt.s32.totalorder %s587_s26, %s587_s26 }
  0xaf   : > { %p6517_p0 = scmp.ne.s32.totalorder %s587_s26, %s6516_s27  ;;  %p6525_p8 = scmp.lt.s32.totalorder %s6516_s27, %s6516_s27 }
  0xb1   : > { %p6519_p2 = pnand %p6517_p0, %p7141_p7  ;;  %p6526_p9 = por %p6525_p8, %p6524_p6 }
  0xb3   : > { %p6520_p4 = pneg %p6519_p2 }
  0xb5   : > { %p6527_p10 = pnand %p6526_p9, %p6520_p4 }
  0xb7   : > { %6530 = shalt.err (!%p6527_p10)
}
  0xb8   : > { %6180 = dma.hbm_to_vmem [thread:$0]  (!%p7125_p5), %s7819_s11, 2048, %s587_s26, [#allocation21], %s7843_s25, %s7843_s25, %s7844_s24  }
  0xb9   : > { %s6531_s23 = scalar_lea.hbm %s7821_s13, 2048 }
  0xba   : > { %p6532_p1 = scmp.ne.s32.totalorder %s7821_s13, %s6531_s23  ;;  %p6538_p12 = scmp.lt.u32.totalorder %s6531_s23, %s7821_s13 }
  0xbc   : > { %p6534_p3 = pnand %p6532_p1, %p7141_p7 }
  0xbe   : > { %p6535_p11 = pneg %p6534_p3 }
  0xc0   : > { %p6540_p13 = pnand %p6538_p12, %p6535_p11 }
  0xc2   : > { %6543 = shalt.err (!%p6540_p13)
}
  0xc3   : > { %s6544_s0 = scalar_lea.vmem %s611_s18, 2048  ;;  %p6552_p6 = scmp.lt.s32.totalorder %s611_s18, %s611_s18 }
  0xc4   : > { %p6545_p0 = scmp.ne.s32.totalorder %s611_s18, %s6544_s0  ;;  %p6553_p8 = scmp.lt.s32.totalorder %s6544_s0, %s6544_s0 }
  0xc6   : > { %p6547_p2 = pnand %p6545_p0, %p7141_p7  ;;  %p6554_p9 = por %p6553_p8, %p6552_p6 }
  0xc8   : > { %p6548_p4 = pneg %p6547_p2 }
  0xca   : > { %p6555_p10 = pnand %p6554_p9, %p6548_p4 }
  0xcc   : > { %6558 = shalt.err (!%p6555_p10)
}
  0xcd   : > { %6186 = dma.hbm_to_vmem [thread:$0]  (!%p7125_p5), %s7821_s13, 2048, %s611_s18, [#allocation24], %s7843_s25, %s7843_s25, %s7844_s24  }
  0xce   : > { %s6966_s3 = smov [#allocation26]   ;;  %s6967_s29 = smov [#allocation7]  }
  0xcf   : > { %s635_s16 = sshll.u32 %s6966_s3, 4  ;;  %s475_s21 = sshll.u32 %s6967_s29, 4  ;;  %s636_s16 = int_to_ptr.vmem [resolvable:$true] %s635_s16  ;;  %s476_s21 = int_to_ptr.vmem [resolvable:$true] %s475_s21 }
  0xd0   : > { %s6559_s1 = scalar_lea.hbm %s7823_s15, 16 }
  0xd1   : > { %p6560_p1 = scmp.ne.s32.totalorder %s7823_s15, %s6559_s1  ;;  %p6566_p12 = scmp.lt.u32.totalorder %s6559_s1, %s7823_s15 }
  0xd3   : > { %p6562_p3 = pnand %p6560_p1, %p7141_p7 }
  0xd5   : > { %p6563_p11 = pneg %p6562_p3 }
  0xd7   : > { %p6568_p13 = pnand %p6566_p12, %p6563_p11 }
  0xd9   : > { %6571 = shalt.err (!%p6568_p13)
}
  0xda   : > { %s6572_s18 = scalar_lea.vmem %s636_s16, 16  ;;  %s6579_s27 = scalar_lea.vmem %s636_s16, 32 }
  0xdb   : > { %p6573_p0 = scmp.ne.s32.totalorder %s636_s16, %s6572_s18  ;;  %p6580_p6 = scmp.lt.s32.totalorder %s636_s16, %s636_s16 }
  0xdc   : > { %p6581_p8 = scmp.lt.s32.totalorder %s6579_s27, %s6572_s18 }
  0xdd   : > { %p6575_p2 = pnand %p6573_p0, %p7141_p7 }
  0xde   : > { %p6582_p9 = por %p6581_p8, %p6580_p6 }
  0xdf   : > { %p6576_p4 = pneg %p6575_p2 }
  0xe1   : > { %p6583_p10 = pnand %p6582_p9, %p6576_p4 }
  0xe3   : > { %6586 = shalt.err (!%p6583_p10)
}
  0xe4   : > { %6192 = dma.hbm_to_vmem [thread:$0]  (!%p7125_p5), %s7823_s15, 16, %s636_s16, [#allocation27]  }
  0xe5   : > { %s7870_s2 = sld [smem:[#allocation50_spill]] }
  0xeb   : > { %s6587_s1 = scalar_lea.hbm %s7870_s2, 64 }
  0xec   : > { %p6588_p1 = scmp.ne.s32.totalorder %s7870_s2, %s6587_s1  ;;  %p6594_p12 = scmp.lt.u32.totalorder %s6587_s1, %s7870_s2 }
  0xee   : > { %p6590_p3 = pnand %p6588_p1, %p7141_p7 }
  0xf0   : > { %p6591_p11 = pneg %p6590_p3 }
  0xf2   : > { %p6596_p13 = pnand %p6594_p12, %p6591_p11 }
  0xf4   : > { %6599 = shalt.err (!%p6596_p13)
}
  0xf5   : > { %s6600_s18 = scalar_lea.vmem %s476_s21, 64  ;;  %p6608_p6 = scmp.lt.s32.totalorder %s476_s21, %s476_s21 }
  0xf6   : > { %p6601_p0 = scmp.ne.s32.totalorder %s476_s21, %s6600_s18  ;;  %p6609_p8 = scmp.lt.s32.totalorder %s6600_s18, %s6600_s18 }
  0xf8   : > { %p6603_p2 = pnand %p6601_p0, %p7141_p7  ;;  %p6610_p9 = por %p6609_p8, %p6608_p6 }
  0xfa   : > { %p6604_p4 = pneg %p6603_p2 }
  0xfc   : > { %p6611_p10 = pnand %p6610_p9, %p6604_p4 }
  0xfe   : > { %6614 = shalt.err (!%p6611_p10)
}
  0xff   : > { %s6968_s16 = smov 16   ;;  %s6969_s27 = smov 1  }
 0x100   : > { %6153 = dma.hbm_to_vmem [thread:$0]  (!%p7125_p5), %s7870_s2, 64, %s476_s21, [#allocation6], %s6968_s16, %s6968_s16, %s6969_s27  }
 0x101   : > { %s6970_s23 = smov [#allocation10]   ;;  %s6971_s1 = smov [#allocation13]  }
 0x102   : > { %s501_s17 = sshll.u32 %s6970_s23, 4  ;;  %s527_s22 = sshll.u32 %s6971_s1, 4  ;;  %s502_s17 = int_to_ptr.vmem [resolvable:$true] %s501_s17  ;;  %s528_s22 = int_to_ptr.vmem [resolvable:$true] %s527_s22 }
 0x103   : > { %s7871_s4 = sld [smem:[#allocation52_spill]] }
 0x109   : > { %s6615_s26 = scalar_lea.hbm %s7871_s4, 64 }
 0x10a   : > { %p6616_p1 = scmp.ne.s32.totalorder %s7871_s4, %s6615_s26  ;;  %p6622_p12 = scmp.lt.u32.totalorder %s6615_s26, %s7871_s4 }
 0x10c   : > { %p6618_p3 = pnand %p6616_p1, %p7141_p7 }
 0x10e   : > { %p6619_p11 = pneg %p6618_p3 }
 0x110   : > { %p6624_p13 = pnand %p6622_p12, %p6619_p11 }
 0x112   : > { %6627 = shalt.err (!%p6624_p13)
}
 0x113   : > { %s6628_s21 = scalar_lea.vmem %s502_s17, 64  ;;  %p6636_p6 = scmp.lt.s32.totalorder %s502_s17, %s502_s17 }
 0x114   : > { %p6629_p0 = scmp.ne.s32.totalorder %s502_s17, %s6628_s21  ;;  %p6637_p8 = scmp.lt.s32.totalorder %s6628_s21, %s6628_s21 }
 0x116   : > { %p6631_p2 = pnand %p6629_p0, %p7141_p7  ;;  %p6638_p9 = por %p6637_p8, %p6636_p6 }
 0x118   : > { %p6632_p4 = pneg %p6631_p2 }
 0x11a   : > { %p6639_p10 = pnand %p6638_p9, %p6632_p4 }
 0x11c   : > { %6642 = shalt.err (!%p6639_p10)
}
 0x11d   : > { %6159 = dma.hbm_to_vmem [thread:$0]  (!%p7125_p5), %s7871_s4, 64, %s502_s17, [#allocation9], %s6968_s16, %s6968_s16, %s6969_s27  }
 0x11e   : > { %s7872_s6 = sld [smem:[#allocation54_spill]] }
 0x124   : > { %s6643_s29 = scalar_lea.hbm %s7872_s6, 64 }
 0x125   : > { %p6644_p1 = scmp.ne.s32.totalorder %s7872_s6, %s6643_s29  ;;  %p6650_p12 = scmp.lt.u32.totalorder %s6643_s29, %s7872_s6 }
 0x127   : > { %p6646_p3 = pnand %p6644_p1, %p7141_p7 }
 0x129   : > { %p6647_p11 = pneg %p6646_p3 }
 0x12b   : > { %p6652_p13 = pnand %p6650_p12, %p6647_p11 }
 0x12d   : > { %6655 = shalt.err (!%p6652_p13)
}
 0x12e   : > { %s6656_s26 = scalar_lea.vmem %s528_s22, 64  ;;  %p6664_p6 = scmp.lt.s32.totalorder %s528_s22, %s528_s22 }
 0x12f   : > { %p6657_p0 = scmp.ne.s32.totalorder %s528_s22, %s6656_s26  ;;  %p6665_p8 = scmp.lt.s32.totalorder %s6656_s26, %s6656_s26 }
 0x131   : > { %p6659_p2 = pnand %p6657_p0, %p7141_p7  ;;  %p6666_p9 = por %p6665_p8, %p6664_p6 }
 0x133   : > { %p6660_p4 = pneg %p6659_p2 }
 0x135   : > { %p6667_p10 = pnand %p6666_p9, %p6660_p4 }
 0x137   : > { %6670 = shalt.err (!%p6667_p10)
}
 0x138   : > { %6165 = dma.hbm_to_vmem [thread:$0]  (!%p7125_p5), %s7872_s6, 64, %s528_s22, [#allocation12], %s6968_s16, %s6968_s16, %s6969_s27  }
 0x139   : > { %s6972_s21 = smov [#allocation16]   ;;  %s6973_s25 = smov [#allocation19]  }
 0x13a   : > { %s554_s5 = sshll.u32 %s6972_s21, 4  ;;  %s576_s24 = sshll.u32 %s6973_s25, 4  ;;  %s555_s5 = int_to_ptr.vmem [resolvable:$true] %s554_s5  ;;  %s577_s24 = int_to_ptr.vmem [resolvable:$true] %s576_s24 }
 0x13b   : > { %s6671_s23 = scalar_lea.hbm %s7816_s8, 16 }
 0x13c   : > { %p6672_p1 = scmp.ne.s32.totalorder %s7816_s8, %s6671_s23  ;;  %p6678_p12 = scmp.lt.u32.totalorder %s6671_s23, %s7816_s8 }
 0x13e   : > { %p6674_p3 = pnand %p6672_p1, %p7141_p7 }
 0x140   : > { %p6675_p11 = pneg %p6674_p3 }
 0x142   : > { %p6680_p13 = pnand %p6678_p12, %p6675_p11 }
 0x144   : > { %6683 = shalt.err (!%p6680_p13)
}
 0x145   : > { %s6684_s16 = scalar_lea.vmem %s555_s5, 16  ;;  %s6691_s27 = scalar_lea.vmem %s555_s5, 32 }
 0x146   : > { %p6685_p0 = scmp.ne.s32.totalorder %s555_s5, %s6684_s16  ;;  %p6692_p6 = scmp.lt.s32.totalorder %s555_s5, %s555_s5 }
 0x147   : > { %p6693_p8 = scmp.lt.s32.totalorder %s6691_s27, %s6684_s16 }
 0x148   : > { %p6687_p2 = pnand %p6685_p0, %p7141_p7 }
 0x149   : > { %p6694_p9 = por %p6693_p8, %p6692_p6 }
 0x14a   : > { %p6688_p4 = pneg %p6687_p2 }
 0x14c   : > { %p6695_p10 = pnand %p6694_p9, %p6688_p4 }
 0x14e   : > { %6698 = shalt.err (!%p6695_p10)
}
 0x14f   : > { %6171 = dma.hbm_to_vmem [thread:$0]  (!%p7125_p5), %s7816_s8, 16, %s555_s5, [#allocation15]  }
 0x150   : > { %s6699_s25 = scalar_lea.hbm %s7818_s10, 16 }
 0x151   : > { %p6700_p1 = scmp.ne.s32.totalorder %s7818_s10, %s6699_s25  ;;  %p6706_p12 = scmp.lt.u32.totalorder %s6699_s25, %s7818_s10 }
 0x153   : > { %p6702_p3 = pnand %p6700_p1, %p7141_p7 }
 0x155   : > { %p6703_p11 = pneg %p6702_p3 }
 0x157   : > { %p6708_p13 = pnand %p6706_p12, %p6703_p11 }
 0x159   : > { %6711 = shalt.err (!%p6708_p13)
}
 0x15a   : > { %s6712_s28 = scalar_lea.vmem %s577_s24, 16  ;;  %s6719_s5 = scalar_lea.vmem %s577_s24, 32 }
 0x15b   : > { %p6713_p0 = scmp.ne.s32.totalorder %s577_s24, %s6712_s28  ;;  %p6720_p6 = scmp.lt.s32.totalorder %s577_s24, %s577_s24 }
 0x15c   : > { %p6721_p8 = scmp.lt.s32.totalorder %s6719_s5, %s6712_s28 }
 0x15d   : > { %p6715_p2 = pnand %p6713_p0, %p7141_p7 }
 0x15e   : > { %p6722_p9 = por %p6721_p8, %p6720_p6 }
 0x15f   : > { %p6716_p4 = pneg %p6715_p2 }
 0x161   : > { %p6723_p10 = pnand %p6722_p9, %p6716_p4 }
 0x163   : > { %6726 = shalt.err (!%p6723_p10)
}
 0x164   : > { %6177 = dma.hbm_to_vmem [thread:$0]  (!%p7125_p5), %s7818_s10, 16, %s577_s24, [#allocation18]  }
 0x165   : > { %s6974_s16 = smov [#allocation22]   ;;  %s6975_s22 = smov [#allocation25]  }
 0x166   : > { %s600_s27 = sshll.u32 %s6974_s16, 4  ;;  %s624_s17 = sshll.u32 %s6975_s22, 4  ;;  %s601_s27 = int_to_ptr.vmem [resolvable:$true] %s600_s27  ;;  %s625_s17 = int_to_ptr.vmem [resolvable:$true] %s624_s17 }
 0x167   : > { %s6727_s25 = scalar_lea.hbm %s7820_s12, 16 }
 0x168   : > { %p6728_p1 = scmp.ne.s32.totalorder %s7820_s12, %s6727_s25  ;;  %p6734_p12 = scmp.lt.u32.totalorder %s6727_s25, %s7820_s12 }
 0x16a   : > { %p6730_p3 = pnand %p6728_p1, %p7141_p7 }
 0x16c   : > { %p6731_p11 = pneg %p6730_p3 }
 0x16e   : > { %p6736_p13 = pnand %p6734_p12, %p6731_p11 }
 0x170   : > { %6739 = shalt.err (!%p6736_p13)
}
 0x171   : > { %s6740_s24 = scalar_lea.vmem %s601_s27, 16  ;;  %s6747_s28 = scalar_lea.vmem %s601_s27, 32 }
 0x172   : > { %p6741_p0 = scmp.ne.s32.totalorder %s601_s27, %s6740_s24  ;;  %p6748_p6 = scmp.lt.s32.totalorder %s601_s27, %s601_s27 }
 0x173   : > { %p6749_p8 = scmp.lt.s32.totalorder %s6747_s28, %s6740_s24 }
 0x174   : > { %p6743_p2 = pnand %p6741_p0, %p7141_p7 }
 0x175   : > { %p6750_p9 = por %p6749_p8, %p6748_p6 }
 0x176   : > { %p6744_p4 = pneg %p6743_p2 }
 0x178   : > { %p6751_p10 = pnand %p6750_p9, %p6744_p4 }
 0x17a   : > { %6754 = shalt.err (!%p6751_p10)
}
 0x17b   : > { %6183 = dma.hbm_to_vmem [thread:$0]  (!%p7125_p5), %s7820_s12, 16, %s601_s27, [#allocation21]  }
 0x17c   : > { %s6755_s22 = scalar_lea.hbm %s7822_s14, 16 }
 0x17d   : > { %p6756_p1 = scmp.ne.s32.totalorder %s7822_s14, %s6755_s22  ;;  %p6762_p12 = scmp.lt.u32.totalorder %s6755_s22, %s7822_s14 }
 0x17f   : > { %p6758_p3 = pnand %p6756_p1, %p7141_p7 }
 0x181   : > { %p6759_p11 = pneg %p6758_p3 }
 0x183   : > { %p6764_p13 = pnand %p6762_p12, %p6759_p11 }
 0x185   : > { %6767 = shalt.err (!%p6764_p13)
}
 0x186   : > { %s6768_s29 = scalar_lea.vmem %s625_s17, 16  ;;  %s6775_s27 = scalar_lea.vmem %s625_s17, 32 }
 0x187   : > { %p6769_p0 = scmp.ne.s32.totalorder %s625_s17, %s6768_s29  ;;  %p6776_p6 = scmp.lt.s32.totalorder %s625_s17, %s625_s17 }
 0x188   : > { %p6777_p8 = scmp.lt.s32.totalorder %s6775_s27, %s6768_s29 }
 0x189   : > { %p6771_p2 = pnand %p6769_p0, %p7141_p7 }
 0x18a   : > { %p6778_p9 = por %p6777_p8, %p6776_p6 }
 0x18b   : > { %p6772_p4 = pneg %p6771_p2 }
 0x18d   : > { %p6779_p10 = pnand %p6778_p9, %p6772_p4 }
 0x18f   : > { %6782 = shalt.err (!%p6779_p10)
}
 0x190   : > { %6189 = dma.hbm_to_vmem [thread:$0]  (!%p7125_p5), %s7822_s14, 16, %s625_s17, [#allocation24]  }
 0x191   : > { %s6976_s24 = smov [#allocation28]   ;;  %s7873_s26 = sld [smem:[#allocation55_spill]] }
 0x192   : > { %s646_s28 = sshll.u32 %s6976_s24, 4  ;;  %s647_s28 = int_to_ptr.vmem [resolvable:$true] %s646_s28 }
 0x197   : > { %s7874_s16 = smov %s7873_s26  ;;  %s6783_s22 = scalar_lea.hbm %s7873_s26, 16 }
 0x198   : > { %p6784_p1 = scmp.ne.s32.totalorder %s7874_s16, %s6783_s22  ;;  %p6790_p12 = scmp.lt.u32.totalorder %s6783_s22, %s7874_s16 }
 0x19a   : > { %p6786_p3 = pnand %p6784_p1, %p7141_p7 }
 0x19c   : > { %p6787_p11 = pneg %p6786_p3 }
 0x19e   : > { %p6792_p13 = pnand %p6790_p12, %p6787_p11 }
 0x1a0   : > { %6795 = shalt.err (!%p6792_p13)
}
 0x1a1   : > { %s6796_s17 = scalar_lea.vmem %s647_s28, 16  ;;  %s6803_s29 = scalar_lea.vmem %s647_s28, 32 }
 0x1a2   : > { %p6797_p0 = scmp.ne.s32.totalorder %s647_s28, %s6796_s17  ;;  %p6804_p6 = scmp.lt.s32.totalorder %s647_s28, %s647_s28 }
 0x1a3   : > { %p6805_p8 = scmp.lt.s32.totalorder %s6803_s29, %s6796_s17 }
 0x1a4   : > { %p6799_p2 = pnand %p6797_p0, %p7141_p7 }
 0x1a5   : > { %p6806_p9 = por %p6805_p8, %p6804_p6 }
 0x1a6   : > { %p6800_p4 = pneg %p6799_p2 }
 0x1a8   : > { %p6807_p10 = pnand %p6806_p9, %p6800_p4 }
 0x1aa   : > { %6810 = shalt.err (!%p6807_p10)
}
 0x1ab   : > { %s7875_s1 = sld [smem:[#allocation45_spill]]  ;;  %s7876_s24 = sld [smem:[#allocation44_spill]] }
 0x1ac   : > { %s7877_s5 = sld [smem:[#allocation42_spill]]  ;;  %s7878_s0 = sld [smem:[#allocation41_spill]] }
 0x1ad   : > { %s7879_s30 = sld [smem:[#allocation40_spill]]  ;;  %s7880_s26 = sld [smem:[#allocation46_spill]] }
 0x1ae   : > { %6195 = dma.hbm_to_vmem [thread:$0]  (!%p7125_p5), %s7874_s16, 16, %s647_s28, [#allocation27]  }
 0x1b1   : > { %s4351_s22 = sadd.s32 4294967294, %s7875_s1   ;;  %s50_s18 = sadd.s32 1, %s7876_s24 }
 0x1b2   : > { %p51_p7 = scmp.ge.s32.totalorder %s50_s18, 4  ;;  %s62_s20 = sadd.s32 1, %s7877_s5 }
 0x1b3   : > { %p69_p1 = scmp.ne.s32.totalorder %s7877_s5, %s7878_s0  ;;  %p70_p3 = scmp.eq.s32.totalorder %s7875_s1, 0 }
 0x1b4   : > { %s7910_s18 = smov (%p51_p7, %s50_s18), 0  ;;  %p75_p12 = scmp.ne.s32.totalorder %s7878_s0, %s7879_s30 }
 0x1b5   : > { %p7473_p11 = por %p70_p3, %p69_p1  ;;  %s58_s28 = ssub.s32 %s7876_s24, %s7910_s18 }
 0x1b6   : > { %s7882_s25 = sadd.s32 4294967295, %s7875_s1   ;;  %p60_p13 = scmp.eq.s32.totalorder %s58_s28, 0 }
 0x1b7   : > { %p437_p5 = scmp.eq.s32.totalorder %s7882_s25, 3  ;;  %p7883_p0 = scmp.ne.s32.totalorder %s7880_s26, 0 }
 0x1b8   : > { %p443_p6 = scmp.eq.s32.totalorder %s4351_s22, 3  ;;  %p6220_p9 = scmp.lt.s32.totalorder %s7875_s1, 4 }
 0x1b9   : > { %p7485_p2 = por %p7883_p0, %p75_p12  ;;  %p7489_p4 = por %p437_p5, %p69_p1 }
 0x1ba   : > { %s7494_s29 = scalar_select %p60_p13, %s7877_s5, %s62_s20  }
 0x1bb   : > { %s7885_s17 = scalar_select %p7489_p4, 1, 0 }
 0x1bc   : > { %p7496_p8 = por %p443_p6, %p75_p12  ;;  %s657_s23 = sand.u32 1, %s7877_s5  }
 0x1bd   : > { %s4371_s0 = sshll.u32 %s7876_s24, 7  ;;  %s4370_s30 = sshll.u32 %s657_s23, 4 }
 0x1be   : > { %s7886_s27 = scalar_select %p7496_p8, 1, 0 }
 0x1bf   : > { %s7887_s25 = sld [smem:[#allocation48_spill]]  ;;  %s661_s22 = scalar_lea.vmem [#allocation2], %s4370_s30 }
 0x1c0   : > { %s670_s20 = sshll.u32 %s661_s22, 4  ;;  %p7510_p10 = pnand %p6220_p9, %p7473_p11  ;;  %s7514_s20 = int_to_ptr.vmem [resolvable:$true] %s670_s20 }
 0x1c1   : > { %s7516_s1 = scalar_lea.sflag [#allocation3], %s657_s23 }
 0x1c2   : > { %p6813_p1 = pneg %p7510_p10 }
 0x1c5   : > { %s7888_s2 = smov %s7887_s25  ;;  %s7506_s4 = scalar_lea.hbm %s7887_s25, %s4371_s0 }
 0x1c6   : > { %s6811_s24 = scalar_lea.hbm %s7506_s4, 256  ;;  %s6816_s0 = scalar_lea.hbm %s7888_s2, 1024 }
 0x1c7   : > { %p6812_p7 = scmp.ne.s32.totalorder %s7506_s4, %s6811_s24  ;;  %p6817_p11 = scmp.lt.u32.totalorder %s7506_s4, %s7888_s2 }
 0x1c8   : > { %p6818_p5 = scmp.lt.u32.totalorder %s6816_s0, %s6811_s24  ;;  %p6820_p0 = scmp.lt.u32.totalorder %s6811_s24, %s7506_s4 }
 0x1c9   : > { %p6814_p3 = pnand %p6813_p1, %p6812_p7 }
 0x1ca   : > { %p6819_p13 = por %p6818_p5, %p6817_p11 }
 0x1cb   : > { %p6815_p12 = pneg %p6814_p3 }
 0x1cc   : > { %p6821_p6 = por %p6820_p0, %p6819_p13 }
 0x1ce   : > { %p6822_p9 = pnand %p6821_p6, %p6815_p12 }
 0x1d0   : > { %6825 = shalt.err (!%p6822_p9)
}
 0x1d1   : > { %s6826_s23 = scalar_lea.vmem %s7514_s20, 256  ;;  %s6977_s28 = smov [#allocation2]  }
 0x1d2   : > { %p6827_p7 = scmp.ne.s32.totalorder %s7514_s20, %s6826_s23  ;;  %s6831_s25 = sshll.u32 %s6977_s28, 4  ;;  %s6832_s25 = int_to_ptr.vmem [resolvable:$false] %s6831_s25 }
 0x1d3   : > { %s6833_s22 = scalar_lea.vmem %s6832_s25, 512  ;;  %p6834_p4 = scmp.lt.s32.totalorder %s7514_s20, %s6832_s25 }
 0x1d4   : > { %p6829_p3 = pnand %p6827_p7, %p6813_p1  ;;  %p6835_p11 = scmp.lt.s32.totalorder %s6833_s22, %s6826_s23 }
 0x1d6   : > { %p6830_p8 = pneg %p6829_p3  ;;  %p6836_p5 = por %p6835_p11, %p6834_p4 }
 0x1d8   : > { %p6837_p13 = pnand %p6836_p5, %p6830_p8 }
 0x1da   : > { %6840 = shalt.err (!%p6837_p13)
}
 0x1db   : > { %s6978_s24 = smov 512   ;;  %s7890_s5 = smov 8  }
 0x1dc   : > { %s7891_s21 = smov 128   ;;  %s7892_s0 = sld [smem:[#allocation47_spill]] }
 0x1dd   : > { %6199 = dma.hbm_to_vmem [thread:$0]  (!%p7510_p10), %s7506_s4, 256, %s7514_s20, %s7516_s1, %s6978_s24, %s7891_s21, %s7890_s5  }
 0x1e2   : > { %p7893_p1 = scmp.ne.s32.totalorder %s7892_s0, 0 }
 0x1e3   : > { %s7894_s30 = sld [smem:[#allocation41_spill]] (!%p7893_p1) }
 0x1e4   : > { %682 = sbr.rel (%p7893_p1) target bundleno = 5271 (0x1497), region = 88 }
 0x1e9   : > { %s7549_s26 = sand.u32 (!%p7893_p1), 1, %s7894_s30  }
 0x1ea   : > { %s4373_s23 = sshll.u32 (!%p7893_p1), %s7549_s26, 4  ;;  %s685_s28 = scalar_lea.sflag (!%p7893_p1), [#allocation3], %s7549_s26 }
 0x1eb   : > { %s7555_s6 = scalar_lea.vmem [#allocation2], %s4373_s23 }
 0x1ec   : > { %6894 = dma.done.wait (%p7485_p2), %s685_s28, 256  }
 0x1ed   : > { %6896 = vsyncadd (%p7485_p2), %s685_s28, 4294967040  ;;  %s7895_s4 = sld [smem:[#allocation46_spill]] }
 0x1f3   : > { %p7896_p4 = scmp.ne.s32.totalorder %s7895_s4, 0 }
 0x1f5   : > { %6898 = dma.done.wait (%p7896_p4), [#allocation6], 8256  }
 0x1f6   : > { %6900 = vsyncadd (%p7896_p4), [#allocation6], 4294959040 }
 0x1f7   : > { %6902 = dma.done.wait (%p7896_p4), [#allocation9], 8256  }
 0x1f8   : > { %6904 = vsyncadd (%p7896_p4), [#allocation9], 4294959040 }
 0x1f9   : > { %6906 = dma.done.wait (%p7896_p4), [#allocation12], 8256  }
 0x1fa   : > { %6908 = vsyncadd (%p7896_p4), [#allocation12], 4294959040 }
 0x1fb   : > { %6910 = dma.done.wait (%p7896_p4), [#allocation15], 8208  }
 0x1fc   : > { %6912 = vsyncadd (%p7896_p4), [#allocation15], 4294959088 }
 0x1fd   : > { %6914 = dma.done.wait (%p7896_p4), [#allocation18], 32  }
 0x1fe   : > { %6916 = vsyncadd (%p7896_p4), [#allocation18], 4294967264 }
 0x1ff   : > { %6918 = dma.done.wait (%p7896_p4), [#allocation21], 2064  }
 0x200   : > { %6920 = vsyncadd (%p7896_p4), [#allocation21], 4294965232 }
 0x201   : > { %6922 = dma.done.wait (%p7896_p4), [#allocation24], 2064  }
 0x202   : > { %6924 = vsyncadd (%p7896_p4), [#allocation24], 4294965232 }
 0x203   : > { %6926 = dma.done.wait (%p7896_p4), [#allocation27], 32  }
 0x204   : > { %6928 = vsyncadd (%p7896_p4), [#allocation27], 4294967264  ;;  %v905_v0 = vld [vmem:[#allocation8] sm:$0xff]  ;;  %v906_v1 = vld [vmem:[#allocation8 + $0x8] sm:$0xff]  ;;  %v6979_v50 = vmov 0.0   ;;  %vm6980_vm0 = vmmov 0  }
 0x205   : > { %v807_v2 = vld [vmem:[#allocation5] sm:$0xff]  ;;  %v5529_v3 = vpack.c.bf16 %v906_v1, %v905_v0  ;;  %v808_v4 = vld [vmem:[#allocation5 + $0x8] sm:$0xff]  ;;  %v907_v5 = vld [vmem:[#allocation8 + $0x10] sm:$0xff]  ;;  %vm1243_vm1 = vcmask 64512   ;;  %s7897_s3 = sld [smem:[#allocation43_spill]]  ;;  %s7735_s20 = scalar_lea.vmem [#allocation29], %s4373_s23 }
 0x206   : > { %v908_v6 = vld [vmem:[#allocation8 + $0x18] sm:$0xff]  ;;  %v5497_v7 = vpack.c.bf16 %v808_v4, %v807_v2  ;;  %v809_v9 = vld [vmem:[#allocation5 + $0x10] sm:$0xff]  ;;  %v909_v11 = vld [vmem:[#allocation8 + $0x20] sm:$0xff]  ;;  %s4113_s25 = sshll.u32 %s7735_s20, 4  ;;  %s7898_s5 = sld [smem:[#allocation56_spill]]  ;;  %s7756_s25 = int_to_ptr.vmem [resolvable:$true] %s4113_s25 }
 0x207   : > { %v5533_v8 = vpack.c.bf16 %v908_v6, %v907_v5  ;;  %v810_v10 = vld [vmem:[#allocation5 + $0x18] sm:$0xff]  ;;  %5530 = vmatprep.subr.bf16.mxu1 %v5529_v3  ;;  %v910_v13 = vld [vmem:[#allocation8 + $0x28] sm:$0xff]  ;;  %v811_v14 = vld [vmem:[#allocation5 + $0x20] sm:$0xff]  ;;  %s4098_s0 = scalar_lea.sflag [#allocation4], %s7549_s26  ;;  %s6841_s30 = scalar_lea.vmem %s7756_s25, 256 }
 0x208   : > { %v5501_v12 = vpack.c.bf16 %v810_v10, %v809_v9  ;;  %v812_v15 = vld [vmem:[#allocation5 + $0x28] sm:$0xff]  ;;  %5532 = vmatpush3.bf16.msra.mxu1 %v5529_v3  ;;  %5498 = vmatprep.subr.bf16.mxu0 %v5497_v7  ;;  %v5537_v16 = vpack.c.bf16 %v910_v13, %v909_v11  ;;  %v911_v18 = vld [vmem:[#allocation8 + $0x30] sm:$0xff]  ;;  %v912_v19 = vld [vmem:[#allocation8 + $0x38] sm:$0xff]  ;;  %p6842_p2 = scmp.ne.s32.totalorder %s7756_s25, %s6841_s30  ;;  %p7899_p8 = scmp.ne.s32.totalorder %s7885_s17, 0 }
 0x209   : > { %5500 = vmatpush3.bf16.msra.mxu0 %v5497_v7  ;;  %5534 = vmatprep.subr.bf16.mxu1 %v5533_v8  ;;  %v5505_v17 = vpack.c.bf16 %v812_v15, %v811_v14  ;;  %v813_v20 = vld [vmem:[#allocation5 + $0x30] sm:$0xff]  ;;  %v814_v21 = vld [vmem:[#allocation5 + $0x38] sm:$0xff]  ;;  %v5541_v22 = vpack.c.bf16 %v912_v19, %v911_v18  ;;  %v913_v24 = vld [vmem:[#allocation8 + $0x40] sm:$0xff]  ;;  %s6982_s23 = smov [#allocation29]  }
 0x20a   : > { %5502 = vmatprep.subr.bf16.mxu0 %v5501_v12  ;;  %v5509_v23 = vpack.c.bf16 %v814_v21, %v813_v20  ;;  %v914_v25 = vld [vmem:[#allocation8 + $0x48] sm:$0xff]  ;;  %v815_v27 = vld [vmem:[#allocation5 + $0x40] sm:$0xff]  ;;  %v915_v31 = vld [vmem:[#allocation8 + $0x50] sm:$0xff]  ;;  %p6843_p10 = pnand %p6842_p2, %p7899_p8  ;;  %s6845_s28 = sshll.u32 %s6982_s23, 4  ;;  %s6846_s28 = int_to_ptr.vmem [resolvable:$false] %s6845_s28 }
 0x20b   : > { %v7594_v26 = vld [vmem:[%s7555_s6] sm:$0xff]  ;;  %v816_v28 = vld [vmem:[#allocation5 + $0x48] sm:$0xff]  ;;  %v5545_v29 = vpack.c.bf16 %v914_v25, %v913_v24  ;;  %v818_v34 = vld [vmem:[#allocation5 + $0x58] sm:$0xff]  ;;  %s4428_s1 = sshll.u32 %s7897_s3, 4  ;;  %p6848_p0 = scmp.lt.s32.totalorder %s7756_s25, %s6846_s28 }
 0x20c   : > { %5536 = vmatpush3.bf16.msra.mxu1 %v5533_v8  ;;  %4854 = vmatprep.mubr.f32.mxu1 %v7594_v26  ;;  %v5513_v30 = vpack.c.bf16 %v816_v28, %v815_v27  ;;  %v916_v32 = vld [vmem:[#allocation8 + $0x58] sm:$0xff]  ;;  %v817_v33 = vld [vmem:[#allocation5 + $0x50] sm:$0xff]  ;;  %v917_v37 = vld [vmem:[#allocation8 + $0x60] sm:$0xff]  ;;  %s7752_s21 = scalar_lea.hbm %s7898_s5, %s4428_s1  ;;  %p6844_p12 = pneg %p6843_p10 }
 0x20d   : > { %5504 = vmatpush3.bf16.msra.mxu0 %v5501_v12  ;;  %5538 = vmatprep.subr.bf16.mxu1 %v5537_v16  ;;  %v5549_v35 = vpack.c.bf16 %v916_v32, %v915_v31  ;;  %v5517_v36 = vpack.c.bf16 %v818_v34, %v817_v33  ;;  %v918_v38 = vld [vmem:[#allocation8 + $0x68] sm:$0xff]  ;;  %v819_v39 = vld [vmem:[#allocation5 + $0x60] sm:$0xff]  ;;  %v919_v43 = vld [vmem:[#allocation8 + $0x70] sm:$0xff] }
 0x20e   : > { %5506 = vmatprep.subr.bf16.mxu0 %v5505_v17  ;;  %4819 = vmatprep.mubr.f32.mxu0 %v7594_v26  ;;  %v820_v40 = vld [vmem:[#allocation5 + $0x68] sm:$0xff]  ;;  %v5553_v41 = vpack.c.bf16 %v918_v38, %v917_v37  ;;  %v920_v44 = vld [vmem:[#allocation8 + $0x78] sm:$0xff]  ;;  %v821_v45 = vld [vmem:[#allocation5 + $0x70] sm:$0xff] }
 0x20f   : > { %v5521_v42 = vpack.c.bf16 %v820_v40, %v819_v39  ;;  %v822_v46 = vld [vmem:[#allocation5 + $0x78] sm:$0xff]  ;;  %v5557_v47 = vpack.c.bf16 %v920_v44, %v919_v43  ;;  %v4392_v51 = vld [vmem:[#allocation10] ss:$0 sm:$0xff]  ;;  %v4391_v53 = vld [vmem:[#allocation7] ss:$0 sm:$0xff] }
 0x210   : > { %5540 = vmatpush3.bf16.msra.mxu1 %v5537_v16  ;;  %v5525_v48 = vpack.c.bf16 %v822_v46, %v821_v45  ;;  %v7599_v49 = vld [vmem:[%s7555_s6 + $0x8] sm:$0xff]  ;;  %v1004_v62 = vld [vmem:[#allocation11 + $0x8] sm:$0xff]  ;;  %v1006_v1 = vld [vmem:[#allocation11 + $0x18] sm:$0xff] }
 0x211   : > { %5508 = vmatpush3.bf16.msra.mxu0 %v5505_v17  ;;  %5542 = vmatprep.subr.bf16.mxu1 %v5541_v22  ;;  %v1003_v61 = vld [vmem:[#allocation11] sm:$0xff]  ;;  %v1005_v63 = vld [vmem:[#allocation11 + $0x10] sm:$0xff]  ;;  %v1008_v4 = vld [vmem:[#allocation11 + $0x28] sm:$0xff] }
 0x212   : > { %5510 = vmatprep.subr.bf16.mxu0 %v5509_v23  ;;  %v5561_v0 = vpack.c.bf16 %v1004_v62, %v1003_v61  ;;  %v5565_v2 = vpack.c.bf16 %v1006_v1, %v1005_v63  ;;  %v1007_v3 = vld [vmem:[#allocation11 + $0x20] sm:$0xff]  ;;  %v1009_v6 = vld [vmem:[#allocation11 + $0x30] sm:$0xff]  ;;  %v1010_v7 = vld [vmem:[#allocation11 + $0x38] sm:$0xff] }
 0x213   : > { %v5569_v5 = vpack.c.bf16 %v1008_v4, %v1007_v3  ;;  %v5573_v8 = vpack.c.bf16 %v1010_v7, %v1009_v6  ;;  %v1011_v9 = vld [vmem:[#allocation11 + $0x40] sm:$0xff]  ;;  %v1012_v10 = vld [vmem:[#allocation11 + $0x48] sm:$0xff]  ;;  %v1013_v12 = vld [vmem:[#allocation11 + $0x50] sm:$0xff] }
 0x214   : > { %5544 = vmatpush3.bf16.msra.mxu1 %v5541_v22  ;;  %v5577_v11 = vpack.c.bf16 %v1012_v10, %v1011_v9  ;;  %v1014_v13 = vld [vmem:[#allocation11 + $0x58] sm:$0xff]  ;;  %v1015_v15 = vld [vmem:[#allocation11 + $0x60] sm:$0xff]  ;;  %v1016_v16 = vld [vmem:[#allocation11 + $0x68] sm:$0xff] }
 0x215   : > { %5512 = vmatpush3.bf16.msra.mxu0 %v5509_v23  ;;  %5546 = vmatprep.subr.bf16.mxu1 %v5545_v29  ;;  %v5581_v14 = vpack.c.bf16 %v1014_v13, %v1013_v12  ;;  %v5585_v17 = vpack.c.bf16 %v1016_v16, %v1015_v15  ;;  %v1017_v18 = vld [vmem:[#allocation11 + $0x70] sm:$0xff]  ;;  %v1018_v19 = vld [vmem:[#allocation11 + $0x78] sm:$0xff]  ;;  %v1530_v46 = vld [vmem:[#allocation8 + $0x88] sm:$0xff] }
 0x216   : > { %5514 = vmatprep.subr.bf16.mxu0 %v5513_v30  ;;  %v5589_v20 = vpack.c.bf16 %v1018_v19, %v1017_v18  ;;  %v1529_v45 = vld [vmem:[#allocation8 + $0x80] sm:$0xff]  ;;  %v1539_v62 = vld [vmem:[#allocation8 + $0xd0] sm:$0xff]  ;;  %v1540_v63 = vld [vmem:[#allocation8 + $0xd8] sm:$0xff] }
 0x217   : > { %v1541_v1 = vld [vmem:[#allocation8 + $0xe0] sm:$0xff]  ;;  %v1543_v4 = vld [vmem:[#allocation8 + $0xf0] sm:$0xff] }
 0x218   : > { %5548 = vmatpush3.bf16.msra.mxu1 %v5545_v29  ;;  %v1429_v9 = vld [vmem:[#allocation5 + $0x80] sm:$0xff]  ;;  %v1430_v10 = vld [vmem:[#allocation5 + $0x88] sm:$0xff]  ;;  %v1432_v15 = vld [vmem:[#allocation5 + $0x98] sm:$0xff] }
 0x219   : > { %5516 = vmatpush3.bf16.msra.mxu0 %v5513_v30  ;;  %5550 = vmatprep.subr.bf16.mxu1 %v5549_v35  ;;  %v5593_v13 = vpack.c.bf16 %v1430_v10, %v1429_v9  ;;  %v1433_v19 = vld [vmem:[#allocation5 + $0xa0] sm:$0xff] }
 0x21a   : > { %5518 = vmatprep.subr.bf16.mxu0 %v5517_v36  ;;  %v4396_v9 = vld [vmem:[#allocation7 + $0x1] ss:$0 sm:$0xff] }
 0x21c   : > { %5552 = vmatpush3.bf16.msra.mxu1 %v5549_v35 }
 0x21d   : > { %5520 = vmatpush3.bf16.msra.mxu0 %v5517_v36  ;;  %5554 = vmatprep.subr.bf16.mxu1 %v5553_v41 }
 0x21e   : > { %5522 = vmatprep.subr.bf16.mxu0 %v5521_v42 }
 0x220   : > { %5556 = vmatpush3.bf16.msra.mxu1 %v5553_v41  ;;  %v4393_v41 = vld [vmem:[#allocation13] ss:$0 sm:$0xff] }
 0x221   : > { %5524 = vmatpush3.bf16.msra.mxu0 %v5521_v42  ;;  %5558 = vmatprep.subr.bf16.mxu1 %v5557_v47 }
 0x222   : > { %5526 = vmatprep.subr.bf16.mxu0 %v5525_v48 }
 0x224   : > { %5560 = vmatpush3.bf16.msra.mxu1 %v5557_v47  ;;  %v5625_v47 = vpack.c.bf16 %v1530_v46, %v1529_v45  ;;  %v1634_v45 = vld [vmem:[#allocation11 + $0xa8] sm:$0xff] }
 0x225   : > { %5528 = vmatpush3.bf16.msra.mxu0 %v5525_v48  ;;  %4892 = vmatprep.subr.mxu1 %v6979_v50  ;;  %v1531_v48 = vld [vmem:[#allocation8 + $0x90] sm:$0xff] }
 0x226   : > { %5562 = vmatprep.subr.bf16.mxu0 %v5561_v0 }
 0x227   : > { %4855 = vmatmul.mubr.f32.vlgmr.msra.gmra.mrb[0].mxu1 %v7599_v49 }
 0x228   : > { %4820 = vmatmul.mubr.f32.vlgmr.msra.gmra.mrb[0].mxu0 %v7599_v49  ;;  %4894 = vmatprep.mubr.msk.f32.mxu1 %vm6980_vm0, %v6979_v50 }
 0x229   : > { %4889 = vmatprep.mubr.f32.mxu0 %v7594_v26  ;;  %5564 = vmatpush3.bf16.msra.mxu0 %v5561_v0  ;;  %v5645_v0 = vpack.c.bf16 %v1540_v63, %v1539_v62  ;;  %v1644_v62 = vld [vmem:[#allocation11 + $0xf8] sm:$0xff] }
 0x22a   : > { %5566 = vmatprep.subr.bf16.mxu0 %v5565_v2 }
 0x22d   : > { %5568 = vmatpush3.bf16.msra.mxu0 %v5565_v2  ;;  %v1542_v2 = vld [vmem:[#allocation8 + $0xe8] sm:$0xff] }
 0x22e   : > { %5570 = vmatprep.subr.bf16.mxu0 %v5569_v5  ;;  %v5649_v3 = vpack.c.bf16 %v1542_v2, %v1541_v1 }
 0x231   : > { %5572 = vmatpush3.bf16.msra.mxu0 %v5569_v5  ;;  %v1544_v5 = vld [vmem:[#allocation8 + $0xf8] sm:$0xff] }
 0x232   : > { %5574 = vmatprep.subr.bf16.mxu0 %v5573_v8  ;;  %v5653_v6 = vpack.c.bf16 %v1544_v5, %v1543_v4 }
 0x235   : > { %5576 = vmatpush3.bf16.msra.mxu0 %v5573_v8 }
 0x236   : > { %5578 = vmatprep.subr.bf16.mxu0 %v5577_v11 }
 0x239   : > { %5580 = vmatpush3.bf16.msra.mxu0 %v5577_v11 }
 0x23a   : > { %5582 = vmatprep.subr.bf16.mxu0 %v5581_v14 }
 0x23d   : > { %5584 = vmatpush3.bf16.msra.mxu0 %v5581_v14  ;;  %v1431_v14 = vld [vmem:[#allocation5 + $0x90] sm:$0xff] }
 0x23e   : > { %5586 = vmatprep.subr.bf16.mxu0 %v5585_v17  ;;  %v5597_v18 = vpack.c.bf16 %v1432_v15, %v1431_v14  ;;  %v4398_v14 = vld [vmem:[#allocation13 + $0x1] ss:$0 sm:$0xff] }
 0x241   : > { %5588 = vmatpush3.bf16.msra.mxu0 %v5585_v17 }
 0x242   : > { %5590 = vmatprep.subr.bf16.mxu0 %v5589_v20 }
 0x245   : > { %5592 = vmatpush3.bf16.msra.mxu0 %v5589_v20  ;;  %v1434_v20 = vld [vmem:[#allocation5 + $0xa8] sm:$0xff] }
 0x246   : > { %5626 = vmatprep.subr.bf16.mxu0 %v5625_v47 }
 0x248   : > { %4890 = vmatmul.mubr.f32.vlgmr.msra.gmra.mrb[2].mxu0 %v7599_v49 }
 0x249   : > { %4979 = vmatprep.mubr.f32.mxu0 %v7594_v26  ;;  %5628 = vmatpush3.bf16.msra.mxu0 %v5625_v47  ;;  %v1635_v47 = vld [vmem:[#allocation11 + $0xb0] sm:$0xff] }
 0x2fa   : > { %v4856_v52 = vpop.f32.mrb[0].mxu1 }
 0x2fb   : > { %v994_v54 = vpop.f32.mrb[1].mxu1  ;;  %v4821_v55 = vpop.f32.mrb[0].mxu0  ;;  %v1000_v59 = vadd.f32 %v4856_v52, %v4392_v51 }
 0x2fc   : > { %v995_v56 = vadd.f32 %v4392_v51, %v994_v54  ;;  %v896_v57 = vpop.f32.mrb[1].mxu0  ;;  %v902_v60 = vadd.f32 %v4821_v55, %v4391_v53  ;;  %v1532_v51 = vld [vmem:[#allocation8 + $0x98] sm:$0xff]  ;;  %v1534_v54 = vld [vmem:[#allocation8 + $0xa8] sm:$0xff] }
 0x2fd   : > { %v897_v58 = vadd.f32 %v4391_v53, %v896_v57  ;;  %v5629_v52 = vpack.c.bf16 %v1532_v51, %v1531_v48  ;;  %v1533_v53 = vld [vmem:[#allocation8 + $0xa0] sm:$0xff]  ;;  %v1536_v57 = vld [vmem:[#allocation8 + $0xb8] sm:$0xff] }
 0x2fe   : > { %4893 = vmatpush3.xpose.msra.mxu1 %v995_v56  ;;  %v5633_v55 = vpack.c.bf16 %v1534_v54, %v1533_v53  ;;  %v1535_v56 = vld [vmem:[#allocation8 + $0xb0] sm:$0xff]  ;;  %v1636_v48 = vld [vmem:[#allocation11 + $0xb8] sm:$0xff]  ;;  %v1637_v51 = vld [vmem:[#allocation11 + $0xc0] sm:$0xff] }
 0x2ff   : > { %4897 = vmatprep.subr.mxu1 %v6979_v50  ;;  %5630 = vmatprep.subr.bf16.mxu0 %v5629_v52  ;;  %v1638_v53 = vld [vmem:[#allocation11 + $0xc8] sm:$0xff] }
 0x300   : > { %5632 = vmatpush3.bf16.msra.mxu0 %v5629_v52  ;;  %v5669_v52 = vpack.c.bf16 %v1636_v48, %v1635_v47  ;;  %v5673_v54 = vpack.c.bf16 %v1638_v53, %v1637_v51  ;;  %v2045_v47 = vld [vmem:[#allocation14 + $0xb0] sm:$0xff]  ;;  %v2046_v48 = vld [vmem:[#allocation14 + $0xb8] sm:$0xff]  ;;  %v2048_v53 = vld [vmem:[#allocation14 + $0xc8] sm:$0xff] }
 0x301   : > { %4895 = vmatmul.mubr.f32.vlgmr.msra.gmra.mrb[2].mxu1 %v897_v58  ;;  %5634 = vmatprep.subr.bf16.mxu0 %v5633_v55  ;;  %v5637_v58 = vpack.c.bf16 %v1536_v57, %v1535_v56  ;;  %v1640_v56 = vld [vmem:[#allocation11 + $0xd8] sm:$0xff]  ;;  %v5701_v51 = vpack.c.bf16 %v2046_v48, %v2045_v47 }
 0x302   : > { %4898 = vmatpush3.xpose.msra.mxu1 %v1000_v59  ;;  %4899 = vmatprep.mubr.msk.f32.mxu1 %vm6980_vm0, %v6979_v50  ;;  %v1537_v59 = vld [vmem:[#allocation8 + $0xc0] sm:$0xff] }
 0x303   : > { %4902 = vmatprep.subr.mxu1 %v6979_v50  ;;  %v2318_v48 = vld [vmem:[#allocation8 + $0x160] sm:$0xff] }
 0x304   : > { %5636 = vmatpush3.bf16.msra.mxu0 %v5633_v55  ;;  %v1639_v55 = vld [vmem:[#allocation11 + $0xd0] sm:$0xff] }
 0x305   : > { %4900 = vmatmul.mubr.f32.vlgmr.msra.gmra.mrb[4].mxu1 %v902_v60  ;;  %5638 = vmatprep.subr.bf16.mxu0 %v5637_v58  ;;  %v1538_v60 = vld [vmem:[#allocation8 + $0xc8] sm:$0xff]  ;;  %v5677_v57 = vpack.c.bf16 %v1640_v56, %v1639_v55  ;;  %v2049_v55 = vld [vmem:[#allocation14 + $0xd0] sm:$0xff]  ;;  %v2050_v56 = vld [vmem:[#allocation14 + $0xd8] sm:$0xff] }
 0x306   : > { %4904 = vmatprep.mubr.msk.f32.mxu1 %vm6980_vm0, %v6979_v50  ;;  %v5641_v61 = vpack.c.bf16 %v1538_v60, %v1537_v59  ;;  %v1642_v59 = vld [vmem:[#allocation11 + $0xe8] sm:$0xff] }
 0x308   : > { %5640 = vmatpush3.bf16.msra.mxu0 %v5637_v58  ;;  %v1641_v58 = vld [vmem:[#allocation11 + $0xe0] sm:$0xff] }
 0x309   : > { %5642 = vmatprep.subr.bf16.mxu0 %v5641_v61  ;;  %v5681_v60 = vpack.c.bf16 %v1642_v59, %v1641_v58  ;;  %v2051_v58 = vld [vmem:[#allocation14 + $0xe0] sm:$0xff]  ;;  %v2052_v59 = vld [vmem:[#allocation14 + $0xe8] sm:$0xff] }
 0x30c   : > { %5644 = vmatpush3.bf16.msra.mxu0 %v5641_v61  ;;  %v1643_v61 = vld [vmem:[#allocation11 + $0xf0] sm:$0xff] }
 0x30d   : > { %5646 = vmatprep.subr.bf16.mxu0 %v5645_v0  ;;  %v5685_v63 = vpack.c.bf16 %v1644_v62, %v1643_v61 }
 0x310   : > { %5648 = vmatpush3.bf16.msra.mxu0 %v5645_v0  ;;  %v4397_v0 = vld [vmem:[#allocation10 + $0x1] ss:$0 sm:$0xff] }
 0x311   : > { %5650 = vmatprep.subr.bf16.mxu0 %v5649_v3 }
 0x314   : > { %5652 = vmatpush3.bf16.msra.mxu0 %v5649_v3 }
 0x315   : > { %5654 = vmatprep.subr.bf16.mxu0 %v5653_v6 }
 0x318   : > { %5656 = vmatpush3.bf16.msra.mxu0 %v5653_v6 }
 0x31b   : > { %v4891_v40 = vpop.f32.mrb[2].mxu0  ;;  %4980 = vmatmul.mubr.f32.vlgmr.msra.gmra.mrb[4].mxu0 %v7599_v49 }
 0x31c   : > { %v1092_v42 = vpop.f32.mrb[3].mxu0  ;;  %v1098_v43 = vadd.f32 %v4891_v40, %v4393_v41 }
 0x31d   : > { %v1093_v44 = vadd.f32 %v4393_v41, %v1092_v42  ;;  %v1631_v41 = vld [vmem:[#allocation11 + $0x90] sm:$0xff]  ;;  %v1632_v42 = vld [vmem:[#allocation11 + $0x98] sm:$0xff] }
 0x31f   : > { %4903 = vmatpush3.msra.mxu1 %v1093_v44  ;;  %v1633_v44 = vld [vmem:[#allocation11 + $0xa0] sm:$0xff] }
 0x320   : > { %4907 = vmatprep.subr.mxu1 %v6979_v50  ;;  %v5665_v46 = vpack.c.bf16 %v1634_v45, %v1633_v44  ;;  %v2043_v44 = vld [vmem:[#allocation14 + $0xa0] sm:$0xff]  ;;  %v2044_v45 = vld [vmem:[#allocation14 + $0xa8] sm:$0xff] }
 0x3d4   : > { %v1167_v21 = vpop.f32.mrb[2].mxu1 }
 0x3d5   : > { %v1241_v22 = vmul.f32 0.35355338, %v1167_v21  ;;  %v4896_v23 = vpop.f32.mrb[3].mxu1  ;;  %v5601_v21 = vpack.c.bf16 %v1434_v20, %v1433_v19 }
 0x3d6   : > { %v1436_v23 = vld [vmem:[#allocation5 + $0xb8] sm:$0xff] }
 0x3d7   : > { %v1244_v24 = vsel %vm1243_vm1, %v1241_v22, -inf }
 0x3d8   : > { %1245 = vmax.xlane.f32.xlu0 %v1244_v24  ;;  %v1237_v25 = vpop.f32.mrb[4].mxu1 }
 0x3d9   : > { %v1242_v27 = vmul.f32 0.35355338, %v1237_v25  ;;  %v4901_v28 = vpop.f32.mrb[5].mxu1  ;;  %v1437_v25 = vld [vmem:[#allocation5 + $0xc0] sm:$0xff] }
 0x3db   : > { %v1247_v29 = vsel %vm1243_vm1, %v1242_v27, -inf }
 0x3dc   : > { %1248 = vmax.xlane.f32.xlu0 %v1247_v29  ;;  %v1439_v29 = vld [vmem:[#allocation5 + $0xd0] sm:$0xff] }
 0x3ee   : > { %v4981_v1 = vpop.f32.mrb[4].mxu0 }
 0x3ef   : > { %v1625_v2 = vadd.f32 %v4981_v1, %v4397_v0  ;;  %v1619_v3 = vpop.f32.mrb[5].mxu0 }
 0x3f0   : > { %v1620_v4 = vadd.f32 %v4397_v0, %v1619_v3  ;;  %v2207_v0 = vld [vmem:[#allocation5 + $0x108] sm:$0xff] }
 0x465   : > { %v1246_v30 = vpop.xlane.xlu0 %1245 }
 0x466   : > { %v1250_v31 = vsub.f32 %v1241_v22, %v1246_v30  ;;  %v1435_v22 = vld [vmem:[#allocation5 + $0xb0] sm:$0xff]  ;;  %v1440_v30 = vld [vmem:[#allocation5 + $0xd8] sm:$0xff] }
 0x467   : > { %v5605_v24 = vpack.c.bf16 %v1436_v23, %v1435_v22 }
 0x468   : > { %v1252_v32 = vmul.f32 1.442695, %v1250_v31  ;;  %v5613_v31 = vpack.c.bf16 %v1440_v30, %v1439_v29 }
 0x469   : > { %v1249_v33 = vpop.xlane.xlu0 %1248 }
 0x46a   : > { %6313 = vpow2.f32 %v1252_v32  ;;  %v1251_v34 = vsub.f32 %v1242_v27, %v1249_v33  ;;  %v1438_v27 = vld [vmem:[#allocation5 + $0xc8] sm:$0xff]  ;;  %v1441_v32 = vld [vmem:[#allocation5 + $0xe0] sm:$0xff] }
 0x46b   : > { %v5609_v28 = vpack.c.bf16 %v1438_v27, %v1437_v25  ;;  %v1442_v33 = vld [vmem:[#allocation5 + $0xe8] sm:$0xff] }
 0x46c   : > { %v1254_v35 = vmul.f32 1.442695, %v1251_v34  ;;  %v5617_v34 = vpack.c.bf16 %v1442_v33, %v1441_v32 }
 0x46e   : > { %6315 = vpow2.f32 %v1254_v35  ;;  %v1443_v35 = vld [vmem:[#allocation5 + $0xf0] sm:$0xff] }
 0x474   : > { %v6314_v36 = vpop.eup %6313 }
 0x475   : > { %v1256_v37 = vsel %vm1243_vm1, %v6314_v36, 0.0 }
 0x476   : > { %1257 = vadd.xlane.f32.xlu1 %v1256_v37 }
 0x478   : > { %v7618_v38 = vpop.eup %6315 }
 0x479   : > { %v1259_v39 = vsel %vm1243_vm1, %v7618_v38, 0.0 }
 0x47a   : > { %1260 = vadd.xlane.f32.xlu1 %v1259_v39  ;;  %v1630_v39 = vld [vmem:[#allocation11 + $0x88] sm:$0xff] }
 0x503   : > { %v1258_v7 = vpop.xlane.xlu1 %1257 }
 0x504   : > { %6317 = vrcp.f32 %v1258_v7 }
 0x507   : > { %v1261_v8 = vpop.xlane.xlu1 %1260 }
 0x508   : > { %6319 = vrcp.f32 %v1261_v8 }
 0x50e   : > { %v6318_v11 = vpop.eup %6317 }
 0x50f   : > { %v1264_v12 = vmul.f32 %v6318_v11, %v6314_v36  ;;  %v1444_v36 = vld [vmem:[#allocation5 + $0xf8] sm:$0xff] }
 0x510   : > { %v5621_v37 = vpack.c.bf16 %v1444_v36, %v1443_v35 }
 0x511   : > { %4905 = vmatmul.mubr.msk.f32.vlgmr.msra.gmra.mrb[6].mxu1 %vm1243_vm1, %v1264_v12 }
 0x512   : > { %v6320_v16 = vpop.eup %6319  ;;  %4908 = vmatpush3.msra.mxu1 %v1098_v43  ;;  %4909 = vmatprep.mubr.msk.f32.mxu1 %vm6980_vm0, %v6979_v50  ;;  %v5661_v43 = vpack.c.bf16 %v1632_v42, %v1631_v41  ;;  %v2042_v42 = vld [vmem:[#allocation14 + $0x98] sm:$0xff] }
 0x513   : > { %v1265_v17 = vmul.f32 %v6320_v16, %v7618_v38  ;;  %5594 = vmatprep.subr.bf16.mxu1 %v5593_v13  ;;  %v1629_v38 = vld [vmem:[#allocation11 + $0x80] sm:$0xff] }
 0x514   : > { %v5657_v40 = vpack.c.bf16 %v1630_v39, %v1629_v38  ;;  %v2039_v38 = vld [vmem:[#allocation14 + $0x80] sm:$0xff]  ;;  %v2040_v39 = vld [vmem:[#allocation14 + $0x88] sm:$0xff] }
 0x515   : > { %4910 = vmatmul.mubr.msk.f32.vlgmr.msra.gmra.mrb[8].mxu1 %vm1243_vm1, %v1265_v17  ;;  %v5689_v41 = vpack.c.bf16 %v2040_v39, %v2039_v38  ;;  %v2312_v39 = vld [vmem:[#allocation8 + $0x130] sm:$0xff] }
 0x516   : > { %5596 = vmatpush3.bf16.msra.mxu1 %v5593_v13  ;;  %4944 = vmatprep.mubr.f32.mxu1 %v7594_v26 }
 0x517   : > { %5598 = vmatprep.subr.bf16.mxu1 %v5597_v18  ;;  %5690 = vmatprep.subr.bf16.mxu0 %v5689_v41 }
 0x518   : > { %5692 = vmatpush3.bf16.msra.mxu0 %v5689_v41 }
 0x51a   : > { %5600 = vmatpush3.bf16.msra.mxu1 %v5597_v18 }
 0x51b   : > { %5602 = vmatprep.subr.bf16.mxu1 %v5601_v21 }
 0x51e   : > { %5604 = vmatpush3.bf16.msra.mxu1 %v5601_v21 }
 0x51f   : > { %5606 = vmatprep.subr.bf16.mxu1 %v5605_v24 }
 0x522   : > { %5608 = vmatpush3.bf16.msra.mxu1 %v5605_v24 }
 0x523   : > { %5610 = vmatprep.subr.bf16.mxu1 %v5609_v28 }
 0x526   : > { %5612 = vmatpush3.bf16.msra.mxu1 %v5609_v28 }
 0x527   : > { %5614 = vmatprep.subr.bf16.mxu1 %v5613_v31 }
 0x52a   : > { %5616 = vmatpush3.bf16.msra.mxu1 %v5613_v31 }
 0x52b   : > { %5618 = vmatprep.subr.bf16.mxu1 %v5617_v34 }
 0x52e   : > { %5620 = vmatpush3.bf16.msra.mxu1 %v5617_v34 }
 0x52f   : > { %5622 = vmatprep.subr.bf16.mxu1 %v5621_v37 }
 0x532   : > { %5624 = vmatpush3.bf16.msra.mxu1 %v5621_v37 }
 0x533   : > { %5658 = vmatprep.subr.bf16.mxu1 %v5657_v40 }
 0x535   : > { %4945 = vmatmul.mubr.f32.vlgmr.msra.gmra.mrb[10].mxu1 %v7599_v49 }
 0x536   : > { %5660 = vmatpush3.bf16.msra.mxu1 %v5657_v40  ;;  %5014 = vmatprep.mubr.f32.mxu1 %v7594_v26  ;;  %v2041_v40 = vld [vmem:[#allocation14 + $0x90] sm:$0xff] }
 0x537   : > { %5662 = vmatprep.subr.bf16.mxu1 %v5661_v43 }
 0x53a   : > { %5664 = vmatpush3.bf16.msra.mxu1 %v5661_v43  ;;  %v5693_v43 = vpack.c.bf16 %v2042_v42, %v2041_v40  ;;  %v2313_v40 = vld [vmem:[#allocation8 + $0x138] sm:$0xff]  ;;  %v2314_v42 = vld [vmem:[#allocation8 + $0x140] sm:$0xff] }
 0x53b   : > { %5666 = vmatprep.subr.bf16.mxu1 %v5665_v46  ;;  %v5797_v41 = vpack.c.bf16 %v2313_v40, %v2312_v39  ;;  %v2410_v39 = vld [vmem:[#allocation11 + $0x120] sm:$0xff]  ;;  %v2411_v40 = vld [vmem:[#allocation11 + $0x128] sm:$0xff] }
 0x53c   : > { %5694 = vmatprep.subr.bf16.mxu0 %v5693_v43 }
 0x53d   : > { %5696 = vmatpush3.bf16.msra.mxu0 %v5693_v43  ;;  %v2315_v43 = vld [vmem:[#allocation8 + $0x148] sm:$0xff] }
 0x53e   : > { %5668 = vmatpush3.bf16.msra.mxu1 %v5665_v46  ;;  %v5697_v46 = vpack.c.bf16 %v2044_v45, %v2043_v44  ;;  %v5801_v44 = vpack.c.bf16 %v2315_v43, %v2314_v42  ;;  %v2316_v45 = vld [vmem:[#allocation8 + $0x150] sm:$0xff]  ;;  %v2413_v43 = vld [vmem:[#allocation11 + $0x138] sm:$0xff] }
 0x53f   : > { %5670 = vmatprep.subr.bf16.mxu1 %v5669_v52  ;;  %v2412_v42 = vld [vmem:[#allocation11 + $0x130] sm:$0xff] }
 0x540   : > { %5698 = vmatprep.subr.bf16.mxu0 %v5697_v46 }
 0x541   : > { %5700 = vmatpush3.bf16.msra.mxu0 %v5697_v46  ;;  %v2317_v46 = vld [vmem:[#allocation8 + $0x158] sm:$0xff] }
 0x542   : > { %5672 = vmatpush3.bf16.msra.mxu1 %v5669_v52  ;;  %v2047_v52 = vld [vmem:[#allocation14 + $0xc0] sm:$0xff]  ;;  %5702 = vmatprep.subr.bf16.mxu0 %v5701_v51  ;;  %v5805_v47 = vpack.c.bf16 %v2317_v46, %v2316_v45 }
 0x543   : > { %5674 = vmatprep.subr.bf16.mxu1 %v5673_v54  ;;  %v2414_v45 = vld [vmem:[#allocation11 + $0x140] sm:$0xff]  ;;  %v2415_v46 = vld [vmem:[#allocation11 + $0x148] sm:$0xff] }
 0x545   : > { %5704 = vmatpush3.bf16.msra.mxu0 %v5701_v51  ;;  %v2319_v51 = vld [vmem:[#allocation8 + $0x168] sm:$0xff] }
 0x546   : > { %5676 = vmatpush3.bf16.msra.mxu1 %v5673_v54  ;;  %v5705_v54 = vpack.c.bf16 %v2048_v53, %v2047_v52  ;;  %v2320_v52 = vld [vmem:[#allocation8 + $0x170] sm:$0xff]  ;;  %v2321_v53 = vld [vmem:[#allocation8 + $0x178] sm:$0xff] }
 0x547   : > { %5678 = vmatprep.subr.bf16.mxu1 %v5677_v57 }
 0x548   : > { %5706 = vmatprep.subr.bf16.mxu0 %v5705_v54 }
 0x549   : > { %5708 = vmatpush3.bf16.msra.mxu0 %v5705_v54  ;;  %v5813_v54 = vpack.c.bf16 %v2321_v53, %v2320_v52  ;;  %v2418_v52 = vld [vmem:[#allocation11 + $0x160] sm:$0xff]  ;;  %v2419_v53 = vld [vmem:[#allocation11 + $0x168] sm:$0xff] }
 0x54a   : > { %5680 = vmatpush3.bf16.msra.mxu1 %v5677_v57  ;;  %v5709_v57 = vpack.c.bf16 %v2050_v56, %v2049_v55  ;;  %v2053_v55 = vld [vmem:[#allocation14 + $0xf0] sm:$0xff]  ;;  %v2054_v56 = vld [vmem:[#allocation14 + $0xf8] sm:$0xff] }
 0x54b   : > { %5682 = vmatprep.subr.bf16.mxu1 %v5681_v60 }
 0x54c   : > { %5710 = vmatprep.subr.bf16.mxu0 %v5709_v57 }
 0x54d   : > { %5712 = vmatpush3.bf16.msra.mxu0 %v5709_v57  ;;  %v5717_v57 = vpack.c.bf16 %v2054_v56, %v2053_v55  ;;  %v2420_v55 = vld [vmem:[#allocation11 + $0x170] sm:$0xff]  ;;  %v2421_v56 = vld [vmem:[#allocation11 + $0x178] sm:$0xff] }
 0x54e   : > { %5684 = vmatpush3.bf16.msra.mxu1 %v5681_v60  ;;  %v5713_v60 = vpack.c.bf16 %v2052_v59, %v2051_v58  ;;  %v1412_v58 = vld [vmem:[#allocation14] sm:$0xff]  ;;  %v1413_v59 = vld [vmem:[#allocation14 + $0x8] sm:$0xff] }
 0x54f   : > { %5686 = vmatprep.subr.bf16.mxu1 %v5685_v63 }
 0x550   : > { %5714 = vmatprep.subr.bf16.mxu0 %v5713_v60 }
 0x551   : > { %5716 = vmatpush3.bf16.msra.mxu0 %v5713_v60  ;;  %v5721_v60 = vpack.c.bf16 %v1413_v59, %v1412_v58  ;;  %v7678_v58 = vld [vmem:[%s7555_s6 + $0x8] sm:$0xff] }
 0x552   : > { %5688 = vmatpush3.bf16.msra.mxu1 %v5685_v63  ;;  %v2206_v63 = vld [vmem:[#allocation5 + $0x100] sm:$0xff]  ;;  %5718 = vmatprep.subr.bf16.mxu0 %v5717_v57 }
 0x553   : > { %5017 = vmatprep.subr.mxu1 %v6979_v50  ;;  %v5753_v3 = vpack.c.bf16 %v2207_v0, %v2206_v63  ;;  %v1415_v63 = vld [vmem:[#allocation14 + $0x18] sm:$0xff] }
 0x555   : > { %5015 = vmatmul.mubr.f32.vlgmr.msra.gmra.mrb[12].mxu1 %v7599_v49  ;;  %5720 = vmatpush3.bf16.msra.mxu0 %v5717_v57  ;;  %v5845_v57 = vpack.c.bf16 %v2421_v56, %v2420_v55  ;;  %v2916_v56 = vld [vmem:[#allocation5 + $0x1b0] sm:$0xff] }
 0x556   : > { %5019 = vmatprep.mubr.msk.f32.mxu1 %vm6980_vm0, %v6979_v50  ;;  %5722 = vmatprep.subr.bf16.mxu0 %v5721_v60 }
 0x55b   : > { %5018 = vmatpush3.xpose.msra.mxu1 %v1620_v4  ;;  %v2208_v4 = vld [vmem:[#allocation5 + $0x110] sm:$0xff] }
 0x55c   : > { %5022 = vmatprep.subr.mxu1 %v6979_v50 }
 0x5e4   : > { %v7637_v5 = vpop.f32.mrb[6].mxu1 }
 0x5e5   : > { %v4906_v6 = vpop.f32.mrb[7].mxu1 }
 0x5e6   : > { %v2209_v6 = vld [vmem:[#allocation5 + $0x118] sm:$0xff] }
 0x5e8   : > { %v7639_v7 = vpop.f32.mrb[8].mxu1 }
 0x5e9   : > { %v4911_v8 = vpop.f32.mrb[9].mxu1 }
 0x608   : > { %v4946_v10 = vpop.f32.mrb[10].mxu1 }
 0x609   : > { %v1519_v11 = vpop.f32.mrb[11].mxu1  ;;  %v1525_v13 = vadd.f32 %v4946_v10, %v4396_v9  ;;  %v5757_v10 = vpack.c.bf16 %v2209_v6, %v2208_v4 }
 0x60a   : > { %v1520_v12 = vadd.f32 %v4396_v9, %v1519_v11  ;;  %v2210_v11 = vld [vmem:[#allocation5 + $0x120] sm:$0xff] }
 0x60c   : > { %5020 = vmatmul.mubr.f32.vlgmr.msra.gmra.mrb[14].mxu1 %v1520_v12  ;;  %v2211_v12 = vld [vmem:[#allocation5 + $0x128] sm:$0xff] }
 0x60d   : > { %5023 = vmatpush3.xpose.msra.mxu1 %v1625_v2  ;;  %5024 = vmatprep.mubr.msk.f32.mxu1 %vm6980_vm0, %v6979_v50 }
 0x60e   : > { %5027 = vmatprep.subr.mxu1 %v6979_v50 }
 0x610   : > { %5025 = vmatmul.mubr.f32.vlgmr.msra.gmra.mrb[16].mxu1 %v1525_v13  ;;  %v5761_v13 = vpack.c.bf16 %v2211_v12, %v2210_v11  ;;  %v1420_v11 = vld [vmem:[#allocation14 + $0x40] sm:$0xff]  ;;  %v1421_v12 = vld [vmem:[#allocation14 + $0x48] sm:$0xff] }
 0x611   : > { %5029 = vmatprep.mubr.msk.f32.mxu1 %vm6980_vm0, %v6979_v50 }
 0x628   : > { %v5016_v15 = vpop.f32.mrb[12].mxu1 }
 0x629   : > { %v7646_v16 = vadd.f32 %v5016_v15, %v4398_v14  ;;  %v1719_v17 = vpop.f32.mrb[13].mxu1  ;;  %v2213_v15 = vld [vmem:[#allocation5 + $0x138] sm:$0xff] }
 0x62a   : > { %v1720_v18 = vadd.f32 %v4398_v14, %v1719_v17  ;;  %v2212_v14 = vld [vmem:[#allocation5 + $0x130] sm:$0xff]  ;;  %v2214_v17 = vld [vmem:[#allocation5 + $0x140] sm:$0xff] }
 0x62c   : > { %5028 = vmatpush3.msra.mxu1 %v1720_v18  ;;  %v2215_v18 = vld [vmem:[#allocation5 + $0x148] sm:$0xff] }
 0x62d   : > { %5032 = vmatprep.subr.mxu1 %v6979_v50 }
 0x6df   : > { %v1794_v19 = vpop.f32.mrb[14].mxu1 }
 0x6e0   : > { %v1868_v20 = vmul.f32 0.35355338, %v1794_v19  ;;  %v5021_v21 = vpop.f32.mrb[15].mxu1  ;;  %v5769_v19 = vpack.c.bf16 %v2215_v18, %v2214_v17  ;;  %v1424_v17 = vld [vmem:[#allocation14 + $0x60] sm:$0xff] }
 0x6e1   : > { %v2217_v21 = vld [vmem:[#allocation5 + $0x158] sm:$0xff] }
 0x6e2   : > { %v1870_v22 = vsel %vm1243_vm1, %v1868_v20, -inf }
 0x6e3   : > { %1871 = vmax.xlane.f32.xlu0 %v1870_v22  ;;  %v1864_v23 = vpop.f32.mrb[16].mxu1 }
 0x6e4   : > { %v1869_v24 = vmul.f32 0.35355338, %v1864_v23  ;;  %v5026_v25 = vpop.f32.mrb[17].mxu1  ;;  %v2218_v23 = vld [vmem:[#allocation5 + $0x160] sm:$0xff] }
 0x6e6   : > { %v1873_v27 = vsel %vm1243_vm1, %v1869_v24, -inf }
 0x6e7   : > { %1874 = vmax.xlane.f32.xlu1 %v1873_v27  ;;  %v2220_v27 = vld [vmem:[#allocation5 + $0x170] sm:$0xff] }
 0x770   : > { %v1872_v28 = vpop.xlane.xlu0 %1871 }
 0x771   : > { %v1876_v29 = vsub.f32 %v1868_v20, %v1872_v28  ;;  %v2216_v20 = vld [vmem:[#allocation5 + $0x150] sm:$0xff]  ;;  %v2221_v28 = vld [vmem:[#allocation5 + $0x178] sm:$0xff] }
 0x772   : > { %v5773_v22 = vpack.c.bf16 %v2217_v21, %v2216_v20  ;;  %v1427_v20 = vld [vmem:[#allocation14 + $0x78] sm:$0xff] }
 0x773   : > { %v1878_v30 = vmul.f32 1.442695, %v1876_v29  ;;  %v5781_v29 = vpack.c.bf16 %v2221_v28, %v2220_v27 }
 0x774   : > { %v1875_v31 = vpop.xlane.xlu1 %1874 }
 0x775   : > { %6321 = vpow2.f32 %v1878_v30  ;;  %v1877_v32 = vsub.f32 %v1869_v24, %v1875_v31  ;;  %v2219_v24 = vld [vmem:[#allocation5 + $0x168] sm:$0xff] }
 0x776   : > { %v5777_v25 = vpack.c.bf16 %v2219_v24, %v2218_v23  ;;  %v2306_v30 = vld [vmem:[#allocation8 + $0x100] sm:$0xff]  ;;  %v2307_v31 = vld [vmem:[#allocation8 + $0x108] sm:$0xff] }
 0x777   : > { %v1880_v33 = vmul.f32 1.442695, %v1877_v32  ;;  %v5785_v32 = vpack.c.bf16 %v2307_v31, %v2306_v30  ;;  %v7668_v24 = vld [vmem:[%s7555_s6] sm:$0xff]  ;;  %s6847_s6 = scalar_lea.vmem %s6846_s28, 512 }
 0x778   : > { %p6849_p6 = scmp.lt.s32.totalorder %s6847_s6, %s6841_s30 }
 0x779   : > { %6323 = vpow2.f32 %v1880_v33  ;;  %v2308_v33 = vld [vmem:[#allocation8 + $0x110] sm:$0xff] }
 0x77a   : > { %p6850_p9 = por %p6849_p6, %p6848_p0 }
 0x77c   : > { %p6851_p7 = pnand %p6850_p9, %p6844_p12 }
 0x77f   : > { %v6322_v34 = vpop.eup %6321 }
 0x780   : > { %v1882_v35 = vsel %vm1243_vm1, %v6322_v34, 0.0 }
 0x781   : > { %1883 = vadd.xlane.f32.xlu0 %v1882_v35 }
 0x783   : > { %v6324_v36 = vpop.eup %6323 }
 0x784   : > { %v1885_v37 = vsel %vm1243_vm1, %v6324_v36, 0.0 }
 0x785   : > { %1886 = vadd.xlane.f32.xlu1 %v1885_v37  ;;  %v2311_v37 = vld [vmem:[#allocation8 + $0x128] sm:$0xff] }
 0x80e   : > { %v1884_v61 = vpop.xlane.xlu0 %1883 }
 0x80f   : > { %6325 = vrcp.f32 %v1884_v61 }
 0x812   : > { %v1887_v62 = vpop.xlane.xlu1 %1886 }
 0x813   : > { %6327 = vrcp.f32 %v1887_v62  ;;  %v1414_v62 = vld [vmem:[#allocation14 + $0x10] sm:$0xff] }
 0x819   : > { %v6326_v1 = vpop.eup %6325 }
 0x81a   : > { %v1890_v2 = vmul.f32 %v6326_v1, %v6322_v34  ;;  %v2309_v34 = vld [vmem:[#allocation8 + $0x118] sm:$0xff]  ;;  %v5725_v1 = vpack.c.bf16 %v1415_v63, %v1414_v62 }
 0x81b   : > { %v5789_v35 = vpack.c.bf16 %v2309_v34, %v2308_v33  ;;  %v2406_v33 = vld [vmem:[#allocation11 + $0x100] sm:$0xff]  ;;  %v2407_v34 = vld [vmem:[#allocation11 + $0x108] sm:$0xff] }
 0x81c   : > { %5030 = vmatmul.mubr.msk.f32.vlgmr.msra.gmra.mrb[18].mxu1 %vm1243_vm1, %v1890_v2 }
 0x81d   : > { %v6328_v8 = vpop.eup %6327  ;;  %5033 = vmatpush3.msra.mxu1 %v7646_v16  ;;  %5034 = vmatprep.mubr.msk.f32.mxu1 %vm6980_vm0, %v6979_v50  ;;  %v5765_v16 = vpack.c.bf16 %v2213_v15, %v2212_v14  ;;  %v1422_v14 = vld [vmem:[#allocation14 + $0x50] sm:$0xff]  ;;  %v1423_v15 = vld [vmem:[#allocation14 + $0x58] sm:$0xff] }
 0x81e   : > { %v1891_v9 = vmul.f32 %v6328_v8, %v6324_v36  ;;  %5754 = vmatprep.subr.bf16.mxu1 %v5753_v3  ;;  %v2310_v36 = vld [vmem:[#allocation8 + $0x120] sm:$0xff]  ;;  %v1418_v8 = vld [vmem:[#allocation14 + $0x30] sm:$0xff] }
 0x81f   : > { %v5793_v38 = vpack.c.bf16 %v2311_v37, %v2310_v36  ;;  %v5817_v36 = vpack.c.bf16 %v2407_v34, %v2406_v33  ;;  %v2409_v37 = vld [vmem:[#allocation11 + $0x118] sm:$0xff] }
 0x820   : > { %5035 = vmatmul.mubr.msk.f32.vlgmr.msra.gmra.mrb[20].mxu1 %vm1243_vm1, %v1891_v9  ;;  %v1419_v9 = vld [vmem:[#allocation14 + $0x38] sm:$0xff]  ;;  %v2826_v34 = vld [vmem:[#allocation14 + $0x150] sm:$0xff] }
 0x821   : > { %5756 = vmatpush3.bf16.msra.mxu1 %v5753_v3  ;;  %5139 = vmatprep.mubr.f32.mxu1 %v7594_v26  ;;  %v1417_v3 = vld [vmem:[#allocation14 + $0x28] sm:$0xff] }
 0x822   : > { %5758 = vmatprep.subr.bf16.mxu1 %v5757_v10 }
 0x825   : > { %5760 = vmatpush3.bf16.msra.mxu1 %v5757_v10  ;;  %v5733_v10 = vpack.c.bf16 %v1419_v9, %v1418_v8 }
 0x826   : > { %5762 = vmatprep.subr.bf16.mxu1 %v5761_v13 }
 0x829   : > { %5764 = vmatpush3.bf16.msra.mxu1 %v5761_v13  ;;  %v5737_v13 = vpack.c.bf16 %v1421_v12, %v1420_v11 }
 0x82a   : > { %5766 = vmatprep.subr.bf16.mxu1 %v5765_v16 }
 0x82d   : > { %5768 = vmatpush3.bf16.msra.mxu1 %v5765_v16  ;;  %v5741_v16 = vpack.c.bf16 %v1423_v15, %v1422_v14  ;;  %v4403_v15 = vld [vmem:[#allocation13 + $0x2] ss:$0 sm:$0xff] }
 0x82e   : > { %5770 = vmatprep.subr.bf16.mxu1 %v5769_v19 }
 0x831   : > { %5772 = vmatpush3.bf16.msra.mxu1 %v5769_v19  ;;  %v1426_v19 = vld [vmem:[#allocation14 + $0x70] sm:$0xff] }
 0x832   : > { %5774 = vmatprep.subr.bf16.mxu1 %v5773_v22  ;;  %v5749_v21 = vpack.c.bf16 %v1427_v20, %v1426_v19  ;;  %v2817_v19 = vld [vmem:[#allocation14 + $0x108] sm:$0xff]  ;;  %v2818_v20 = vld [vmem:[#allocation14 + $0x110] sm:$0xff] }
 0x835   : > { %5776 = vmatpush3.bf16.msra.mxu1 %v5773_v22 }
 0x836   : > { %5778 = vmatprep.subr.bf16.mxu1 %v5777_v25 }
 0x839   : > { %5780 = vmatpush3.bf16.msra.mxu1 %v5777_v25  ;;  %v4402_v25 = vld [vmem:[#allocation10 + $0x2] ss:$0 sm:$0xff] }
 0x83a   : > { %5782 = vmatprep.subr.bf16.mxu1 %v5781_v29 }
 0x83d   : > { %5784 = vmatpush3.bf16.msra.mxu1 %v5781_v29  ;;  %v4401_v29 = vld [vmem:[#allocation7 + $0x2] ss:$0 sm:$0xff] }
 0x83e   : > { %5786 = vmatprep.subr.bf16.mxu1 %v5785_v32 }
 0x840   : > { %5140 = vmatmul.mubr.f32.vlgmr.msra.gmra.mrb[22].mxu1 %v7599_v49 }
 0x841   : > { %5788 = vmatpush3.bf16.msra.mxu1 %v5785_v32  ;;  %5174 = vmatprep.mubr.f32.mxu1 %v7594_v26  ;;  %v5809_v26 = vpack.c.bf16 %v2319_v51, %v2318_v48  ;;  %v2416_v48 = vld [vmem:[#allocation11 + $0x150] sm:$0xff]  ;;  %v2417_v51 = vld [vmem:[#allocation11 + $0x158] sm:$0xff] }
 0x842   : > { %5790 = vmatprep.subr.bf16.mxu1 %v5789_v35 }
 0x845   : > { %5792 = vmatpush3.bf16.msra.mxu1 %v5789_v35  ;;  %v2408_v35 = vld [vmem:[#allocation11 + $0x110] sm:$0xff] }
 0x846   : > { %5794 = vmatprep.subr.bf16.mxu1 %v5793_v38 }
 0x849   : > { %5796 = vmatpush3.bf16.msra.mxu1 %v5793_v38  ;;  %v5821_v38 = vpack.c.bf16 %v2409_v37, %v2408_v35  ;;  %v2827_v35 = vld [vmem:[#allocation14 + $0x158] sm:$0xff]  ;;  %v2828_v37 = vld [vmem:[#allocation14 + $0x160] sm:$0xff] }
 0x84a   : > { %5798 = vmatprep.subr.bf16.mxu1 %v5797_v41 }
 0x84d   : > { %5800 = vmatpush3.bf16.msra.mxu1 %v5797_v41  ;;  %v5825_v41 = vpack.c.bf16 %v2411_v40, %v2410_v39 }
 0x84e   : > { %5802 = vmatprep.subr.bf16.mxu1 %v5801_v44 }
 0x851   : > { %5804 = vmatpush3.bf16.msra.mxu1 %v5801_v44  ;;  %v5829_v44 = vpack.c.bf16 %v2413_v43, %v2412_v42  ;;  %v2910_v42 = vld [vmem:[#allocation5 + $0x180] sm:$0xff]  ;;  %v2911_v43 = vld [vmem:[#allocation5 + $0x188] sm:$0xff] }
 0x852   : > { %5806 = vmatprep.subr.bf16.mxu1 %v5805_v47 }
 0x855   : > { %5808 = vmatpush3.bf16.msra.mxu1 %v5805_v47  ;;  %v5833_v47 = vpack.c.bf16 %v2415_v46, %v2414_v45  ;;  %v5881_v46 = vpack.c.bf16 %v2911_v43, %v2910_v42  ;;  %v4407_v42 = vld [vmem:[#allocation10 + $0x3] ss:$0 sm:$0xff] }
 0x856   : > { %5810 = vmatprep.subr.bf16.mxu1 %v5809_v26 }
 0x859   : > { %5812 = vmatpush3.bf16.msra.mxu1 %v5809_v26  ;;  %v5837_v26 = vpack.c.bf16 %v2417_v51, %v2416_v48  ;;  %v2913_v48 = vld [vmem:[#allocation5 + $0x198] sm:$0xff] }
 0x85a   : > { %5814 = vmatprep.subr.bf16.mxu1 %v5813_v54 }
 0x85d   : > { %5816 = vmatpush3.bf16.msra.mxu1 %v5813_v54  ;;  %v5841_v54 = vpack.c.bf16 %v2419_v53, %v2418_v52  ;;  %v2914_v53 = vld [vmem:[#allocation5 + $0x1a0] sm:$0xff] }
 0x85e   : > { %5212 = vmatprep.subr.mxu1 %v6979_v50 }
 0x860   : > { %5175 = vmatmul.mubr.f32.vlgmr.msra.gmra.mrb[24].mxu1 %v7599_v49  ;;  %v1416_v49 = vld [vmem:[#allocation14 + $0x20] sm:$0xff] }
 0x861   : > { %5214 = vmatprep.mubr.msk.f32.mxu1 %vm6980_vm0, %v6979_v50  ;;  %v5729_v6 = vpack.c.bf16 %v1417_v3, %v1416_v49 }
 0x8ef   : > { %v1961_v61 = vpop.f32.mrb[18].mxu1 }
 0x8f0   : > { %v5031_v0 = vpop.f32.mrb[19].mxu1  ;;  %5069 = vmatprep.mubr.f32.mxu0 %v1961_v61 }
 0x8f3   : > { %v2034_v2 = vpop.f32.mrb[20].mxu1 }
 0x8f4   : > { %v5036_v4 = vpop.f32.mrb[21].mxu1  ;;  %5070 = vmatmul.mubr.f32.vlgmr.msra.gmra.mrb[6].mxu0 %v2034_v2 }
 0x8f5   : > { %5724 = vmatpush3.bf16.msra.mxu0 %v5721_v60  ;;  %5104 = vmatprep.mubr.f32.mxu0 %v7637_v5  ;;  %v1425_v5 = vld [vmem:[#allocation14 + $0x68] sm:$0xff] }
 0x8f6   : > { %5726 = vmatprep.subr.bf16.mxu0 %v5725_v1  ;;  %v5745_v18 = vpack.c.bf16 %v1425_v5, %v1424_v17 }
 0x8f9   : > { %5728 = vmatpush3.bf16.msra.mxu0 %v5725_v1 }
 0x8fa   : > { %5730 = vmatprep.subr.bf16.mxu0 %v5729_v6 }
 0x8fd   : > { %5732 = vmatpush3.bf16.msra.mxu0 %v5729_v6 }
 0x8fe   : > { %5734 = vmatprep.subr.bf16.mxu0 %v5733_v10 }
 0x901   : > { %5736 = vmatpush3.bf16.msra.mxu0 %v5733_v10 }
 0x902   : > { %5738 = vmatprep.subr.bf16.mxu0 %v5737_v13 }
 0x905   : > { %5740 = vmatpush3.bf16.msra.mxu0 %v5737_v13 }
 0x906   : > { %5742 = vmatprep.subr.bf16.mxu0 %v5741_v16 }
 0x909   : > { %5744 = vmatpush3.bf16.msra.mxu0 %v5741_v16 }
 0x90a   : > { %5746 = vmatprep.subr.bf16.mxu0 %v5745_v18 }
 0x90d   : > { %5748 = vmatpush3.bf16.msra.mxu0 %v5745_v18  ;;  %v2816_v18 = vld [vmem:[#allocation14 + $0x100] sm:$0xff] }
 0x90e   : > { %5750 = vmatprep.subr.bf16.mxu0 %v5749_v21 }
 0x911   : > { %5752 = vmatpush3.bf16.msra.mxu0 %v5749_v21  ;;  %v5849_v21 = vpack.c.bf16 %v2817_v19, %v2816_v18  ;;  %v3017_v18 = vld [vmem:[#allocation8 + $0x1b8] sm:$0xff] }
 0x912   : > { %5818 = vmatprep.subr.bf16.mxu0 %v5817_v36 }
 0x913   : > { %v5141_v22 = vpop.f32.mrb[22].mxu1 }
 0x914   : > { %5105 = vmatmul.mubr.f32.vlgmr.msra.gmra.mrb[6].mxu0 %v7639_v7  ;;  %v2296_v23 = vpop.f32.mrb[23].mxu1  ;;  %v2302_v7 = vadd.f32 %v5141_v22, %v4401_v29  ;;  %v2819_v22 = vld [vmem:[#allocation14 + $0x118] sm:$0xff] }
 0x915   : > { %5209 = vmatprep.mubr.f32.mxu0 %v7668_v24  ;;  %v2297_v31 = vadd.f32 %v4401_v29, %v2296_v23  ;;  %5820 = vmatpush3.bf16.msra.mxu0 %v5817_v36  ;;  %v5853_v23 = vpack.c.bf16 %v2819_v22, %v2818_v20  ;;  %v2822_v29 = vld [vmem:[#allocation14 + $0x130] sm:$0xff]  ;;  %v5869_v36 = vpack.c.bf16 %v2827_v35, %v2826_v34  ;;  %v3018_v20 = vld [vmem:[#allocation8 + $0x1c0] sm:$0xff] }
 0x916   : > { %5822 = vmatprep.subr.bf16.mxu0 %v5821_v38  ;;  %v2831_v34 = vld [vmem:[#allocation14 + $0x178] sm:$0xff] }
 0x919   : > { %5824 = vmatpush3.bf16.msra.mxu0 %v5821_v38  ;;  %v2829_v38 = vld [vmem:[#allocation14 + $0x168] sm:$0xff] }
 0x91a   : > { %5826 = vmatprep.subr.bf16.mxu0 %v5825_v41  ;;  %v5873_v39 = vpack.c.bf16 %v2829_v38, %v2828_v37 }
 0x91d   : > { %5828 = vmatpush3.bf16.msra.mxu0 %v5825_v41 }
 0x91e   : > { %5830 = vmatprep.subr.bf16.mxu0 %v5829_v44 }
 0x921   : > { %5832 = vmatpush3.bf16.msra.mxu0 %v5829_v44 }
 0x922   : > { %5834 = vmatprep.subr.bf16.mxu0 %v5833_v47 }
 0x925   : > { %5836 = vmatpush3.bf16.msra.mxu0 %v5833_v47  ;;  %v2912_v47 = vld [vmem:[#allocation5 + $0x190] sm:$0xff] }
 0x926   : > { %5838 = vmatprep.subr.bf16.mxu0 %v5837_v26  ;;  %v5885_v52 = vpack.c.bf16 %v2913_v48, %v2912_v47 }
 0x929   : > { %5840 = vmatpush3.bf16.msra.mxu0 %v5837_v26 }
 0x92a   : > { %5842 = vmatprep.subr.bf16.mxu0 %v5841_v54 }
 0x92d   : > { %5844 = vmatpush3.bf16.msra.mxu0 %v5841_v54  ;;  %v2915_v54 = vld [vmem:[#allocation5 + $0x1a8] sm:$0xff] }
 0x92e   : > { %5846 = vmatprep.subr.bf16.mxu0 %v5845_v57  ;;  %v5889_v55 = vpack.c.bf16 %v2915_v54, %v2914_v53  ;;  %v3112_v53 = vld [vmem:[#allocation11 + $0x190] sm:$0xff] }
 0x931   : > { %5848 = vmatpush3.bf16.msra.mxu0 %v5845_v57  ;;  %v2917_v57 = vld [vmem:[#allocation5 + $0x1b8] sm:$0xff] }
 0x932   : > { %5850 = vmatprep.subr.bf16.mxu0 %v5849_v21 }
 0x933   : > { %v5176_v27 = vpop.f32.mrb[24].mxu1 }
 0x934   : > { %v2396_v28 = vpop.f32.mrb[25].mxu1  ;;  %v2402_v32 = vadd.f32 %v5176_v27, %v4402_v25  ;;  %5210 = vmatmul.mubr.f32.vlgmr.msra.gmra.mrb[8].mxu0 %v7678_v58  ;;  %v2821_v27 = vld [vmem:[#allocation14 + $0x128] sm:$0xff] }
 0x935   : > { %v2397_v30 = vadd.f32 %v4402_v25, %v2396_v28  ;;  %v2820_v25 = vld [vmem:[#allocation14 + $0x120] sm:$0xff]  ;;  %5852 = vmatpush3.bf16.msra.mxu0 %v5849_v21 }
 0x936   : > { %5854 = vmatprep.subr.bf16.mxu0 %v5853_v23  ;;  %v5857_v28 = vpack.c.bf16 %v2821_v27, %v2820_v25  ;;  %v3019_v21 = vld [vmem:[#allocation8 + $0x1c8] sm:$0xff]  ;;  %v3021_v25 = vld [vmem:[#allocation8 + $0x1d8] sm:$0xff] }
 0x937   : > { %5213 = vmatpush3.xpose.msra.mxu1 %v2397_v30  ;;  %v2823_v30 = vld [vmem:[#allocation14 + $0x138] sm:$0xff]  ;;  %v5929_v22 = vpack.c.bf16 %v3019_v21, %v3018_v20 }
 0x938   : > { %5217 = vmatprep.subr.mxu1 %v6979_v50 }
 0x939   : > { %5856 = vmatpush3.bf16.msra.mxu0 %v5853_v23  ;;  %v3020_v23 = vld [vmem:[#allocation8 + $0x1d0] sm:$0xff] }
 0x93a   : > { %5215 = vmatmul.mubr.f32.vlgmr.msra.gmra.mrb[26].mxu1 %v2297_v31  ;;  %5858 = vmatprep.subr.bf16.mxu0 %v5857_v28  ;;  %v5861_v31 = vpack.c.bf16 %v2823_v30, %v2822_v29  ;;  %v5933_v27 = vpack.c.bf16 %v3021_v25, %v3020_v23  ;;  %v3023_v29 = vld [vmem:[#allocation8 + $0x1e8] sm:$0xff] }
 0x93b   : > { %5218 = vmatpush3.xpose.msra.mxu1 %v2402_v32  ;;  %5219 = vmatprep.mubr.msk.f32.mxu1 %vm6980_vm0, %v6979_v50  ;;  %v2824_v32 = vld [vmem:[#allocation14 + $0x140] sm:$0xff] }
 0x93c   : > { %5222 = vmatprep.subr.mxu1 %v6979_v50 }
 0x93d   : > { %5860 = vmatpush3.bf16.msra.mxu0 %v5857_v28  ;;  %v3022_v28 = vld [vmem:[#allocation8 + $0x1e0] sm:$0xff] }
 0x93e   : > { %5220 = vmatmul.mubr.f32.vlgmr.msra.gmra.mrb[28].mxu1 %v2302_v7  ;;  %v2825_v7 = vld [vmem:[#allocation14 + $0x148] sm:$0xff]  ;;  %5862 = vmatprep.subr.bf16.mxu0 %v5861_v31  ;;  %v5937_v30 = vpack.c.bf16 %v3023_v29, %v3022_v28 }
 0x93f   : > { %5224 = vmatprep.mubr.msk.f32.mxu1 %vm6980_vm0, %v6979_v50  ;;  %v5865_v33 = vpack.c.bf16 %v2825_v7, %v2824_v32  ;;  %v3025_v32 = vld [vmem:[#allocation8 + $0x1f8] sm:$0xff] }
 0x941   : > { %5864 = vmatpush3.bf16.msra.mxu0 %v5861_v31  ;;  %v3024_v31 = vld [vmem:[#allocation8 + $0x1f0] sm:$0xff] }
 0x942   : > { %5866 = vmatprep.subr.bf16.mxu0 %v5865_v33  ;;  %v5941_v7 = vpack.c.bf16 %v3025_v32, %v3024_v31 }
 0x945   : > { %5868 = vmatpush3.bf16.msra.mxu0 %v5865_v33  ;;  %v2830_v33 = vld [vmem:[#allocation14 + $0x170] sm:$0xff] }
 0x946   : > { %5870 = vmatprep.subr.bf16.mxu0 %v5869_v36  ;;  %v5877_v35 = vpack.c.bf16 %v2831_v34, %v2830_v33 }
 0x949   : > { %5872 = vmatpush3.bf16.msra.mxu0 %v5869_v36 }
 0x94a   : > { %5874 = vmatprep.subr.bf16.mxu0 %v5873_v39 }
 0x94d   : > { %5876 = vmatpush3.bf16.msra.mxu0 %v5873_v39 }
 0x94e   : > { %5878 = vmatprep.subr.bf16.mxu0 %v5877_v35 }
 0x951   : > { %5880 = vmatpush3.bf16.msra.mxu0 %v5877_v35 }
 0xa07   : > { %v5211_v14 = vpop.f32.mrb[8].mxu0 }
 0xa08   : > { %v2496_v16 = vpop.f32.mrb[9].mxu0  ;;  %v2502_v17 = vadd.f32 %v5211_v14, %v4403_v15 }
 0xa09   : > { %v2497_v5 = vadd.f32 %v4403_v15, %v2496_v16  ;;  %v3014_v15 = vld [vmem:[#allocation8 + $0x1a0] sm:$0xff]  ;;  %v3015_v16 = vld [vmem:[#allocation8 + $0x1a8] sm:$0xff] }
 0xa0b   : > { %5223 = vmatpush3.msra.mxu1 %v2497_v5  ;;  %v3016_v5 = vld [vmem:[#allocation8 + $0x1b0] sm:$0xff] }
 0xa0c   : > { %5227 = vmatprep.subr.mxu1 %v6979_v50  ;;  %v5925_v19 = vpack.c.bf16 %v3017_v18, %v3016_v5 }
 0xa0d   : > { %v2571_v59 = vpop.f32.mrb[26].mxu1 }
 0xa0e   : > { %v2645_v60 = vmul.f32 0.35355338, %v2571_v59  ;;  %v5216_v61 = vpop.f32.mrb[27].mxu1  ;;  %v5893_v59 = vpack.c.bf16 %v2917_v57, %v2916_v56  ;;  %v3114_v57 = vld [vmem:[#allocation11 + $0x1a0] sm:$0xff] }
 0xa0f   : > { %v2919_v61 = vld [vmem:[#allocation5 + $0x1c8] sm:$0xff] }
 0xa10   : > { %v2647_v62 = vsel %vm1243_vm1, %v2645_v60, -inf }
 0xa11   : > { %2648 = vmax.xlane.f32.xlu0 %v2647_v62  ;;  %v2641_v63 = vpop.f32.mrb[28].mxu1 }
 0xa12   : > { %v2646_v0 = vmul.f32 0.35355338, %v2641_v63  ;;  %v5221_v1 = vpop.f32.mrb[29].mxu1  ;;  %v2920_v63 = vld [vmem:[#allocation5 + $0x1d0] sm:$0xff] }
 0xa14   : > { %v2650_v2 = vsel %vm1243_vm1, %v2646_v0, -inf }
 0xa15   : > { %2651 = vmax.xlane.f32.xlu1 %v2650_v2  ;;  %v2922_v2 = vld [vmem:[#allocation5 + $0x1e0] sm:$0xff] }
 0xa9e   : > { %v2649_v49 = vpop.xlane.xlu0 %2648 }
 0xa9f   : > { %v2653_v3 = vsub.f32 %v2645_v60, %v2649_v49  ;;  %v2918_v60 = vld [vmem:[#allocation5 + $0x1c0] sm:$0xff]  ;;  %v2923_v49 = vld [vmem:[#allocation5 + $0x1e8] sm:$0xff] }
 0xaa0   : > { %v5897_v62 = vpack.c.bf16 %v2919_v61, %v2918_v60  ;;  %v3116_v61 = vld [vmem:[#allocation11 + $0x1b0] sm:$0xff] }
 0xaa1   : > { %v2655_v4 = vmul.f32 1.442695, %v2653_v3  ;;  %v5905_v3 = vpack.c.bf16 %v2923_v49, %v2922_v2  ;;  %v3120_v49 = vld [vmem:[#allocation11 + $0x1d0] sm:$0xff] }
 0xaa2   : > { %v2652_v6 = vpop.xlane.xlu1 %2651 }
 0xaa3   : > { %6329 = vpow2.f32 %v2655_v4  ;;  %v2654_v8 = vsub.f32 %v2646_v0, %v2652_v6  ;;  %v2921_v0 = vld [vmem:[#allocation5 + $0x1d8] sm:$0xff]  ;;  %v2924_v4 = vld [vmem:[#allocation5 + $0x1f0] sm:$0xff] }
 0xaa4   : > { %v5901_v1 = vpack.c.bf16 %v2921_v0, %v2920_v63  ;;  %v2925_v6 = vld [vmem:[#allocation5 + $0x1f8] sm:$0xff]  ;;  %v3118_v0 = vld [vmem:[#allocation11 + $0x1c0] sm:$0xff] }
 0xaa5   : > { %v2657_v9 = vmul.f32 1.442695, %v2654_v8  ;;  %v5909_v8 = vpack.c.bf16 %v2925_v6, %v2924_v4  ;;  %v3122_v6 = vld [vmem:[#allocation11 + $0x1e0] sm:$0xff] }
 0xaa7   : > { %6331 = vpow2.f32 %v2657_v9  ;;  %v3010_v9 = vld [vmem:[#allocation8 + $0x180] sm:$0xff] }
 0xaad   : > { %v6330_v10 = vpop.eup %6329 }
 0xaae   : > { %v2659_v11 = vsel %vm1243_vm1, %v6330_v10, 0.0 }
 0xaaf   : > { %2660 = vadd.xlane.f32.xlu0 %v2659_v11 }
 0xab1   : > { %v6332_v12 = vpop.eup %6331 }
 0xab2   : > { %v2662_v13 = vsel %vm1243_vm1, %v6332_v12, 0.0 }
 0xab3   : > { %2663 = vadd.xlane.f32.xlu1 %v2662_v13  ;;  %v3013_v13 = vld [vmem:[#allocation8 + $0x198] sm:$0xff] }
 0xb3c   : > { %v2661_v40 = vpop.xlane.xlu0 %2660 }
 0xb3d   : > { %6333 = vrcp.f32 %v2661_v40 }
 0xb40   : > { %v2664_v41 = vpop.xlane.xlu1 %2663 }
 0xb41   : > { %6335 = vrcp.f32 %v2664_v41 }
 0xb47   : > { %v6334_v44 = vpop.eup %6333 }
 0xb48   : > { %v2667_v45 = vmul.f32 %v6334_v44, %v6330_v10  ;;  %v3011_v10 = vld [vmem:[#allocation8 + $0x188] sm:$0xff] }
 0xb49   : > { %v5913_v11 = vpack.c.bf16 %v3011_v10, %v3010_v9  ;;  %v3124_v10 = vld [vmem:[#allocation11 + $0x1f0] sm:$0xff] }
 0xb4a   : > { %5225 = vmatmul.mubr.msk.f32.vlgmr.msra.gmra.mrb[30].mxu1 %vm1243_vm1, %v2667_v45  ;;  %v4406_v45 = vld [vmem:[#allocation7 + $0x3] ss:$0 sm:$0xff] }
 0xb4b   : > { %v6336_v51 = vpop.eup %6335  ;;  %5228 = vmatpush3.msra.mxu1 %v2502_v17  ;;  %5229 = vmatprep.mubr.msk.f32.mxu1 %vm6980_vm0, %v6979_v50  ;;  %v5921_v17 = vpack.c.bf16 %v3015_v16, %v3014_v15 }
 0xb4c   : > { %v2668_v26 = vmul.f32 %v6336_v51, %v6332_v12  ;;  %5882 = vmatprep.subr.bf16.mxu1 %v5881_v46  ;;  %v3012_v12 = vld [vmem:[#allocation8 + $0x190] sm:$0xff] }
 0xb4d   : > { %v5917_v14 = vpack.c.bf16 %v3013_v13, %v3012_v12 }
 0xb4e   : > { %5230 = vmatmul.mubr.msk.f32.vlgmr.msra.gmra.mrb[32].mxu1 %vm1243_vm1, %v2668_v26  ;;  %v3110_v26 = vld [vmem:[#allocation11 + $0x180] sm:$0xff] }
 0xb4f   : > { %5884 = vmatpush3.bf16.msra.mxu1 %v5881_v46  ;;  %5299 = vmatprep.mubr.f32.mxu1 %v7668_v24 }
 0xb50   : > { %5886 = vmatprep.subr.bf16.mxu1 %v5885_v52 }
 0xb53   : > { %5888 = vmatpush3.bf16.msra.mxu1 %v5885_v52  ;;  %v3111_v52 = vld [vmem:[#allocation11 + $0x188] sm:$0xff] }
 0xb54   : > { %5890 = vmatprep.subr.bf16.mxu1 %v5889_v55  ;;  %v5945_v54 = vpack.c.bf16 %v3111_v52, %v3110_v26  ;;  %v3530_v52 = vld [vmem:[#allocation14 + $0x1d0] sm:$0xff] }
 0xb56   : > { %5946 = vmatprep.subr.bf16.mxu0 %v5945_v54 }
 0xb57   : > { %5892 = vmatpush3.bf16.msra.mxu1 %v5889_v55  ;;  %v3113_v55 = vld [vmem:[#allocation11 + $0x198] sm:$0xff] }
 0xb58   : > { %5894 = vmatprep.subr.bf16.mxu1 %v5893_v59  ;;  %v5949_v56 = vpack.c.bf16 %v3113_v55, %v3112_v53  ;;  %v3531_v53 = vld [vmem:[#allocation14 + $0x1d8] sm:$0xff]  ;;  %v3532_v55 = vld [vmem:[#allocation14 + $0x1e0] sm:$0xff] }
 0xb5b   : > { %5896 = vmatpush3.bf16.msra.mxu1 %v5893_v59  ;;  %v3115_v59 = vld [vmem:[#allocation11 + $0x1a8] sm:$0xff] }
 0xb5c   : > { %5898 = vmatprep.subr.bf16.mxu1 %v5897_v62  ;;  %v5953_v60 = vpack.c.bf16 %v3115_v59, %v3114_v57 }
 0xb5f   : > { %5900 = vmatpush3.bf16.msra.mxu1 %v5897_v62  ;;  %v3117_v62 = vld [vmem:[#allocation11 + $0x1b8] sm:$0xff] }
 0xb60   : > { %5902 = vmatprep.subr.bf16.mxu1 %v5901_v1  ;;  %v5957_v63 = vpack.c.bf16 %v3117_v62, %v3116_v61 }
 0xb63   : > { %5904 = vmatpush3.bf16.msra.mxu1 %v5901_v1  ;;  %v3119_v1 = vld [vmem:[#allocation11 + $0x1c8] sm:$0xff] }
 0xb64   : > { %5906 = vmatprep.subr.bf16.mxu1 %v5905_v3  ;;  %v5961_v2 = vpack.c.bf16 %v3119_v1, %v3118_v0  ;;  %v3534_v1 = vld [vmem:[#allocation14 + $0x1f0] sm:$0xff] }
 0xb67   : > { %5908 = vmatpush3.bf16.msra.mxu1 %v5905_v3  ;;  %v3121_v3 = vld [vmem:[#allocation11 + $0x1d8] sm:$0xff] }
 0xb68   : > { %5910 = vmatprep.subr.bf16.mxu1 %v5909_v8  ;;  %v5965_v4 = vpack.c.bf16 %v3121_v3, %v3120_v49 }
 0xb6b   : > { %5912 = vmatpush3.bf16.msra.mxu1 %v5909_v8  ;;  %v3123_v8 = vld [vmem:[#allocation11 + $0x1e8] sm:$0xff] }
 0xb6c   : > { %5914 = vmatprep.subr.bf16.mxu1 %v5913_v11  ;;  %v5969_v9 = vpack.c.bf16 %v3123_v8, %v3122_v6 }
 0xb6e   : > { %5300 = vmatmul.mubr.f32.vlgmr.msra.gmra.mrb[34].mxu1 %v7678_v58 }
 0xb6f   : > { %5916 = vmatpush3.bf16.msra.mxu1 %v5913_v11  ;;  %5334 = vmatprep.mubr.f32.mxu1 %v7668_v24  ;;  %v3125_v11 = vld [vmem:[#allocation11 + $0x1f8] sm:$0xff] }
 0xb70   : > { %5918 = vmatprep.subr.bf16.mxu1 %v5917_v14  ;;  %v5973_v12 = vpack.c.bf16 %v3125_v11, %v3124_v10 }
 0xb73   : > { %5920 = vmatpush3.bf16.msra.mxu1 %v5917_v14 }
 0xb74   : > { %5922 = vmatprep.subr.bf16.mxu1 %v5921_v17 }
 0xb77   : > { %5924 = vmatpush3.bf16.msra.mxu1 %v5921_v17 }
 0xb78   : > { %5926 = vmatprep.subr.bf16.mxu1 %v5925_v19 }
 0xb7b   : > { %5928 = vmatpush3.bf16.msra.mxu1 %v5925_v19 }
 0xb7c   : > { %5930 = vmatprep.subr.bf16.mxu1 %v5929_v22 }
 0xb7f   : > { %5932 = vmatpush3.bf16.msra.mxu1 %v5929_v22 }
 0xb80   : > { %5934 = vmatprep.subr.bf16.mxu1 %v5933_v27 }
 0xb83   : > { %5936 = vmatpush3.bf16.msra.mxu1 %v5933_v27 }
 0xb84   : > { %5938 = vmatprep.subr.bf16.mxu1 %v5937_v30 }
 0xb87   : > { %5940 = vmatpush3.bf16.msra.mxu1 %v5937_v30 }
 0xb88   : > { %5942 = vmatprep.subr.bf16.mxu1 %v5941_v7 }
 0xb8b   : > { %5944 = vmatpush3.bf16.msra.mxu1 %v5941_v7  ;;  %v4408_v7 = vld [vmem:[#allocation13 + $0x3] ss:$0 sm:$0xff] }
 0xb8c   : > { %5372 = vmatprep.subr.mxu1 %v6979_v50 }
 0xb8e   : > { %5335 = vmatmul.mubr.f32.vlgmr.msra.gmra.mrb[36].mxu1 %v7678_v58 }
 0xb8f   : > { %5374 = vmatprep.mubr.msk.f32.mxu1 %vm6980_vm0, %v6979_v50 }
 0xc1d   : > { %v2738_v36 = vpop.f32.mrb[30].mxu1 }
 0xc1e   : > { %v5226_v37 = vpop.f32.mrb[31].mxu1  ;;  %5264 = vmatprep.mubr.f32.mxu0 %v2738_v36  ;;  %v3520_v36 = vld [vmem:[#allocation14 + $0x180] sm:$0xff] }
 0xc1f   : > { %v3521_v37 = vld [vmem:[#allocation14 + $0x188] sm:$0xff] }
 0xc21   : > { %v2811_v38 = vpop.f32.mrb[32].mxu1 }
 0xc22   : > { %v5231_v39 = vpop.f32.mrb[33].mxu1  ;;  %5265 = vmatmul.mubr.f32.vlgmr.msra.gmra.mrb[6].mxu0 %v2811_v38  ;;  %v3522_v38 = vld [vmem:[#allocation14 + $0x190] sm:$0xff] }
 0xc23   : > { %5369 = vmatprep.mubr.f32.mxu0 %v7668_v24  ;;  %5948 = vmatpush3.bf16.msra.mxu0 %v5945_v54  ;;  %v5977_v39 = vpack.c.bf16 %v3521_v37, %v3520_v36  ;;  %v5997_v54 = vpack.c.bf16 %v3531_v53, %v3530_v52  ;;  %v3677_v36 = vld [vmem:[#allocation20 + $0x30] sm:$0xff]  ;;  %v3678_v37 = vld [vmem:[#allocation20 + $0x38] sm:$0xff] }
 0xc24   : > { %5950 = vmatprep.subr.bf16.mxu0 %v5949_v56 }
 0xc27   : > { %5952 = vmatpush3.bf16.msra.mxu0 %v5949_v56  ;;  %v3533_v56 = vld [vmem:[#allocation14 + $0x1e8] sm:$0xff] }
 0xc28   : > { %5954 = vmatprep.subr.bf16.mxu0 %v5953_v60  ;;  %v6001_v57 = vpack.c.bf16 %v3533_v56, %v3532_v55 }
 0xc2b   : > { %5956 = vmatpush3.bf16.msra.mxu0 %v5953_v60 }
 0xc2c   : > { %5958 = vmatprep.subr.bf16.mxu0 %v5957_v63 }
 0xc2f   : > { %5960 = vmatpush3.bf16.msra.mxu0 %v5957_v63 }
 0xc30   : > { %5962 = vmatprep.subr.bf16.mxu0 %v5961_v2 }
 0xc33   : > { %5964 = vmatpush3.bf16.msra.mxu0 %v5961_v2  ;;  %v3535_v2 = vld [vmem:[#allocation14 + $0x1f8] sm:$0xff] }
 0xc34   : > { %5966 = vmatprep.subr.bf16.mxu0 %v5965_v4  ;;  %v6005_v49 = vpack.c.bf16 %v3535_v2, %v3534_v1 }
 0xc37   : > { %5968 = vmatpush3.bf16.msra.mxu0 %v5965_v4 }
 0xc38   : > { %5970 = vmatprep.subr.bf16.mxu0 %v5969_v9 }
 0xc3b   : > { %5972 = vmatpush3.bf16.msra.mxu0 %v5969_v9  ;;  %v4411_v9 = vld [vmem:[#allocation16] ss:$0 sm:$0xff] }
 0xc3c   : > { %5974 = vmatprep.subr.bf16.mxu0 %v5973_v12 }
 0xc3f   : > { %5976 = vmatpush3.bf16.msra.mxu0 %v5973_v12 }
 0xc40   : > { %5978 = vmatprep.subr.bf16.mxu0 %v5977_v39 }
 0xc41   : > { %v5301_v40 = vpop.f32.mrb[34].mxu1 }
 0xc42   : > { %v3000_v41 = vpop.f32.mrb[35].mxu1  ;;  %v3006_v51 = vadd.f32 %v5301_v40, %v4406_v45  ;;  %5370 = vmatmul.mubr.f32.vlgmr.msra.gmra.mrb[10].mxu0 %v7678_v58  ;;  %v3523_v40 = vld [vmem:[#allocation14 + $0x198] sm:$0xff] }
 0xc43   : > { %v3001_v47 = vadd.f32 %v4406_v45, %v3000_v41  ;;  %v5981_v41 = vpack.c.bf16 %v3523_v40, %v3522_v38  ;;  %5980 = vmatpush3.bf16.msra.mxu0 %v5977_v39  ;;  %v3526_v45 = vld [vmem:[#allocation14 + $0x1b0] sm:$0xff]  ;;  %v6021_v38 = vpack.c.bf16 %v3678_v37, %v3677_v36  ;;  %v3679_v39 = vld [vmem:[#allocation20 + $0x40] sm:$0xff] }
 0xc44   : > { %v3680_v40 = vld [vmem:[#allocation20 + $0x48] sm:$0xff] }
 0xc45   : > { %5982 = vmatprep.subr.bf16.mxu0 %v5981_v41 }
 0xc47   : > { %5984 = vmatpush3.bf16.msra.mxu0 %v5981_v41  ;;  %v3681_v41 = vld [vmem:[#allocation20 + $0x50] sm:$0xff] }
 0xc61   : > { %v5336_v43 = vpop.f32.mrb[36].mxu1 }
 0xc62   : > { %v3100_v44 = vpop.f32.mrb[37].mxu1  ;;  %v3106_v48 = vadd.f32 %v5336_v43, %v4407_v42  ;;  %v3525_v43 = vld [vmem:[#allocation14 + $0x1a8] sm:$0xff] }
 0xc63   : > { %v3101_v46 = vadd.f32 %v4407_v42, %v3100_v44  ;;  %v3524_v42 = vld [vmem:[#allocation14 + $0x1a0] sm:$0xff] }
 0xc64   : > { %v5985_v44 = vpack.c.bf16 %v3525_v43, %v3524_v42  ;;  %v3682_v42 = vld [vmem:[#allocation20 + $0x58] sm:$0xff] }
 0xc65   : > { %5373 = vmatpush3.xpose.msra.mxu1 %v3101_v46  ;;  %v3527_v46 = vld [vmem:[#allocation14 + $0x1b8] sm:$0xff]  ;;  %v6029_v43 = vpack.c.bf16 %v3682_v42, %v3681_v41 }
 0xc66   : > { %5377 = vmatprep.subr.mxu1 %v6979_v50  ;;  %5986 = vmatprep.subr.bf16.mxu0 %v5985_v44 }
 0xc67   : > { %5988 = vmatpush3.bf16.msra.mxu0 %v5985_v44  ;;  %v3683_v44 = vld [vmem:[#allocation20 + $0x60] sm:$0xff] }
 0xc68   : > { %5375 = vmatmul.mubr.f32.vlgmr.msra.gmra.mrb[38].mxu1 %v3001_v47  ;;  %v5989_v47 = vpack.c.bf16 %v3527_v46, %v3526_v45  ;;  %v3684_v45 = vld [vmem:[#allocation20 + $0x68] sm:$0xff] }
 0xc69   : > { %5378 = vmatpush3.xpose.msra.mxu1 %v3106_v48  ;;  %5379 = vmatprep.mubr.msk.f32.mxu1 %vm6980_vm0, %v6979_v50  ;;  %v3528_v48 = vld [vmem:[#allocation14 + $0x1c0] sm:$0xff]  ;;  %v6033_v46 = vpack.c.bf16 %v3684_v45, %v3683_v44 }
 0xc6a   : > { %5382 = vmatprep.subr.mxu1 %v6979_v50  ;;  %5990 = vmatprep.subr.bf16.mxu0 %v5989_v47 }
 0xc6b   : > { %5992 = vmatpush3.bf16.msra.mxu0 %v5989_v47  ;;  %v3685_v47 = vld [vmem:[#allocation20 + $0x70] sm:$0xff] }
 0xc6c   : > { %5380 = vmatmul.mubr.f32.vlgmr.msra.gmra.mrb[40].mxu1 %v3006_v51  ;;  %v3529_v51 = vld [vmem:[#allocation14 + $0x1c8] sm:$0xff] }
 0xc6d   : > { %5384 = vmatprep.mubr.msk.f32.mxu1 %vm6980_vm0, %v6979_v50  ;;  %v5993_v26 = vpack.c.bf16 %v3529_v51, %v3528_v48  ;;  %v3686_v48 = vld [vmem:[#allocation20 + $0x78] sm:$0xff] }
 0xc6e   : > { %v6037_v51 = vpack.c.bf16 %v3686_v48, %v3685_v47 }
 0xc6f   : > { %5994 = vmatprep.subr.bf16.mxu0 %v5993_v26 }
 0xc70   : > { %5996 = vmatpush3.bf16.msra.mxu0 %v5993_v26 }
 0xc71   : > { %5998 = vmatprep.subr.bf16.mxu0 %v5997_v54 }
 0xc74   : > { %6000 = vmatpush3.bf16.msra.mxu0 %v5997_v54 }
 0xc75   : > { %6002 = vmatprep.subr.bf16.mxu0 %v6001_v57 }
 0xc78   : > { %6004 = vmatpush3.bf16.msra.mxu0 %v6001_v57 }
 0xc79   : > { %6006 = vmatprep.subr.bf16.mxu0 %v6005_v49 }
 0xc7c   : > { %6008 = vmatpush3.bf16.msra.mxu0 %v6005_v49 }
 0xd15   : > { %v5371_v32 = vpop.f32.mrb[10].mxu0 }
 0xd16   : > { %v3200_v33 = vpop.f32.mrb[11].mxu0  ;;  %v3206_v34 = vadd.f32 %v5371_v32, %v4408_v7 }
 0xd17   : > { %v3201_v35 = vadd.f32 %v4408_v7, %v3200_v33 }
 0xd19   : > { %5383 = vmatpush3.msra.mxu1 %v3201_v35 }
 0xd1a   : > { %5387 = vmatprep.subr.mxu1 %v6979_v50 }
 0xd3b   : > { %v3275_v13 = vpop.f32.mrb[38].mxu1 }
 0xd3c   : > { %v3349_v14 = vmul.f32 0.35355338, %v3275_v13  ;;  %v5376_v15 = vpop.f32.mrb[39].mxu1 }
 0xd3e   : > { %v3351_v16 = vsel %vm1243_vm1, %v3349_v14, -inf }
 0xd3f   : > { %3352 = vmax.xlane.f32.xlu0 %v3351_v16  ;;  %v3345_v17 = vpop.f32.mrb[40].mxu1  ;;  %v3671_v16 = vld [vmem:[#allocation20] sm:$0xff] }
 0xd40   : > { %v3350_v5 = vmul.f32 0.35355338, %v3345_v17  ;;  %v5381_v18 = vpop.f32.mrb[41].mxu1  ;;  %v3672_v17 = vld [vmem:[#allocation20 + $0x8] sm:$0xff] }
 0xd41   : > { %v6009_v18 = vpack.c.bf16 %v3672_v17, %v3671_v16  ;;  %v3831_v17 = vld [vmem:[#allocation23 + $0x40] sm:$0xff] }
 0xd42   : > { %v3354_v19 = vsel %vm1243_vm1, %v3350_v5, -inf }
 0xd43   : > { %3355 = vmax.xlane.f32.xlu1 %v3354_v19  ;;  %v3674_v19 = vld [vmem:[#allocation20 + $0x18] sm:$0xff] }
 0xdcc   : > { %v3353_v20 = vpop.xlane.xlu0 %3352 }
 0xdcd   : > { %v3357_v21 = vsub.f32 %v3349_v14, %v3353_v20 }
 0xdcf   : > { %v3359_v22 = vmul.f32 1.442695, %v3357_v21  ;;  %v3675_v21 = vld [vmem:[#allocation20 + $0x20] sm:$0xff] }
 0xdd0   : > { %v3356_v23 = vpop.xlane.xlu1 %3355 }
 0xdd1   : > { %6337 = vpow2.f32 %v3359_v22  ;;  %v3358_v25 = vsub.f32 %v3350_v5, %v3356_v23  ;;  %v3673_v5 = vld [vmem:[#allocation20 + $0x10] sm:$0xff]  ;;  %v3676_v22 = vld [vmem:[#allocation20 + $0x28] sm:$0xff] }
 0xdd2   : > { %v6013_v20 = vpack.c.bf16 %v3674_v19, %v3673_v5  ;;  %v6017_v23 = vpack.c.bf16 %v3676_v22, %v3675_v21  ;;  %v3832_v5 = vld [vmem:[#allocation23 + $0x48] sm:$0xff]  ;;  %v3833_v19 = vld [vmem:[#allocation23 + $0x50] sm:$0xff]  ;;  %v3835_v22 = vld [vmem:[#allocation23 + $0x60] sm:$0xff] }
 0xdd3   : > { %v3361_v27 = vmul.f32 1.442695, %v3358_v25 }
 0xdd5   : > { %6339 = vpow2.f32 %v3361_v27 }
 0xddb   : > { %v6338_v28 = vpop.eup %6337 }
 0xddc   : > { %v3363_v29 = vsel %vm1243_vm1, %v6338_v28, 0.0 }
 0xddd   : > { %3364 = vadd.xlane.f32.xlu0 %v3363_v29 }
 0xddf   : > { %v6340_v30 = vpop.eup %6339 }
 0xde0   : > { %v3366_v31 = vsel %vm1243_vm1, %v6340_v30, 0.0 }
 0xde1   : > { %3367 = vadd.xlane.f32.xlu1 %v3366_v31 }
 0xe6a   : > { %v3365_v59 = vpop.xlane.xlu0 %3364 }
 0xe6b   : > { %6341 = vrcp.f32 %v3365_v59  ;;  %v4413_v59 = vld [vmem:[#allocation17] ss:$0 sm:$0xff] }
 0xe6e   : > { %v3368_v60 = vpop.xlane.xlu1 %3367 }
 0xe6f   : > { %6343 = vrcp.f32 %v3368_v60 }
 0xe75   : > { %v6342_v61 = vpop.eup %6341 }
 0xe76   : > { %v3371_v62 = vmul.f32 %v6342_v61, %v6338_v28 }
 0xe78   : > { %5385 = vmatmul.mubr.msk.f32.vlgmr.msra.gmra.mrb[42].mxu1 %vm1243_vm1, %v3371_v62 }
 0xe79   : > { %v6344_v63 = vpop.eup %6343  ;;  %5388 = vmatpush3.msra.mxu1 %v3206_v34  ;;  %5389 = vmatprep.mubr.msk.f32.mxu1 %vm6980_vm0, %v6979_v50 }
 0xe7a   : > { %v3372_v0 = vmul.f32 %v6344_v63, %v6340_v30  ;;  %6010 = vmatprep.subr.bf16.mxu1 %v6009_v18 }
 0xe7c   : > { %5390 = vmatmul.mubr.msk.f32.vlgmr.msra.gmra.mrb[44].mxu1 %vm1243_vm1, %v3372_v0  ;;  %v4414_v0 = vld [vmem:[#allocation19] ss:$0 sm:$0xff] }
 0xe7d   : > { %6012 = vmatpush3.bf16.msra.mxu1 %v6009_v18  ;;  %v6057_v18 = vpack.c.bf16 %v3832_v5, %v3831_v17 }
 0xe7e   : > { %6014 = vmatprep.subr.bf16.mxu1 %v6013_v20 }
 0xe81   : > { %6016 = vmatpush3.bf16.msra.mxu1 %v6013_v20  ;;  %v3834_v20 = vld [vmem:[#allocation23 + $0x58] sm:$0xff] }
 0xe82   : > { %6018 = vmatprep.subr.bf16.mxu1 %v6017_v23  ;;  %v6061_v21 = vpack.c.bf16 %v3834_v20, %v3833_v19 }
 0xe85   : > { %6020 = vmatpush3.bf16.msra.mxu1 %v6017_v23  ;;  %v3836_v23 = vld [vmem:[#allocation23 + $0x68] sm:$0xff] }
 0xe86   : > { %6022 = vmatprep.subr.bf16.mxu1 %v6021_v38 }
 0xe89   : > { %6024 = vmatpush3.bf16.msra.mxu1 %v6021_v38 }
 0xf4b   : > { %v3442_v3 = vpop.f32.mrb[42].mxu1 }
 0xf4c   : > { %v5386_v4 = vpop.f32.mrb[43].mxu1  ;;  %5424 = vmatprep.mubr.f32.mxu0 %v3442_v3  ;;  %v3823_v3 = vld [vmem:[#allocation23] sm:$0xff] }
 0xf4d   : > { %v3824_v4 = vld [vmem:[#allocation23 + $0x8] sm:$0xff] }
 0xf4f   : > { %v3515_v6 = vpop.f32.mrb[44].mxu1 }
 0xf50   : > { %v5391_v8 = vpop.f32.mrb[45].mxu1  ;;  %5425 = vmatmul.mubr.f32.vlgmr.msra.gmra.mrb[6].mxu0 %v3515_v6  ;;  %v6041_v6 = vpack.c.bf16 %v3824_v4, %v3823_v3 }
 0xf51   : > { %v3825_v8 = vld [vmem:[#allocation23 + $0x10] sm:$0xff] }
 0xf52   : > { %6042 = vmatprep.subr.bf16.mxu0 %v6041_v6 }
 0xf53   : > { %6044 = vmatpush3.bf16.msra.mxu0 %v6041_v6 }
0x1023   : > { %v5426_v10 = vpop.f32.mrb[6].mxu0 }
0x1024   : > { %v3621_v11 = vadd.f32 %v5426_v10, %v4411_v9  ;;  %v3602_v12 = vpop.f32.mrb[7].mxu0 }
0x1025   : > { %v3620_v13 = vadd.f32 %v4411_v9, %v3602_v12  ;;  %v3826_v9 = vld [vmem:[#allocation23 + $0x18] sm:$0xff]  ;;  %v3828_v12 = vld [vmem:[#allocation23 + $0x28] sm:$0xff] }
0x1026   : > { %v3628_v14 = vadd.f32 %v7678_v58, %v3621_v11  ;;  %v3622_v58 = vlaneseq  ;;  %v6045_v10 = vpack.c.bf16 %v3826_v9, %v3825_v8  ;;  %v3827_v11 = vld [vmem:[#allocation23 + $0x20] sm:$0xff] }
0x1027   : > { %v3627_v15 = vadd.f32 %v7668_v24, %v3620_v13  ;;  %v6049_v13 = vpack.c.bf16 %v3828_v12, %v3827_v11 }
0x1028   : > { %3631 = vadd.xlane.f32.xlu1 %v3628_v14  ;;  %v3623_v24 = vand.u32 127, %v3622_v58  ;;  %6046 = vmatprep.subr.bf16.mxu0 %v6045_v10 }
0x1029   : > { %3629 = vadd.xlane.f32.xlu0 %v3627_v15  ;;  %6048 = vmatpush3.bf16.msra.mxu0 %v6045_v10 }
0x102a   : > { %vm3624_vm2 = vcmp.lt.s32.totalorder %v3623_v24, 32  ;;  %6050 = vmatprep.subr.bf16.mxu0 %v6049_v13  ;;  %v6065_v24 = vpack.c.bf16 %v3836_v23, %v3835_v22  ;;  %v4416_v23 = vld [vmem:[#allocation25] ss:$0 sm:$0xff] }
0x102b   : > { %v7718_v30 = vsel %vm3624_vm2, 1.0, %v6979_v50  ;;  %v6025_v50 = vpack.c.bf16 %v3680_v40, %v3679_v39 }
0x102d   : > { %6026 = vmatprep.subr.bf16.mxu1 %v6025_v50  ;;  %6052 = vmatpush3.bf16.msra.mxu0 %v6049_v13 }
0x102e   : > { %6028 = vmatpush3.bf16.msra.mxu1 %v6025_v50 }
0x102f   : > { %6030 = vmatprep.subr.bf16.mxu1 %v6029_v43 }
0x1032   : > { %6032 = vmatpush3.bf16.msra.mxu1 %v6029_v43 }
0x1033   : > { %6034 = vmatprep.subr.bf16.mxu1 %v6033_v46 }
0x1036   : > { %6036 = vmatpush3.bf16.msra.mxu1 %v6033_v46 }
0x1037   : > { %6038 = vmatprep.subr.bf16.mxu1 %v6037_v51 }
0x103a   : > { %6040 = vmatpush3.bf16.msra.mxu1 %v6037_v51 }
0x10b5   : > { %v3632_v25 = vpop.xlane.xlu1 %3631 }
0x10b6   : > { %v3634_v27 = vmul.f32 0.03125, %v3632_v25  ;;  %v3630_v28 = vpop.xlane.xlu0 %3629  ;;  %v3837_v25 = vld [vmem:[#allocation23 + $0x70] sm:$0xff] }
0x10b7   : > { %v3633_v29 = vmul.f32 0.03125, %v3630_v28 }
0x10b8   : > { %v3636_v31 = vsub.f32 %v3628_v14, %v3634_v27  ;;  %v3829_v14 = vld [vmem:[#allocation23 + $0x30] sm:$0xff]  ;;  %v3838_v27 = vld [vmem:[#allocation23 + $0x78] sm:$0xff] }
0x10b9   : > { %v3635_v32 = vsub.f32 %v3627_v15, %v3633_v29  ;;  %v3830_v15 = vld [vmem:[#allocation23 + $0x38] sm:$0xff]  ;;  %v6069_v28 = vpack.c.bf16 %v3838_v27, %v3837_v25 }
0x10ba   : > { %v3638_v7 = vmul.f32 %v7718_v30, %v3636_v31  ;;  %v6053_v16 = vpack.c.bf16 %v3830_v15, %v3829_v14  ;;  %v4415_v29 = vld [vmem:[#allocation22] ss:$0 sm:$0xff] }
0x10bb   : > { %v3637_v33 = vmul.f32 %v7718_v30, %v3635_v32 }
0x10bc   : > { %v3640_v34 = vmul.f32 %v3638_v7, %v3638_v7  ;;  %6054 = vmatprep.subr.bf16.mxu0 %v6053_v16 }
0x10bd   : > { %v3639_v35 = vmul.f32 %v3637_v33, %v3637_v33  ;;  %6056 = vmatpush3.bf16.msra.mxu0 %v6053_v16 }
0x10be   : > { %3643 = vadd.xlane.f32.xlu1 %v3640_v34  ;;  %6058 = vmatprep.subr.bf16.mxu0 %v6057_v18 }
0x10bf   : > { %3641 = vadd.xlane.f32.xlu0 %v3639_v35 }
0x10c1   : > { %6060 = vmatpush3.bf16.msra.mxu0 %v6057_v18 }
0x10c2   : > { %6062 = vmatprep.subr.bf16.mxu0 %v6061_v21 }
0x10c5   : > { %6064 = vmatpush3.bf16.msra.mxu0 %v6061_v21 }
0x10c6   : > { %6066 = vmatprep.subr.bf16.mxu0 %v6065_v24 }
0x10c9   : > { %6068 = vmatpush3.bf16.msra.mxu0 %v6065_v24 }
0x10ca   : > { %6070 = vmatprep.subr.bf16.mxu0 %v6069_v28 }
0x10cd   : > { %6072 = vmatpush3.bf16.msra.mxu0 %v6069_v28 }
0x114b   : > { %v3644_v26 = vpop.xlane.xlu1 %3643 }
0x114c   : > { %v3646_v52 = vmul.f32 0.03125, %v3644_v26  ;;  %v3642_v53 = vpop.xlane.xlu0 %3641 }
0x114d   : > { %v3645_v54 = vmul.f32 0.03125, %v3642_v53 }
0x114e   : > { %v3648_v55 = vadd.f32 1e-05, %v3646_v52 }
0x114f   : > { %v3647_v56 = vadd.f32 1e-05, %v3645_v54 }
0x1150   : > { %6345 = vrsqrt.f32 %v3648_v55 }
0x1151   : > { %6347 = vrsqrt.f32 %v3647_v56 }
0x115a   : > { %v6346_v57 = vpop.eup %6345 }
0x115b   : > { %v6348_v60 = vpop.eup %6347  ;;  %v3652_v61 = vmul.f32 %v6346_v57, %v3636_v31 }
0x115c   : > { %v3651_v62 = vmul.f32 %v6348_v60, %v3635_v32 }
0x115d   : > { %v3661_v63 = vmul.f32 %v4413_v59, %v3652_v61 }
0x115e   : > { %v3660_v1 = vmul.f32 %v4413_v59, %v3651_v62 }
0x115f   : > { %v7724_v49 = vadd.f32 %v4414_v0, %v3661_v63 }
0x1160   : > { %v7722_v2 = vadd.f32 %v4414_v0, %v3660_v1 }
0x1162   : > { %5459 = vmatprep.mubr.f32.mxu1 %v7722_v2 }
0x1163   : > { %5460 = vmatmul.mubr.f32.vlgmr.msra.gmra.mrb[46].mxu1 %v7724_v49 }
0x1236   : > { %v5461_v31 = vpop.f32.mrb[46].mxu1 }
0x1237   : > { %v3766_v32 = vadd.f32 %v5461_v31, %v4415_v29  ;;  %v3760_v7 = vpop.f32.mrb[47].mxu1 }
0x1238   : > { %v3761_v33 = vadd.f32 %v4415_v29, %v3760_v7 }
0x1239   : > { %v3772_v34 = vmul.f32 0.70710677, %v3766_v32  ;;  %v3770_v20 = vmul.f32 0.5, %v3766_v32 }
0x123a   : > { %v3771_v35 = vmul.f32 0.70710677, %v3761_v33  ;;  %v3769_v18 = vmul.f32 0.5, %v3761_v33 }
0x123b   : > { %v3774_v36 = vand.u32 2147483647, %v3772_v34  ;;  %vm3814_vm3 = vcmp.ge.f32.partialorder %v3772_v34, 0.0 }
0x123c   : > { %v3773_v37 = vand.u32 2147483647, %v3771_v35  ;;  %vm3813_vm4 = vcmp.ge.f32.partialorder %v3771_v35, 0.0 }
0x123d   : > { %v3776_v38 = vmul.f32 0.3275911, %v3774_v36  ;;  %v3802_v50 = vsub.f32 0.0, %v3774_v36 }
0x123e   : > { %v3775_v39 = vmul.f32 0.3275911, %v3773_v37  ;;  %v3801_v42 = vsub.f32 0.0, %v3773_v37 }
0x123f   : > { %v3778_v40 = vadd.f32 1.0, %v3776_v38  ;;  %v3804_v44 = vmul.f32 %v3802_v50, %v3774_v36 }
0x1240   : > { %v3777_v41 = vadd.f32 1.0, %v3775_v39  ;;  %v3803_v47 = vmul.f32 %v3801_v42, %v3773_v37 }
0x1241   : > { %6349 = vrcp.f32 %v3778_v40  ;;  %v3807_v26 = vmul.f32 1.442695, %v3804_v44  ;;  %v6981_v44 = vmov 1966171168  }
0x1242   : > { %6351 = vrcp.f32 %v3777_v41  ;;  %v3805_v54 = vmul.f32 1.442695, %v3803_v47  ;;  %v3972_v47 = vshrl.u32 %v3622_v58, 7 }
0x1243   : > { %6353 = vpow2.f32 %v3807_v26 }
0x1244   : > { %6355 = vpow2.f32 %v3805_v54 }
0x124b   : > { %v6350_v43 = vpop.eup %6349 }
0x124c   : > { %v6352_v45 = vpop.eup %6351  ;;  %v3784_v46 = vmul.f32 1.0614054, %v6350_v43 }
0x124d   : > { %v3783_v48 = vmul.f32 1.0614054, %v6352_v45  ;;  %v6354_v6 = vpop.eup %6353 }
0x124e   : > { %v3786_v51 = vadd.f32 -1.4531521, %v3784_v46  ;;  %v6356_v9 = vpop.eup %6355 }
0x124f   : > { %v3785_v52 = vadd.f32 -1.4531521, %v3783_v48 }
0x1250   : > { %v3788_v53 = vmul.f32 %v6350_v43, %v3786_v51  ;;  %v4417_v51 = vld [vmem:[#allocation26] ss:$0 sm:$0xff] }
0x1251   : > { %v3787_v55 = vmul.f32 %v6352_v45, %v3785_v52  ;;  %v4418_v52 = vld [vmem:[#allocation28] ss:$0 sm:$0xff] }
0x1252   : > { %v3790_v56 = vadd.f32 1.4214138, %v3788_v53 }
0x1253   : > { %v3789_v57 = vadd.f32 1.4214138, %v3787_v55 }
0x1254   : > { %v3792_v59 = vmul.f32 %v6350_v43, %v3790_v56 }
0x1255   : > { %v3791_v60 = vmul.f32 %v6352_v45, %v3789_v57 }
0x1256   : > { %v3794_v61 = vadd.f32 -0.28449672, %v3792_v59 }
0x1257   : > { %v3793_v62 = vadd.f32 -0.28449672, %v3791_v60 }
0x1258   : > { %v3796_v63 = vmul.f32 %v6350_v43, %v3794_v61 }
0x1259   : > { %v3795_v0 = vmul.f32 %v6352_v45, %v3793_v62 }
0x125a   : > { %v3798_v1 = vadd.f32 0.2548296, %v3796_v63 }
0x125b   : > { %v3797_v3 = vadd.f32 0.2548296, %v3795_v0 }
0x125c   : > { %v3800_v4 = vmul.f32 %v6350_v43, %v3798_v1 }
0x125d   : > { %v3799_v8 = vmul.f32 %v6352_v45, %v3797_v3  ;;  %v3969_v45 = vunpack.c.l.s4 %v6981_v44 }
0x125e   : > { %v3810_v10 = vmul.f32 %v6354_v6, %v3800_v4 }
0x125f   : > { %v3809_v11 = vmul.f32 %v6356_v9, %v3799_v8  ;;  %v3970_v46 = vunpack.c.0.s8 %v3969_v45 }
0x1260   : > { %v3812_v12 = vsub.f32 1.0, %v3810_v10 }
0x1261   : > { %v3811_v13 = vsub.f32 1.0, %v3809_v11  ;;  %v3973_v54 = vsub.s32 %v3970_v46, %v3972_v47 }
0x1262   : > { %v3816_v14 = vsub.f32 0.0, %v3812_v12 }
0x1263   : > { %v3815_v15 = vsub.f32 0.0, %v3811_v13 }
0x1264   : > { %v3818_v16 = vsel %vm3814_vm3, %v3812_v12, %v3816_v14 }
0x1265   : > { %v3820_v17 = vadd.f32 1.0, %v3818_v16  ;;  %v3817_v5 = vsel %vm3813_vm4, %v3811_v13, %v3815_v15 }
0x1266   : > { %v3819_v19 = vadd.f32 1.0, %v3817_v5 }
0x1267   : > { %v3822_v22 = vmul.f32 %v3820_v17, %v3770_v20 }
0x1268   : > { %v3821_v21 = vmul.f32 %v3819_v19, %v3769_v18 }
0x126a   : > { %5494 = vmatprep.mubr.f32.mxu0 %v3821_v21 }
0x126b   : > { %5495 = vmatmul.mubr.f32.vlgmr.msra.gmra.mrb[12].mxu0 %v3822_v22 }
0x133e   : > { %v5496_v24 = vpop.f32.mrb[12].mxu0 }
0x133f   : > { %v3918_v25 = vadd.f32 %v5496_v24, %v4416_v23  ;;  %v3912_v27 = vpop.f32.mrb[13].mxu0 }
0x1340   : > { %v3913_v28 = vadd.f32 %v4416_v23, %v3912_v27 }
0x1341   : > { %v3922_v29 = vadd.f32 %v3918_v25, %v7724_v49 }
0x1342   : > { %v3921_v31 = vadd.f32 %v3913_v28, %v7722_v2 }
0x1343   : > { %3925 = vadd.xlane.f32.xlu1 %v3922_v29 }
0x1344   : > { %3923 = vadd.xlane.f32.xlu0 %v3921_v31 }
0x13d0   : > { %v3926_v7 = vpop.xlane.xlu1 %3925 }
0x13d1   : > { %v3928_v34 = vmul.f32 0.03125, %v3926_v7  ;;  %v3924_v33 = vpop.xlane.xlu0 %3923 }
0x13d2   : > { %v3927_v35 = vmul.f32 0.03125, %v3924_v33 }
0x13d3   : > { %v3930_v32 = vsub.f32 %v3922_v29, %v3928_v34 }
0x13d4   : > { %v3929_v36 = vsub.f32 %v3921_v31, %v3927_v35 }
0x13d5   : > { %v3932_v37 = vmul.f32 %v7718_v30, %v3930_v32 }
0x13d6   : > { %v3931_v38 = vmul.f32 %v7718_v30, %v3929_v36 }
0x13d7   : > { %v3934_v39 = vmul.f32 %v3932_v37, %v3932_v37 }
0x13d8   : > { %v3933_v40 = vmul.f32 %v3931_v38, %v3931_v38 }
0x13d9   : > { %3937 = vadd.xlane.f32.xlu1 %v3934_v39 }
0x13da   : > { %3935 = vadd.xlane.f32.xlu0 %v3933_v40 }
0x1466   : > { %v3938_v41 = vpop.xlane.xlu1 %3937 }
0x1467   : > { %v3940_v49 = vmul.f32 0.03125, %v3938_v41  ;;  %v3936_v50 = vpop.xlane.xlu0 %3935 }
0x1468   : > { %v3939_v2 = vmul.f32 0.03125, %v3936_v50 }
0x1469   : > { %v3942_v42 = vadd.f32 1e-05, %v3940_v49 }
0x146a   : > { %v3941_v43 = vadd.f32 1e-05, %v3939_v2 }
0x146b   : > { %6357 = vrsqrt.f32 %v3942_v42 }
0x146c   : > { %6359 = vrsqrt.f32 %v3941_v43 }
0x1475   : > { %v6358_v48 = vpop.eup %6357 }
0x1476   : > { %v6360_v30 = vpop.eup %6359  ;;  %v3946_v26 = vmul.f32 %v6358_v48, %v3930_v32 }
0x1477   : > { %v3945_v53 = vmul.f32 %v6360_v30, %v3929_v36 }
0x1478   : > { %v3955_v55 = vmul.f32 %v4417_v51, %v3946_v26 }
0x1479   : > { %v3954_v56 = vmul.f32 %v4417_v51, %v3945_v53 }
0x147a   : > { %v3964_v57 = vadd.f32 %v4418_v52, %v3955_v55 }
0x147b   : > { %v3963_v59 = vadd.f32 %v4418_v52, %v3954_v56 }
0x147c   : > { %v4016_v60 = vcombine.high %v3964_v57, %v3964_v57  ;;  %v4023_v61 = vrot.slane %v3964_v57, %v3973_v54 }
0x147d   : > { %v3967_v62 = vcombine.high %v3963_v59, %v3963_v59  ;;  %v3974_v63 = vrot.slane %v3963_v59, %v3973_v54 }
0x147e   : > { %v4030_v0 = vrot.slane %v4016_v60, %v3973_v54  ;;  %v4031_v1 = vcombine.high %v4023_v61, %v4023_v61  ;;  %v4039_v58 = vrot.slane %v4023_v61, %v3973_v54  ;;  %4423 = vst.sshfl [vmem:[%s7735_s20 + $0x8] sm:$0x1 pattern:$0x73625140] %v4023_v61 }
0x147f   : > { %v3981_v3 = vrot.slane %v3967_v62, %v3973_v54  ;;  %v3982_v4 = vcombine.high %v3974_v63, %v3974_v63  ;;  %v3990_v6 = vrot.slane %v3974_v63, %v3973_v54  ;;  %4419 = vst.sshfl [vmem:[%s7735_s20] sm:$0x1 pattern:$0x73625140] %v3974_v63 }
0x1480   : > { %v4032_v8 = vcombine.high %v4030_v0, %v4030_v0  ;;  %v4046_v9 = vrot.slane %v4030_v0, %v3973_v54  ;;  %v4053_v10 = vrot.slane %v4031_v1, %v3973_v54  ;;  %v4061_v11 = vcombine.high %v4039_v58, %v4039_v58  ;;  %4424 = vst.sshfl [vmem:[%s7735_s20 + $0x9] sm:$0x1 pattern:$0x73625140] %v4031_v1 }
0x1481   : > { %4425 = vst.sshfl [vmem:[%s7735_s20 + $0xc] sm:$0x1 pattern:$0x73625140] %v4030_v0  ;;  %v3983_v12 = vcombine.high %v3981_v3, %v3981_v3  ;;  %v3997_v13 = vrot.slane %v3981_v3, %v3973_v54  ;;  %v4004_v14 = vrot.slane %v3982_v4, %v3973_v54  ;;  %v4012_v15 = vcombine.high %v3990_v6, %v3990_v6 }
0x1482   : > { %4420 = vst.sshfl [vmem:[%s7735_s20 + $0x1] sm:$0x1 pattern:$0x73625140] %v3982_v4  ;;  %v4060_v16 = vrot.slane %v4032_v8, %v3973_v54  ;;  %v4062_v17 = vcombine.high %v4046_v9, %v4046_v9  ;;  %v4063_v5 = vcombine.high %v4053_v10, %v4053_v10  ;;  %4091 = vst [vmem:[%s7735_s20 + $0xa] sm:$0x1] %v4061_v11 }
0x1483   : > { %4421 = vst.sshfl [vmem:[%s7735_s20 + $0x4] sm:$0x1 pattern:$0x73625140] %v3981_v3  ;;  %v4011_v18 = vrot.slane %v3983_v12, %v3973_v54  ;;  %v4013_v19 = vcombine.high %v3997_v13, %v3997_v13  ;;  %v4014_v20 = vcombine.high %v4004_v14, %v4004_v14  ;;  %4083 = vst [vmem:[%s7735_s20 + $0x2] sm:$0x1] %v4012_v15 }
0x1484   : > { %4426 = vst.sshfl [vmem:[%s7735_s20 + $0xd] sm:$0x1 pattern:$0x73625140] %v4032_v8  ;;  %v4064_v21 = vcombine.high %v4060_v16, %v4060_v16  ;;  %4092 = vst [vmem:[%s7735_s20 + $0xb] sm:$0x1] %v4063_v5 }
0x1485   : > { %4422 = vst.sshfl [vmem:[%s7735_s20 + $0x5] sm:$0x1 pattern:$0x73625140] %v3983_v12  ;;  %4095 = vst [vmem:[%s7735_s20 + $0xe] sm:$0x1] %v4062_v17  ;;  %v4015_v22 = vcombine.high %v4011_v18, %v4011_v18 }
0x1486   : > { %4084 = vst [vmem:[%s7735_s20 + $0x3] sm:$0x1] %v4014_v20  ;;  %4087 = vst [vmem:[%s7735_s20 + $0x6] sm:$0x1] %v4013_v19 }
0x1487   : > { %4096 = vst [vmem:[%s7735_s20 + $0xf] sm:$0x1] %v4064_v21  ;;  %4088 = vst [vmem:[%s7735_s20 + $0x7] sm:$0x1] %v4015_v22 }
0x1488   : > { %6854 = shalt.err (!%p6851_p7)
}
0x1489   : > { %s6855_s4 = scalar_lea.hbm %s7752_s21, 256  ;;  %s6859_s1 = scalar_lea.hbm %s7898_s5, 1024 }
0x148a   : > { %p6856_p3 = scmp.ne.s32.totalorder %s7752_s21, %s6855_s4  ;;  %p6860_p13 = scmp.lt.u32.totalorder %s7752_s21, %s7898_s5 }
0x148b   : > { %p6861_p1 = scmp.lt.u32.totalorder %s6859_s1, %s6855_s4  ;;  %p6863_p2 = scmp.lt.u32.totalorder %s6855_s4, %s7752_s21 }
0x148c   : > { %p6857_p11 = pnand %p6856_p3, %p7899_p8 }
0x148d   : > { %p6862_p4 = por %p6861_p1, %p6860_p13 }
0x148e   : > { %p6858_p5 = pneg %p6857_p11 }
0x148f   : > { %p6864_p10 = por %p6863_p2, %p6862_p4 }
0x1491   : > { %p6865_p12 = pnand %p6864_p10, %p6858_p5 }
0x1493   : > { %6868 = shalt.err (!%p6865_p12)
}
0x1494   : > { %s6983_s30 = smov 16   ;;  %s6984_s23 = smov 64  }
0x1495   : > { %s6985_s28 = smov 1  }
0x1496   : > { %6145 = dma.vmem_to_hbm [thread:$0]  (%p7899_p8), %s7756_s25, 256, %s7752_s21, %s4098_s0, %s6983_s30, %s6984_s23, %s6985_s28  }
0x1497 PF: > { %s7900_s6 = sld [smem:[#allocation45_spill]]  ;;  %s7901_s3 = sld [smem:[#allocation40_spill]] }
0x1498   : > { %p7902_p6 = scmp.ne.s32.totalorder %s7886_s27, 0 }
0x149d   : > { %p6237_p0 = scmp.ge.s32.totalorder %s7900_s6, 2  ;;  %s4128_s20 = sand.u32 1, %s7901_s3  }
0x149e   : > { %s4129_s4 = scalar_lea.sflag [#allocation4], %s4128_s20 }
0x149f   : > { %p6201_p9 = pnand %p6237_p0, %p7902_p6 }
0x14a1   : > { %6930 = dma.done.wait (!%p6201_p9), %s4129_s4, 256  }
0x14a2   : > { %6932 = vsyncadd (!%p6201_p9), %s4129_s4, 4294967040  ;;  %s41_s1 = sadd.s32 1, %s7900_s6   ;;  %s7903_s24 = sld [smem:[#allocation41_spill]] }
0x14a3   : > { %p38_p7 = scmp.ge.s32.totalorder %s41_s1, 6   ;;  %s7904_s25 = sld [smem:[#allocation42_spill]] }
0x14a4   : > { %s7905_s27 = sld [smem:[#allocation44_spill]]  ;;  %s7906_s26 = smov %s7494_s29 }
0x14a5   : > { %s7907_s28 = smov %s7910_s18  ;;  %s7908_s29 = smov %s41_s1 }
0x14a6   :  { %40 = sbr.rel (!%p38_p7) target bundleno = 24 (0x18), region = 218 }
0x14ad   :  { %4134 = vsyncpa [#allocation3], 1 }
0x14ae   :  { %4136 = vsyncpa [#allocation3 + $0x1], 1 }
0x14af   :  { %4137 = vsyncpa [#allocation6], 1 }
0x14b0   :  { %4138 = vsyncpa [#allocation9], 1 }
0x14b1   :  { %4139 = vsyncpa [#allocation12], 1 }
0x14b2   :  { %4140 = vsyncpa [#allocation15], 1 }
0x14b3   :  { %4141 = vsyncpa [#allocation18], 1 }
0x14b4   :  { %4142 = vsyncpa [#allocation21], 1 }
0x14b5   :  { %4143 = vsyncpa [#allocation24], 1 }
0x14b6   :  { %4144 = vsyncpa [#allocation27], 1 }
0x14b7   :  { %4145 = vsyncpa [#allocation4], 1 }
0x14b8   :  { %4147 = vsyncpa [#allocation4 + $0x1], 1 }

</bundles_post_ra>
